<compile_context>
chip_gen: v5e
topology: v5e:2x2
jax: 0.10.0
libtpu: 0.0.40
codegen_flags: <defaults>
</compile_context>

<pallas_src>
import functools
import numpy as np

import jax
import jax.numpy as jnp
from jax.experimental import pallas as pl
from jax.experimental.pallas import tpu as pltpu


# --------------------------------------------------------------------------
# NATTEN window-start / pb-start index math (host-side, numpy; matches NATTEN)
# --------------------------------------------------------------------------
def _window_start(index, length, ks, dil):
    nh = ks // 2
    if dil <= 1:
        return max(index - nh, 0) + (length - index - nh - 1 if index + nh >= length else 0)
    ni = index - nh * dil
    if ni < 0:
        return index % dil
    if index + nh * dil >= length:
        imodd = index % dil
        a = (length // dil) * dil
        b = length - a
        if imodd < b:
            return length - b + imodd - 2 * nh * dil
        return a + imodd - ks * dil
    return ni


def _pb_start(index, length, ks, dil):
    nh = ks // 2
    if dil <= 1:
        return nh + (nh - index if index < nh else 0) + \
               (length - index - 1 - nh if index + nh >= length else 0)
    if index - nh * dil < 0:
        return ks - 1 - (index // dil)
    if index + nh * dil >= length:
        return (length - index - 1) // dil
    return nh


def natten_indices(H, W, ks, dil):
    ni = np.array([_window_start(i, H, ks, dil) for i in range(H)])
    nj = np.array([_window_start(j, W, ks, dil) for j in range(W)])
    pi = np.array([_pb_start(i, H, ks, dil) for i in range(H)])
    pj = np.array([_pb_start(j, W, ks, dil) for j in range(W)])
    kr = np.arange(ks)
    row_idx = ni[:, None] + kr[None, :] * dil   # (H, ks) key row index
    col_idx = nj[:, None] + kr[None, :] * dil   # (W, ks) key col index
    rpb_row = pi[:, None] + kr[None, :]         # (H, ks) rpb row index
    rpb_col = pj[:, None] + kr[None, :]         # (W, ks) rpb col index
    return row_idx, col_idx, rpb_row, rpb_col


def build_window_bias(rpb, H, W, ks, dil, neg=-1e30):
    """Dense additive attention bias (hs, L, L) bf16: rpb inside the window, -1e30 outside.

    Built ONCE per parameter set (hoisted out of the traced forward).
    """
    row_idx, col_idx, rpb_row, rpb_col = natten_indices(H, W, ks, dil)
    # window key positions must be distinct for the scatter below (true for NATTEN).
    assert np.all(np.diff(np.sort(row_idx, axis=1), axis=1) > 0)
    assert np.all(np.diff(np.sort(col_idx, axis=1), axis=1) > 0)
    hs = rpb.shape[0]
    wb = rpb[:, rpb_row[:, None, :, None], rpb_col[None, :, None, :]].astype(jnp.float32)
    ii = np.broadcast_to(np.arange(H)[:, None, None, None], (H, W, ks, ks))
    jj = np.broadcast_to(np.arange(W)[None, :, None, None], (H, W, ks, ks))
    rr = np.broadcast_to(row_idx[:, None, :, None], (H, W, ks, ks))
    cc = np.broadcast_to(col_idx[None, :, None, :], (H, W, ks, ks))
    dense = jnp.full((hs, H, W, H, W), neg, jnp.float32)
    dense = dense.at[:, ii, jj, rr, cc].set(wb)
    return dense.reshape(hs, H * W, H * W).astype(jnp.bfloat16)


def kv_band_table(H, W, ks, dil, tq, tkv):
    """Per-query-tile kv-block band [start, count] (host-side, static)."""
    L = H * W
    row_idx, _, _, _ = natten_indices(H, W, ks, dil)
    row_min = row_idx.min(axis=1)
    row_max = row_idx.max(axis=1)
    nqt, nkv = L // tq, L // tkv
    starts = np.zeros((nqt,), np.int32)
    counts = np.zeros((nqt,), np.int32)
    for t in range(nqt):
        q0, q1 = t * tq, (t + 1) * tq - 1
        r0, r1 = q0 // W, q1 // W
        kmin = int(row_min[r0:r1 + 1].min()) * W
        kmax = (int(row_max[r0:r1 + 1].max()) + 1) * W - 1
        b0, b1 = kmin // tkv, kmax // tkv
        starts[t] = b0
        counts[t] = b1 - b0 + 1
    assert counts.max() <= nkv
    return starts, counts, int(counts.max())


def prepare_attention_constants(params, cfg, H, W, tq=256, tkv=128):
    """Precompute per-split dense bias (bf16) and kv-band tables once, outside the forward."""
    L = H * W
    tq, tkv = min(tq, L), min(tkv, L)
    consts = []
    for s, (ks, dil) in enumerate(zip(cfg["kernel_sizes"], cfg["dilations"])):
        bias = build_window_bias(params["rpb"][s], H, W, ks, dil)          # (hs, L, L) bf16
        starts, counts, nkv_max = kv_band_table(H, W, ks, dil, tq, tkv)
        consts.append(dict(bias=bias,
                           kv_start=jnp.asarray(starts, jnp.int32),
                           kv_count=jnp.asarray(counts, jnp.int32),
                           nkv_max=nkv_max, tq=tq, tkv=tkv))
    return consts


def _row_tile(N, max_tile=512):
    """Largest tile <= max_tile dividing N (grid is a serial loop on v5e/v6e)."""
    for t in (512, 256, 128, 64, 32, 16, 8):
        if t <= max_tile and N % t == 0:
            return t
    return N


def _compiler_params(semantics, vmem_limit_bytes=None):
    return pltpu.CompilerParams(dimension_semantics=semantics,
                                vmem_limit_bytes=vmem_limit_bytes)


# --------------------------------------------------------------------------
# Pallas kernels
# --------------------------------------------------------------------------
def _ln_dense_kernel(x_ref, g_ref, b_ref, w_ref, wb_ref, o_ref, *, eps):
    # Fused LayerNorm (f32) -> Linear (bf16 MXU, f32 accumulate) -> bf16 out
    x = x_ref[...].astype(jnp.float32)
    mu = jnp.mean(x, axis=-1, keepdims=True)
    var = jnp.mean(jnp.square(x - mu), axis=-1, keepdims=True)
    y = (x - mu) * jax.lax.rsqrt(var + eps)
    y = y * g_ref[...] + b_ref[...]
    z = jnp.dot(y.astype(jnp.bfloat16), w_ref[...],
                preferred_element_type=jnp.float32) + wb_ref[...]
    o_ref[...] = z.astype(o_ref.dtype)


def ln_dense(x, gamma, beta, w, wb, eps=1e-5, out_dtype=jnp.bfloat16, vmem_limit_bytes=None):
    N, Cin = x.shape
    Cout = w.shape[1]
    tile = _row_tile(N)
    return pl.pallas_call(
        functools.partial(_ln_dense_kernel, eps=eps),
        out_shape=jax.ShapeDtypeStruct((N, Cout), out_dtype),
        grid=(N // tile,),
        in_specs=[pl.BlockSpec((tile, Cin), lambda i: (i, 0)),
                  pl.BlockSpec((1, Cin), lambda i: (0, 0)),
                  pl.BlockSpec((1, Cin), lambda i: (0, 0)),
                  pl.BlockSpec((Cin, Cout), lambda i: (0, 0)),
                  pl.BlockSpec((1, Cout), lambda i: (0, 0))],
        out_specs=pl.BlockSpec((tile, Cout), lambda i: (i, 0)),
        compiler_params=_compiler_params(("parallel",), vmem_limit_bytes),
    )(x, gamma.reshape(1, Cin).astype(jnp.float32),
      beta.reshape(1, Cin).astype(jnp.float32),
      w.astype(jnp.bfloat16), wb.reshape(1, Cout).astype(jnp.float32))


def _dense_res_kernel(x_ref, w_ref, b_ref, res_ref, o_ref):
    # Fused Linear (bf16 MXU) + residual add (f32)
    z = jnp.dot(x_ref[...].astype(jnp.bfloat16), w_ref[...],
                preferred_element_type=jnp.float32) + b_ref[...]
    o_ref[...] = (res_ref[...].astype(jnp.float32) + z).astype(o_ref.dtype)


def dense_res(x, w, b, res, vmem_limit_bytes=None):
    N, Cin = x.shape
    Cout = w.shape[1]
    tile = _row_tile(N)
    return pl.pallas_call(
        _dense_res_kernel,
        out_shape=jax.ShapeDtypeStruct((N, Cout), res.dtype),
        grid=(N // tile,),
        in_specs=[pl.BlockSpec((tile, Cin), lambda i: (i, 0)),
                  pl.BlockSpec((Cin, Cout), lambda i: (0, 0)),
                  pl.BlockSpec((1, Cout), lambda i: (0, 0)),
                  pl.BlockSpec((tile, Cout), lambda i: (i, 0))],
        out_specs=pl.BlockSpec((tile, Cout), lambda i: (i, 0)),
        compiler_params=_compiler_params(("parallel",), vmem_limit_bytes),
    )(x, w.astype(jnp.bfloat16), b.reshape(1, Cout).astype(jnp.float32), res)


def _mlp_block_kernel(x_ref, g_ref, b_ref, w1_ref, b1_ref, w2_ref, b2_ref, o_ref, *, eps):
    # Fused LayerNorm -> fc1 -> GELU -> fc2 -> residual (x + mlp(norm2(x)))
    x = x_ref[...].astype(jnp.float32)
    mu = jnp.mean(x, axis=-1, keepdims=True)
    var = jnp.mean(jnp.square(x - mu), axis=-1, keepdims=True)
    y = (x - mu) * jax.lax.rsqrt(var + eps) * g_ref[...] + b_ref[...]
    h = jnp.dot(y.astype(jnp.bfloat16), w1_ref[...],
                preferred_element_type=jnp.float32) + b1_ref[...]
    h = jax.nn.gelu(h, approximate=False)          # PyTorch nn.GELU() default = exact erf
    z = jnp.dot(h.astype(jnp.bfloat16), w2_ref[...],
                preferred_element_type=jnp.float32) + b2_ref[...]
    o_ref[...] = (x + z).astype(o_ref.dtype)


def mlp_block(x, gamma, beta, w1, b1, w2, b2, eps=1e-5, vmem_limit_bytes=None):
    N, C = x.shape
    Hid = w1.shape[1]
    tile = _row_tile(N)
    return pl.pallas_call(
        functools.partial(_mlp_block_kernel, eps=eps),
        out_shape=jax.ShapeDtypeStruct((N, C), x.dtype),
        grid=(N // tile,),
        in_specs=[pl.BlockSpec((tile, C), lambda i: (i, 0)),
                  pl.BlockSpec((1, C), lambda i: (0, 0)),
                  pl.BlockSpec((1, C), lambda i: (0, 0)),
                  pl.BlockSpec((C, Hid), lambda i: (0, 0)),
                  pl.BlockSpec((1, Hid), lambda i: (0, 0)),
                  pl.BlockSpec((Hid, C), lambda i: (0, 0)),
                  pl.BlockSpec((1, C), lambda i: (0, 0))],
        out_specs=pl.BlockSpec((tile, C), lambda i: (i, 0)),
        compiler_params=_compiler_params(("parallel",), vmem_limit_bytes),
    )(x, gamma.reshape(1, C).astype(jnp.float32),
      beta.reshape(1, C).astype(jnp.float32),
      w1.astype(jnp.bfloat16), b1.reshape(1, Hid).astype(jnp.float32),
      w2.astype(jnp.bfloat16), b2.reshape(1, C).astype(jnp.float32))


def _mna_band_kernel(starts_ref, counts_ref, q_ref, k_ref, v_ref, bias_ref, o_ref,
                     m_sc, l_sc, acc_sc, *, scale):
    # Banded neighborhood attention with online softmax (flash-style).
    # q: (1,1,tq,hd) bf16   k,v: (1,1,tkv,hd) bf16   bias: (1,tq,tkv) bf16
    t = pl.program_id(2)
    j = pl.program_id(3)

    @pl.when(j == 0)
    def _():
        m_sc[...] = jnp.full(m_sc.shape, -jnp.inf, m_sc.dtype)
        l_sc[...] = jnp.zeros(l_sc.shape, l_sc.dtype)
        acc_sc[...] = jnp.zeros(acc_sc.shape, acc_sc.dtype)

    # Steps past this query-tile's kv band are skipped (their block index is clamped to
    # the previous one in the index_map, so the DMA is skipped too via revisit-skip).
    @pl.when(j < counts_ref[t])
    def _():
        # Fold the softmax scale into the small (tq, hd) q tile, not the (tq, tkv) scores.
        q = (q_ref[0, 0].astype(jnp.float32) * scale).astype(jnp.bfloat16)
        k = k_ref[0, 0]
        v = v_ref[0, 0]
        s = jax.lax.dot_general(q, k, (((1,), (1,)), ((), ())),
                                preferred_element_type=jnp.float32)      # (tq, tkv)
        s = s + bias_ref[0].astype(jnp.float32)                          # -1e30 outside window
        m_prev = m_sc[...]
        m_new = jnp.maximum(m_prev, jnp.max(s, axis=-1, keepdims=True))
        alpha = jnp.exp(m_prev - m_new)
        p = jnp.exp(s - m_new)
        l_sc[...] = alpha * l_sc[...] + jnp.sum(p, axis=-1, keepdims=True)
        acc_sc[...] = alpha * acc_sc[...] + jnp.dot(
            p.astype(jnp.bfloat16), v, preferred_element_type=jnp.float32)
        m_sc[...] = m_new

    @pl.when(j == pl.num_programs(3) - 1)
    def _():
        inv = pl.reciprocal(l_sc[...], approx=True)
        o_ref[0, 0] = (acc_sc[...] * inv).astype(o_ref.dtype)


def masked_na_attention_banded(q, k, v, bias, scale, kv_start, kv_count, nkv_max,
                               tq=256, tkv=128, vmem_limit_bytes=None):
    # q/k/v: (B, hs, L, hd) bf16   bias: (hs, L, L) bf16 additive (rpb / -1e30)
    B, hs, L, hd = q.shape
    tq, tkv = min(tq, L), min(tkv, L)
    assert L % tq == 0 and L % tkv == 0
    nqt = L // tq

    def q_map(b, h, t, j, s_ref, c_ref):
        return (b, h, t, 0)

    def kv_map(b, h, t, j, s_ref, c_ref):
        blk = s_ref[t] + jnp.minimum(j, c_ref[t] - 1)
        return (b, h, blk, 0)

    def bias_map(b, h, t, j, s_ref, c_ref):
        blk = s_ref[t] + jnp.minimum(j, c_ref[t] - 1)
        return (h, t, blk)

    def out_map(b, h, t, j, s_ref, c_ref):
        return (b, h, t, 0)

    return pl.pallas_call(
        functools.partial(_mna_band_kernel, scale=scale),
        out_shape=jax.ShapeDtypeStruct((B, hs, L, hd), jnp.bfloat16),
        grid_spec=pltpu.PrefetchScalarGridSpec(
            num_scalar_prefetch=2,
            grid=(B, hs, nqt, nkv_max),
            in_specs=[pl.BlockSpec((1, 1, tq, hd), q_map),
                      pl.BlockSpec((1, 1, tkv, hd), kv_map),
                      pl.BlockSpec((1, 1, tkv, hd), kv_map),
                      pl.BlockSpec((1, tq, tkv), bias_map)],
            out_specs=pl.BlockSpec((1, 1, tq, hd), out_map),
            scratch_shapes=[pltpu.VMEM((tq, 1), jnp.float32),
                            pltpu.VMEM((tq, 1), jnp.float32),
                            pltpu.VMEM((tq, hd), jnp.float32)]),
        compiler_params=_compiler_params(
            ("parallel", "parallel", "parallel", "arbitrary"), vmem_limit_bytes),
    )(kv_start, kv_count, q, k, v, bias)


# --------------------------------------------------------------------------
# HydraNATBlock forward (glue in JAX, hot paths in Pallas)
# --------------------------------------------------------------------------
def hydra_nat_block_forward(x, params, cfg, attn_consts, vmem_limit_bytes=None):
    B, H, W, C = x.shape
    L = H * W
    N = B * L
    nh, hd = cfg["num_heads"], cfg["head_dim"]

    xf = x.reshape(N, C)

    # --- attention branch: fused norm1 + qkv projection (bf16 out) ---
    qkv = ln_dense(xf, params["norm1_g"], params["norm1_b"],
                   params["qkv_w"], params["qkv_b"],
                   vmem_limit_bytes=vmem_limit_bytes)                 # (N, 3C) bf16
    qkv = qkv.reshape(B, L, 3, nh, hd)
    qkv = jnp.transpose(qkv, (2, 0, 3, 1, 4))                         # (3, B, nh, L, hd) bf16
    q, k, v = qkv[0], qkv[1], qkv[2]

    outs = []
    h0 = 0
    for s in range(len(cfg["kernel_sizes"])):
        hs = cfg["heads_per_split"][s]
        c = attn_consts[s]
        o = masked_na_attention_banded(
            q[:, h0:h0 + hs], k[:, h0:h0 + hs], v[:, h0:h0 + hs],
            c["bias"], cfg["scale"], c["kv_start"], c["kv_count"], c["nkv_max"],
            tq=c["tq"], tkv=c["tkv"], vmem_limit_bytes=vmem_limit_bytes)   # (B, hs, L, hd) bf16
        outs.append(o)
        h0 += hs

    attn = jnp.concatenate(outs, axis=1)                              # (B, nh, L, hd) bf16
    attn = jnp.transpose(attn, (0, 2, 1, 3)).reshape(N, C)            # (N, C) bf16

    # --- fused proj + residual ---
    # TODO(synk): attn_drop / proj_drop / drop_path are identity (p=0 in eval); not modeled.
    x1 = dense_res(attn, params["proj_w"], params["proj_b"], xf,
                   vmem_limit_bytes=vmem_limit_bytes)                 # (N, C) f32

    # --- fused norm2 + MLP + residual ---
    out = mlp_block(x1, params["norm2_g"], params["norm2_b"],
                    params["fc1_w"], params["fc1_b"],
                    params["fc2_w"], params["fc2_b"],
                    vmem_limit_bytes=vmem_limit_bytes)
    return out.reshape(B, H, W, C)


# --------------------------------------------------------------------------
# Pure-JAX reference (f32, explicit neighborhood gather) for verification
# --------------------------------------------------------------------------
def ref_forward(x, params, cfg):
    B, H, W, C = x.shape
    nh, hd = cfg["num_heads"], cfg["head_dim"]

    def ln(z, g, b):
        mu = jnp.mean(z, axis=-1, keepdims=True)
        var = jnp.mean(jnp.square(z - mu), axis=-1, keepdims=True)
        return (z - mu) / jnp.sqrt(var + 1e-5) * g + b

    shortcut = x
    h = ln(x, params["norm1_g"], params["norm1_b"])
    qkv = h @ params["qkv_w"] + params["qkv_b"]
    qkv = qkv.reshape(B, H, W, 3, nh, hd)
    qkv = jnp.transpose(qkv, (3, 0, 4, 1, 2, 5))
    q, k, v = qkv[0] * cfg["scale"], qkv[1], qkv[2]

    outs = []
    h0 = 0
    for s, (ks, dil) in enumerate(zip(cfg["kernel_sizes"], cfg["dilations"])):
        hs = cfg["heads_per_split"][s]
        q_s, k_s, v_s = q[:, h0:h0 + hs], k[:, h0:h0 + hs], v[:, h0:h0 + hs]
        h0 += hs
        row_idx, col_idx, rpb_row, rpb_col = natten_indices(H, W, ks, dil)
        k_nb = k_s[:, :, row_idx[:, None, :, None], col_idx[None, :, None, :], :]
        v_nb = v_s[:, :, row_idx[:, None, :, None], col_idx[None, :, None, :], :]
        bias = params["rpb"][s][:, rpb_row[:, None, :, None], rpb_col[None, :, None, :]]
        attn = jnp.einsum("bhijd,bhijkld->bhijkl", q_s, k_nb) + bias[None]
        attn = jax.nn.softmax(attn.reshape(B, hs, H, W, ks * ks), axis=-1)
        o = jnp.einsum("bhijn,bhijnd->bhijd", attn,
                       v_nb.reshape(B, hs, H, W, ks * ks, hd))
        outs.append(o)
    a = jnp.concatenate(outs, axis=1)
    a = jnp.transpose(a, (0, 2, 3, 1, 4)).reshape(B, H, W, C)
    a = a @ params["proj_w"] + params["proj_b"]
    x1 = shortcut + a
    h2 = ln(x1, params["norm2_g"], params["norm2_b"])
    h2 = jax.nn.gelu(h2 @ params["fc1_w"] + params["fc1_b"], approximate=False)
    h2 = h2 @ params["fc2_w"] + params["fc2_b"]
    return x1 + h2


# --------------------------------------------------------------------------
# Config & deterministic parameter init
# --------------------------------------------------------------------------
def make_cfg(dim, num_heads, kernel_sizes, dilations, mlp_ratio=4.0):
    if len(kernel_sizes) == 1 and len(dilations) != 1:
        kernel_sizes = [kernel_sizes[0]] * len(dilations)
    elif len(dilations) == 1 and len(kernel_sizes) != 1:
        dilations = [dilations[0]] * len(kernel_sizes)
    assert len(kernel_sizes) == len(dilations)
    assert all(k > 1 and k % 2 == 1 for k in kernel_sizes)
    num_splits = len(kernel_sizes)
    base = num_heads // num_splits
    diff = num_heads - num_splits * base
    heads_per_split = ([base] * num_splits if diff == 0
                       else [base] * (num_splits - diff) + [base + 1] * diff)
    head_dim = dim // num_heads
    return dict(dim=dim, num_heads=num_heads, head_dim=head_dim,
                kernel_sizes=kernel_sizes, dilations=dilations,
                heads_per_split=heads_per_split, scale=head_dim ** (-0.5),
                hidden=int(dim * mlp_ratio))


def init_params(key, cfg):
    dim, hidden = cfg["dim"], cfg["hidden"]
    keys = jax.random.split(key, 8 + len(cfg["kernel_sizes"]))

    def w(k, shape, std=0.02):
        return (std * jax.random.normal(k, shape, jnp.float32))

    params = dict(
        norm1_g=jnp.ones((dim,), jnp.float32),
        norm1_b=jnp.zeros((dim,), jnp.float32),
        qkv_w=w(keys[0], (dim, 3 * dim)),
        qkv_b=w(keys[1], (3 * dim,)),
        proj_w=w(keys[2], (dim, dim)),
        proj_b=w(keys[3], (dim,)),
        norm2_g=jnp.ones((dim,), jnp.float32),
        norm2_b=jnp.zeros((dim,), jnp.float32),
        fc1_w=w(keys[4], (dim, hidden)),
        fc1_b=w(keys[5], (hidden,)),
        fc2_w=w(keys[6], (hidden, dim)),
        fc2_b=w(keys[7], (dim,)),
        # trunc_normal(std=0.02) replaced by scaled normal (synthetic, deterministic)
        rpb=[w(keys[8 + i], (cfg["heads_per_split"][i], 2 * k - 1, 2 * k - 1))
             for i, k in enumerate(cfg["kernel_sizes"])],
    )
    return params


# --------------------------------------------------------------------------
if __name__ == "__main__":
    B, H, W, dim = 2, 16, 16, 32
    num_heads = 4
    kernel_sizes = [3, 5]
    dilations = [1, 2]

    cfg = make_cfg(dim, num_heads, kernel_sizes, dilations, mlp_ratio=4.0)

    key = jax.random.PRNGKey(0)
    kx, kp = jax.random.split(key)
    x = jax.random.normal(kx, (B, H, W, dim), jnp.float32)
    params = init_params(kp, cfg)

    # Precompute window bias (bf16) + kv band tables ONCE (not per forward call).
    attn_consts = prepare_attention_constants(params, cfg, H, W, tq=256, tkv=128)

    out = hydra_nat_block_forward(x, params, cfg, attn_consts)
    out = jax.block_until_ready(out)

    assert out.shape == (B, H, W, dim)
    assert bool(jnp.all(jnp.isfinite(out)))

    ref = ref_forward(x, params, cfg)
    max_err = float(jnp.max(jnp.abs(out - ref)))
    rel_err = max_err / max(1e-6, float(jnp.max(jnp.abs(ref))))
    # tolerance vs the f32 reference: MXU inputs/bias/attn activations are bf16
    # (f32 accumulation) and softmax uses the EUP approx reciprocal.
    assert max_err < 3e-2, f"abs mismatch vs reference: {max_err}"
    assert rel_err < 1.5e-2, f"rel mismatch vs reference: {rel_err}"

    print("KERNEL_OK")
</pallas_src>

<mosaic_0001>
module attributes {stable_mosaic.version = 11 : i64} {
  func.func @_ln_dense_kernel(%arg0: i32, %arg1: memref<512x32xf32, #tpu.memory_space<vmem>>, %arg2: memref<1x32xf32, #tpu.memory_space<vmem>>, %arg3: memref<1x32xf32, #tpu.memory_space<vmem>>, %arg4: memref<32x96xbf16, #tpu.memory_space<vmem>>, %arg5: memref<1x96xf32, #tpu.memory_space<vmem>>, %arg6: memref<512x96xbf16, #tpu.memory_space<vmem>>) attributes {dimension_semantics = [#tpu.dimension_semantics<parallel>], iteration_bounds = array<i64: 1>, scalar_prefetch = 0 : i64, scratch_operands = 0 : i64, tpu.core_type = #tpu.core_type<tc>, window_params = [{transform_indices = @transform_0, window_bounds = array<i64: 512, 32>}, {pipeline_mode = #tpu.pipeline_mode<synchronous>, transform_indices = @transform_1, window_bounds = array<i64: 1, 32>}, {pipeline_mode = #tpu.pipeline_mode<synchronous>, transform_indices = @transform_2, window_bounds = array<i64: 1, 32>}, {pipeline_mode = #tpu.pipeline_mode<synchronous>, transform_indices = @transform_3, window_bounds = array<i64: 32, 96>}, {pipeline_mode = #tpu.pipeline_mode<synchronous>, transform_indices = @transform_4, window_bounds = array<i64: 1, 96>}, {transform_indices = @transform_5, window_bounds = array<i64: 512, 96>}]} {
    %c0 = arith.constant 0 : index
    %c0_0 = arith.constant 0 : index
    %0 = vector.load %arg1[%c0, %c0_0] : memref<512x32xf32, #tpu.memory_space<vmem>>, vector<512x32xf32>
    %cst = arith.constant dense<0.000000e+00> : vector<512xf32>
    %1 = vector.multi_reduction <add>, %0, %cst [1] : vector<512x32xf32> to vector<512xf32>
    %2 = vector.shape_cast %1 : vector<512xf32> to vector<512x1xf32>
    %cst_1 = arith.constant 3.200000e+01 : f32
    %3 = vector.broadcast %cst_1 : f32 to vector<512x1xf32>
    %4 = arith.divf %2, %3 : vector<512x1xf32>
    %5 = vector.broadcast %4 : vector<512x1xf32> to vector<512x32xf32>
    %6 = arith.subf %0, %5 : vector<512x32xf32>
    %7 = arith.mulf %6, %6 : vector<512x32xf32>
    %cst_2 = arith.constant dense<0.000000e+00> : vector<512xf32>
    %8 = vector.multi_reduction <add>, %7, %cst_2 [1] : vector<512x32xf32> to vector<512xf32>
    %9 = vector.shape_cast %8 : vector<512xf32> to vector<512x1xf32>
    %cst_3 = arith.constant 3.200000e+01 : f32
    %10 = vector.broadcast %cst_3 : f32 to vector<512x1xf32>
    %11 = arith.divf %9, %10 : vector<512x1xf32>
    %12 = vector.broadcast %4 : vector<512x1xf32> to vector<512x32xf32>
    %13 = arith.subf %0, %12 : vector<512x32xf32>
    %cst_4 = arith.constant 9.99999974E-6 : f32
    %14 = vector.broadcast %cst_4 : f32 to vector<512x1xf32>
    %15 = arith.addf %11, %14 : vector<512x1xf32>
    %16 = math.rsqrt %15 : vector<512x1xf32>
    %17 = vector.broadcast %16 : vector<512x1xf32> to vector<512x32xf32>
    %18 = arith.mulf %13, %17 : vector<512x32xf32>
    %c0_5 = arith.constant 0 : index
    %c0_6 = arith.constant 0 : index
    %19 = vector.load %arg2[%c0_5, %c0_6] : memref<1x32xf32, #tpu.memory_space<vmem>>, vector<1x32xf32>
    %20 = vector.broadcast %19 : vector<1x32xf32> to vector<512x32xf32>
    %21 = arith.mulf %18, %20 : vector<512x32xf32>
    %c0_7 = arith.constant 0 : index
    %c0_8 = arith.constant 0 : index
    %22 = vector.load %arg3[%c0_7, %c0_8] : memref<1x32xf32, #tpu.memory_space<vmem>>, vector<1x32xf32>
    %23 = vector.broadcast %22 : vector<1x32xf32> to vector<512x32xf32>
    %24 = arith.addf %21, %23 : vector<512x32xf32>
    %25 = arith.truncf %24 : vector<512x32xf32> to vector<512x32xbf16>
    %c0_9 = arith.constant 0 : index
    %c0_10 = arith.constant 0 : index
    %26 = vector.load %arg4[%c0_9, %c0_10] : memref<32x96xbf16, #tpu.memory_space<vmem>>, vector<32x96xbf16>
    %cst_11 = arith.constant dense<0.000000e+00> : vector<512x96xf32>
    %27 = tpu.matmul %25, %26, %cst_11 {dimension_numbers = #tpu.dot_dimension_numbers<[1], [0], [0], [1], [0, 0, 1, 1], [], []>} : vector<512x32xbf16>, vector<32x96xbf16>, vector<512x96xf32> -> vector<512x96xf32>
    %c0_12 = arith.constant 0 : index
    %c0_13 = arith.constant 0 : index
    %28 = vector.load %arg5[%c0_12, %c0_13] : memref<1x96xf32, #tpu.memory_space<vmem>>, vector<1x96xf32>
    %29 = vector.broadcast %28 : vector<1x96xf32> to vector<512x96xf32>
    %30 = arith.addf %27, %29 : vector<512x96xf32>
    %31 = arith.truncf %30 : vector<512x96xf32> to vector<512x96xbf16>
    %c0_14 = arith.constant 0 : index
    %c0_15 = arith.constant 0 : index
    %32 = vector.load %arg6[%c0_14, %c0_15] : memref<512x96xbf16, #tpu.memory_space<vmem>>, vector<512x96xbf16>
    tpu.vector_store %arg6[%c0_14, %c0_15], %31 {strides = array<i32>} : memref<512x96xbf16, #tpu.memory_space<vmem>>, vector<512x96xbf16>,
    return
  }
  func.func @transform_0(%arg0: i32) -> (i32, i32) {
    %c0_i32 = arith.constant 0 : i32
    %c0_i32_0 = arith.constant 0 : i32
    return %arg0, %c0_i32 : i32, i32
  }
  func.func @transform_1(%arg0: i32) -> (i32, i32) {
    %c0_i32 = arith.constant 0 : i32
    %c0_i32_0 = arith.constant 0 : i32
    %c0_i32_1 = arith.constant 0 : i32
    return %c0_i32, %c0_i32_0 : i32, i32
  }
  func.func @transform_2(%arg0: i32) -> (i32, i32) {
    %c0_i32 = arith.constant 0 : i32
    %c0_i32_0 = arith.constant 0 : i32
    %c0_i32_1 = arith.constant 0 : i32
    return %c0_i32, %c0_i32_0 : i32, i32
  }
  func.func @transform_3(%arg0: i32) -> (i32, i32) {
    %c0_i32 = arith.constant 0 : i32
    %c0_i32_0 = arith.constant 0 : i32
    %c0_i32_1 = arith.constant 0 : i32
    return %c0_i32, %c0_i32_0 : i32, i32
  }
  func.func @transform_4(%arg0: i32) -> (i32, i32) {
    %c0_i32 = arith.constant 0 : i32
    %c0_i32_0 = arith.constant 0 : i32
    %c0_i32_1 = arith.constant 0 : i32
    return %c0_i32, %c0_i32_0 : i32, i32
  }
  func.func @transform_5(%arg0: i32) -> (i32, i32) {
    %c0_i32 = arith.constant 0 : i32
    %c0_i32_0 = arith.constant 0 : i32
    return %arg0, %c0_i32 : i32, i32
  }
}

</mosaic_0001>

<bundles_post_ra>
// kernel: tpu_custom_call.1
= control target key start
LH: loop header
LB: loop body
LE: loop exit
PB: predicated region body
PF: predicated region fallthrough
CT: control target
= control target key end

     0   :  { %vm85_vm0 = vcmask 261120   ;;  %s4750_s0 = inlined_call_operand.vmem [shape: f32[512,32], index: 0, kind: input, shape index: {}]   ;;  %s4751_s1 = inlined_call_operand.vmem [shape: f32[1,32], index: 1, kind: input, shape index: {}]   ;;  %s4752_s2 = inlined_call_operand.vmem [shape: f32[1,32], index: 2, kind: input, shape index: {}]   ;;  %s4753_s3 = inlined_call_operand.vmem [shape: bf16[32,96], index: 3, kind: input, shape index: {}]   ;;  %s4754_s4 = inlined_call_operand.vmem [shape: f32[1,96], index: 4, kind: input, shape index: {}]   ;;  %s4755_s5 = inlined_call_operand.vmem [shape: bf16[512,96], index: 5, kind: output, shape index: {}]  }
   0x1   :  { %v2332_v0 = vld [vmem:[%s4750_s0 + $0x100] sm:$0xff]  ;;  %v2337_v1 = vld [vmem:[%s4750_s0 + $0x10] sm:$0xff]  ;;  %v2353_v6 = vld [vmem:[%s4750_s0 + $0x108] sm:$0xff] }
   0x2   :  { %v2342_v2 = vld [vmem:[%s4750_s0] sm:$0xff]  ;;  %v182_v3 = vsel %vm85_vm0, %v2332_v0, 0.0  ;;  %v92_v4 = vsel %vm85_vm0, %v2337_v1, 0.0  ;;  %v2358_v7 = vld [vmem:[%s4750_s0 + $0x18] sm:$0xff]  ;;  %v2363_v8 = vld [vmem:[%s4750_s0 + $0x8] sm:$0xff]  ;;  %v185_v9 = vsel %vm85_vm0, %v2353_v6, 0.0 }
   0x3   :  { %v86_v5 = vsel %vm85_vm0, %v2342_v2, 0.0  ;;  %183 = vadd.xlane.f32.xlu2 %v182_v3  ;;  %93 = vadd.xlane.f32.xlu1 %v92_v4  ;;  %v95_v10 = vsel %vm85_vm0, %v2358_v7, 0.0  ;;  %v89_v11 = vsel %vm85_vm0, %v2363_v8, 0.0  ;;  %v2374_v12 = vld [vmem:[%s4750_s0 + $0x80] sm:$0xff]  ;;  %v2379_v13 = vld [vmem:[%s4750_s0 + $0x188] sm:$0xff]  ;;  %v2395_v18 = vld [vmem:[%s4750_s0 + $0x110] sm:$0xff] }
   0x4   :  { %87 = vadd.xlane.f32.xlu0 %v86_v5  ;;  %v2384_v14 = vld [vmem:[%s4750_s0 + $0x180] sm:$0xff]  ;;  %v134_v15 = vsel %vm85_vm0, %v2374_v12, 0.0  ;;  %v233_v16 = vsel %vm85_vm0, %v2379_v13, 0.0  ;;  %v2400_v19 = vld [vmem:[%s4750_s0 + $0x118] sm:$0xff]  ;;  %v2405_v20 = vld [vmem:[%s4750_s0 + $0x88] sm:$0xff]  ;;  %v188_v21 = vsel %vm85_vm0, %v2395_v18, 0.0 }
   0x5   :  { %v230_v17 = vsel %vm85_vm0, %v2384_v14, 0.0  ;;  %v191_v22 = vsel %vm85_vm0, %v2400_v19, 0.0  ;;  %v137_v23 = vsel %vm85_vm0, %v2405_v20, 0.0  ;;  %v2416_v24 = vld [vmem:[%s4750_s0 + $0x198] sm:$0xff]  ;;  %v2421_v25 = vld [vmem:[%s4750_s0 + $0x90] sm:$0xff]  ;;  %v2437_v30 = vld [vmem:[%s4750_s0 + $0x128] sm:$0xff] }
   0x6   :  { %v2426_v26 = vld [vmem:[%s4750_s0 + $0x190] sm:$0xff]  ;;  %v239_v27 = vsel %vm85_vm0, %v2416_v24, 0.0  ;;  %v140_v28 = vsel %vm85_vm0, %v2421_v25, 0.0  ;;  %v2442_v31 = vld [vmem:[%s4750_s0 + $0x120] sm:$0xff]  ;;  %v2447_v32 = vld [vmem:[%s4750_s0 + $0x98] sm:$0xff]  ;;  %v197_v33 = vsel %vm85_vm0, %v2437_v30, 0.0 }
   0x7   :  { %v236_v29 = vsel %vm85_vm0, %v2426_v26, 0.0  ;;  %v194_v34 = vsel %vm85_vm0, %v2442_v31, 0.0  ;;  %v143_v35 = vsel %vm85_vm0, %v2447_v32, 0.0  ;;  %v2458_v36 = vld [vmem:[%s4750_s0 + $0x1a8] sm:$0xff]  ;;  %v2463_v37 = vld [vmem:[%s4750_s0 + $0x20] sm:$0xff]  ;;  %v2500_v48 = vld [vmem:[%s4750_s0 + $0x130] sm:$0xff] }
   0x8   :  { %v2468_v38 = vld [vmem:[%s4750_s0 + $0x1a0] sm:$0xff]  ;;  %v245_v39 = vsel %vm85_vm0, %v2458_v36, 0.0  ;;  %v98_v40 = vsel %vm85_vm0, %v2463_v37, 0.0  ;;  %v2479_v42 = vld [vmem:[%s4750_s0 + $0xa8] sm:$0xff]  ;;  %v2505_v49 = vld [vmem:[%s4750_s0 + $0x138] sm:$0xff]  ;;  %v200_v51 = vsel %vm85_vm0, %v2500_v48, 0.0 }
   0x9   :  { %v242_v41 = vsel %vm85_vm0, %v2468_v38, 0.0  ;;  %v2484_v43 = vld [vmem:[%s4750_s0 + $0xa0] sm:$0xff]  ;;  %v2489_v44 = vld [vmem:[%s4750_s0 + $0x28] sm:$0xff]  ;;  %v149_v45 = vsel %vm85_vm0, %v2479_v42, 0.0  ;;  %v2510_v50 = vld [vmem:[%s4750_s0 + $0x1b0] sm:$0xff]  ;;  %v203_v52 = vsel %vm85_vm0, %v2505_v49, 0.0 }
   0xa   :  { %v146_v46 = vsel %vm85_vm0, %v2484_v43, 0.0  ;;  %v101_v47 = vsel %vm85_vm0, %v2489_v44, 0.0  ;;  %v248_v53 = vsel %vm85_vm0, %v2510_v50, 0.0  ;;  %v2521_v54 = vld [vmem:[%s4750_s0 + $0x1b8] sm:$0xff]  ;;  %v2526_v55 = vld [vmem:[%s4750_s0 + $0x30] sm:$0xff]  ;;  %v2556_v3 = vld [vmem:[%s4750_s0 + $0x148] sm:$0xff] }
   0xb   :  { %186 = vadd.xlane.f32.xlu2 %v185_v9  ;;  %96 = vadd.xlane.f32.xlu1 %v95_v10  ;;  %v251_v56 = vsel %vm85_vm0, %v2521_v54, 0.0  ;;  %v104_v57 = vsel %vm85_vm0, %v2526_v55, 0.0  ;;  %v2535_v58 = vld [vmem:[%s4750_s0 + $0xb8] sm:$0xff]  ;;  %v2542_v60 = vld [vmem:[%s4750_s0 + $0xb0] sm:$0xff]  ;;  %v209_v4 = vsel %vm85_vm0, %v2556_v3, 0.0  ;;  %v2298_v5 = vmov 32.0  }
   0xc   :  { %90 = vadd.xlane.f32.xlu0 %v89_v11  ;;  %v155_v59 = vsel %vm85_vm0, %v2535_v58, 0.0  ;;  %v2547_v61 = vld [vmem:[%s4750_s0 + $0x38] sm:$0xff]  ;;  %v152_v62 = vsel %vm85_vm0, %v2542_v60, 0.0  ;;  %2139 = vrcp.f32 %v2298_v5  ;;  %v2563_v9 = vld [vmem:[%s4750_s0 + $0x140] sm:$0xff] }
   0xd   :  { %v107_v63 = vsel %vm85_vm0, %v2547_v61, 0.0  ;;  %v2568_v10 = vld [vmem:[%s4750_s0 + $0x1c0] sm:$0xff]  ;;  %v206_v11 = vsel %vm85_vm0, %v2563_v9, 0.0 }
  0x13   :  { %135 = vadd.xlane.f32.xlu2 %v134_v15  ;;  %234 = vadd.xlane.f32.xlu1 %v233_v16  ;;  %v254_v15 = vsel %vm85_vm0, %v2568_v10, 0.0  ;;  %v2140_v16 = vpop.eup %2139 }
  0x14   :  { %231 = vadd.xlane.f32.xlu0 %v230_v17  ;;  %v279_v17 = vmul.f32 32.0, %v2140_v16  ;;  %vm283_vm1 = vweird.f32 %v2140_v16 }
  0x1b   :  { %189 = vadd.xlane.f32.xlu1 %v188_v21  ;;  %192 = vadd.xlane.f32.xlu2 %v191_v22  ;;  %v2577_v21 = vld [vmem:[%s4750_s0 + $0x1c8] sm:$0xff] }
  0x1c   :  { %138 = vadd.xlane.f32.xlu0 %v137_v23  ;;  %v257_v22 = vsel %vm85_vm0, %v2577_v21, 0.0  ;;  %v280_v23 = vsub.f32 1.0, %v279_v17 }
  0x23   :  { %240 = vadd.xlane.f32.xlu1 %v239_v27  ;;  %141 = vadd.xlane.f32.xlu2 %v140_v28  ;;  %v281_v27 = vmul.f32 %v2140_v16, %v280_v23 }
  0x24   :  { %237 = vadd.xlane.f32.xlu0 %v236_v29 }
  0x25   :  { %v282_v28 = vadd.f32 %v2140_v16, %v281_v27 }
  0x27   :  { %v2581_v29 = vsel %vm283_vm1, %v2140_v16, %v282_v28 }
  0x2b   :  { %198 = vadd.xlane.f32.xlu2 %v197_v33  ;;  %195 = vadd.xlane.f32.xlu1 %v194_v34 }
  0x2c   :  { %144 = vadd.xlane.f32.xlu0 %v143_v35 }
  0x33   :  { %246 = vadd.xlane.f32.xlu1 %v245_v39  ;;  %99 = vadd.xlane.f32.xlu2 %v98_v40 }
  0x34   :  { %243 = vadd.xlane.f32.xlu0 %v242_v41 }
  0x3b   :  { %150 = vadd.xlane.f32.xlu2 %v149_v45  ;;  %147 = vadd.xlane.f32.xlu1 %v146_v46 }
  0x3c   :  { %102 = vadd.xlane.f32.xlu0 %v101_v47 }
  0x43   :  { %201 = vadd.xlane.f32.xlu1 %v200_v51  ;;  %204 = vadd.xlane.f32.xlu2 %v203_v52 }
  0x44   :  { %249 = vadd.xlane.f32.xlu0 %v248_v53 }
  0x4b   :  { %252 = vadd.xlane.f32.xlu1 %v251_v56  ;;  %153 = vadd.xlane.f32.xlu2 %v152_v62 }
  0x4c   :  { %105 = vadd.xlane.f32.xlu0 %v104_v57 }
  0x53   :  { %108 = vadd.xlane.f32.xlu1 %v107_v63  ;;  %207 = vadd.xlane.f32.xlu2 %v206_v11 }
  0x54   :  { %156 = vadd.xlane.f32.xlu0 %v155_v59 }
  0x5b   :  { %255 = vadd.xlane.f32.xlu1 %v254_v15  ;;  %258 = vadd.xlane.f32.xlu2 %v257_v22 }
  0x5c   :  { %210 = vadd.xlane.f32.xlu0 %v209_v4 }
  0x76   :  { %v184_v33 = vpop.xlane.xlu2 %183  ;;  %v2583_v34 = vpop.xlane.xlu1 %93 }
  0x77   :  { %v317_v35 = vmul.f32 %v2581_v29, %v184_v33  ;;  %v88_v39 = vpop.xlane.xlu0 %87 }
  0x78   :  { %v285_v16 = vmul.f32 %v2581_v29, %v88_v39 }
  0x79   :  { %v2587_v40 = vsub.f32 %v2332_v0, %v317_v35 }
  0x7a   :  { %v2625_v33 = vsub.f32 %v2342_v2, %v285_v16 }
  0x7b   :  { %v445_v41 = vmul.f32 %v2587_v40, %v2587_v40 }
  0x7c   :  { %v413_v2 = vmul.f32 %v2625_v33, %v2625_v33 }
  0x7d   :  { %v573_v45 = vsel %vm85_vm0, %v445_v41, 0.0 }
  0x7e   :  { %v187_v46 = vpop.xlane.xlu2 %186  ;;  %v97_v47 = vpop.xlane.xlu1 %96  ;;  %574 = vadd.xlane.f32.xlu0 %v573_v45 }
  0x7f   :  { %v318_v51 = vmul.f32 %v2581_v29, %v187_v46  ;;  %v91_v52 = vpop.xlane.xlu0 %90 }
  0x80   :  { %v286_v11 = vmul.f32 %v2581_v29, %v91_v52 }
  0x81   :  { %v2594_v53 = vsub.f32 %v2353_v6, %v318_v51 }
  0x83   :  { %v446_v56 = vmul.f32 %v2594_v53, %v2594_v53 }
  0x85   :  { %v576_v0 = vsel %vm85_vm0, %v446_v56, 0.0 }
  0x86   :  { %v136_v57 = vpop.xlane.xlu2 %135  ;;  %577 = vadd.xlane.f32.xlu1 %v576_v0  ;;  %v235_v59 = vpop.xlane.xlu1 %234 }
  0x87   :  { %v301_v62 = vmul.f32 %v2581_v29, %v136_v57  ;;  %v334_v63 = vmul.f32 %v2581_v29, %v235_v59  ;;  %v232_v4 = vpop.xlane.xlu0 %231  ;;  %v477_v59 = vsel %vm85_vm0, %v413_v2, 0.0 }
  0x88   :  { %v333_v5 = vmul.f32 %v2581_v29, %v232_v4 }
  0x89   :  { %v2604_v6 = vsub.f32 %v2374_v12, %v301_v62  ;;  %v2607_v15 = vsub.f32 %v2379_v13, %v334_v63  ;;  %v2620_v12 = vsub.f32 %v2363_v8, %v286_v11  ;;  %v288_v11 = vmul.f32 %v2581_v29, %v97_v47 }
  0x8a   :  { %v2611_v17 = vsub.f32 %v2384_v14, %v333_v5 }
  0x8b   :  { %v429_v22 = vmul.f32 %v2604_v6, %v2604_v6  ;;  %v462_v23 = vmul.f32 %v2607_v15, %v2607_v15  ;;  %v414_v46 = vmul.f32 %v2620_v12, %v2620_v12 }
  0x8c   :  { %v461_v27 = vmul.f32 %v2611_v17, %v2611_v17 }
  0x8d   :  { %v525_v13 = vsel %vm85_vm0, %v429_v22, 0.0  ;;  %v624_v28 = vsel %vm85_vm0, %v462_v23, 0.0  ;;  %v480_v57 = vsel %vm85_vm0, %v414_v46, 0.0  ;;  %v287_v22 = vmul.f32 %v2581_v29, %v2583_v34 }
  0x8e   :  { %526 = vadd.xlane.f32.xlu1 %v525_v13  ;;  %v190_v14 = vpop.xlane.xlu1 %189  ;;  %625 = vadd.xlane.f32.xlu0 %v624_v28  ;;  %v621_v35 = vsel %vm85_vm0, %v461_v27, 0.0  ;;  %v193_v52 = vpop.xlane.xlu2 %192 }
  0x8f   :  { %v319_v39 = vmul.f32 %v2581_v29, %v190_v14  ;;  %622 = vadd.xlane.f32.xlu2 %v621_v35  ;;  %v139_v41 = vpop.xlane.xlu0 %138  ;;  %v320_v5 = vmul.f32 %v2581_v29, %v193_v52 }
  0x90   :  { %v302_v45 = vmul.f32 %v2581_v29, %v139_v41 }
  0x91   :  { %v2631_v8 = vsub.f32 %v2395_v18, %v319_v39  ;;  %v2662_v13 = vsub.f32 %v2400_v19, %v320_v5 }
  0x92   :  { %v2640_v56 = vsub.f32 %v2405_v20, %v302_v45 }
  0x93   :  { %v447_v51 = vmul.f32 %v2631_v8, %v2631_v8  ;;  %v448_v41 = vmul.f32 %v2662_v13, %v2662_v13 }
  0x94   :  { %v430_v20 = vmul.f32 %v2640_v56, %v2640_v56 }
  0x95   :  { %v579_v0 = vsel %vm85_vm0, %v447_v51, 0.0  ;;  %v582_v2 = vsel %vm85_vm0, %v448_v41, 0.0 }
  0x96   :  { %580 = vadd.xlane.f32.xlu1 %v579_v0  ;;  %v241_v18 = vpop.xlane.xlu1 %240  ;;  %481 = vadd.xlane.f32.xlu0 %v480_v57  ;;  %v528_v28 = vsel %vm85_vm0, %v430_v20, 0.0  ;;  %v142_v34 = vpop.xlane.xlu2 %141  ;;  %v2695_v57 = vld [vmem:[%s4750_s0 + $0x40] sm:$0xff] }
  0x97   :  { %v336_v62 = vmul.f32 %v2581_v29, %v241_v18  ;;  %478 = vadd.xlane.f32.xlu2 %v477_v59  ;;  %v238_v63 = vpop.xlane.xlu0 %237  ;;  %v303_v39 = vmul.f32 %v2581_v29, %v142_v34 }
  0x98   :  { %v335_v4 = vmul.f32 %v2581_v29, %v238_v63 }
  0x99   :  { %v2652_v16 = vsub.f32 %v2416_v24, %v336_v62  ;;  %v2668_v24 = vsub.f32 %v2358_v7, %v288_v11  ;;  %v2684_v46 = vsub.f32 %v2421_v25, %v303_v39 }
  0x9a   :  { %v2657_v23 = vsub.f32 %v2426_v26, %v335_v4  ;;  %v2672_v26 = vsub.f32 %v2337_v1, %v287_v22  ;;  %v2710_v22 = vld [vmem:[%s4750_s0 + $0xc8] sm:$0xff] }
  0x9b   :  { %v464_v27 = vmul.f32 %v2652_v16, %v2652_v16  ;;  %v416_v45 = vmul.f32 %v2668_v24, %v2668_v24  ;;  %v431_v25 = vmul.f32 %v2684_v46, %v2684_v46 }
  0x9c   :  { %v463_v47 = vmul.f32 %v2657_v23, %v2657_v23  ;;  %v415_v1 = vmul.f32 %v2672_v26, %v2672_v26 }
  0x9d   :  { %v630_v14 = vsel %vm85_vm0, %v464_v27, 0.0  ;;  %v486_v52 = vsel %vm85_vm0, %v416_v45, 0.0  ;;  %v531_v62 = vsel %vm85_vm0, %v431_v25, 0.0 }
  0x9e   :  { %631 = vadd.xlane.f32.xlu1 %v630_v14  ;;  %v627_v35 = vsel %vm85_vm0, %v463_v47, 0.0  ;;  %v483_v0 = vsel %vm85_vm0, %v415_v1, 0.0  ;;  %v196_v59 = vpop.xlane.xlu1 %195  ;;  %v199_v5 = vpop.xlane.xlu2 %198  ;;  %v2721_v47 = vld [vmem:[%s4750_s0 + $0xc0] sm:$0xff]  ;;  %v161_v14 = vsel %vm85_vm0, %v2710_v22, 0.0 }
  0x9f   :  { %529 = vadd.xlane.f32.xlu2 %v528_v28  ;;  %628 = vadd.xlane.f32.xlu0 %v627_v35  ;;  %v145_v19 = vpop.xlane.xlu0 %144  ;;  %v322_v11 = vmul.f32 %v2581_v29, %v199_v5  ;;  %v321_v27 = vmul.f32 %v2581_v29, %v196_v59  ;;  %v2716_v28 = vld [vmem:[%s4750_s0 + $0x48] sm:$0xff]  ;;  %v158_v41 = vsel %vm85_vm0, %v2721_v47, 0.0 }
  0xa0   :  { %v304_v7 = vmul.f32 %v2581_v29, %v145_v19  ;;  %v113_v39 = vsel %vm85_vm0, %v2716_v28, 0.0 }
  0xa1   :  { %v2729_v35 = vsub.f32 %v2437_v30, %v322_v11  ;;  %v2732_v19 = vsub.f32 %v2442_v31, %v321_v27 }
  0xa2   :  { %v2688_v51 = vsub.f32 %v2447_v32, %v304_v7  ;;  %v110_v32 = vsel %vm85_vm0, %v2695_v57, 0.0 }
  0xa3   :  { %v449_v30 = vmul.f32 %v2732_v19, %v2732_v19  ;;  %v450_v31 = vmul.f32 %v2729_v35, %v2729_v35 }
  0xa4   :  { %v432_v18 = vmul.f32 %v2688_v51, %v2688_v51 }
  0xa5   :  { %v588_v25 = vsel %vm85_vm0, %v450_v31, 0.0 }
  0xa6   :  { %487 = vadd.xlane.f32.xlu1 %v486_v52  ;;  %v534_v63 = vsel %vm85_vm0, %v432_v18, 0.0  ;;  %v247_v7 = vpop.xlane.xlu1 %246  ;;  %v100_v1 = vpop.xlane.xlu2 %99 }
  0xa7   :  { %583 = vadd.xlane.f32.xlu2 %v582_v2  ;;  %484 = vadd.xlane.f32.xlu0 %v483_v0  ;;  %v244_v4 = vpop.xlane.xlu0 %243  ;;  %v338_v45 = vmul.f32 %v2581_v29, %v247_v7  ;;  %v585_v0 = vsel %vm85_vm0, %v449_v30, 0.0  ;;  %v289_v18 = vmul.f32 %v2581_v29, %v100_v1  ;;  %v79_v7 = vld [vmem:[%s4750_s0 + $0x1d0] sm:$0xff] }
  0xa8   :  { %v337_v20 = vmul.f32 %v2581_v29, %v244_v4 }
  0xa9   :  { %v2747_v52 = vsub.f32 %v2458_v36, %v338_v45  ;;  %v63_v36 = vld [vmem:[%s4750_s0 + $0x150] sm:$0xff] }
  0xaa   :  { %v2726_v34 = vsub.f32 %v2468_v38, %v337_v20  ;;  %v212_v20 = vsel %vm85_vm0, %v63_v36, 0.0 }
  0xab   :  { %v466_v59 = vmul.f32 %v2747_v52, %v2747_v52 }
  0xac   :  { %v465_v38 = vmul.f32 %v2726_v34, %v2726_v34 }
  0xad   :  { %v636_v5 = vsel %vm85_vm0, %v466_v59, 0.0 }
  0xae   :  { %111 = vadd.xlane.f32.xlu1 %v110_v32  ;;  %v633_v2 = vsel %vm85_vm0, %v465_v38, 0.0  ;;  %v151_v11 = vpop.xlane.xlu2 %150  ;;  %v148_v27 = vpop.xlane.xlu1 %147  ;;  %v80_v38 = vld [vmem:[%s4750_s0 + $0x1d8] sm:$0xff] }
  0xaf   :  { %532 = vadd.xlane.f32.xlu2 %v531_v62  ;;  %535 = vadd.xlane.f32.xlu0 %v534_v63  ;;  %v103_v32 = vpop.xlane.xlu0 %102  ;;  %v64_v62 = vld [vmem:[%s4750_s0 + $0x158] sm:$0xff]  ;;  %v2761_v63 = vsub.f32 %v2463_v37, %v289_v18  ;;  %v305_v37 = vmul.f32 %v2581_v29, %v148_v27 }
  0xb0   :  { %v215_v4 = vsel %vm85_vm0, %v64_v62, 0.0  ;;  %v32_v27 = vld [vmem:[%s4750_s0 + $0x58] sm:$0xff] }
  0xb6   :  { %162 = vadd.xlane.f32.xlu1 %v161_v14  ;;  %v306_v14 = vmul.f32 %v2581_v29, %v151_v11  ;;  %v47_v11 = vld [vmem:[%s4750_s0 + $0xd0] sm:$0xff] }
  0xb7   :  { %114 = vadd.xlane.f32.xlu2 %v113_v39  ;;  %159 = vadd.xlane.f32.xlu0 %v158_v41  ;;  %v417_v39 = vmul.f32 %v2761_v63, %v2761_v63  ;;  %v290_v41 = vmul.f32 %v2581_v29, %v103_v32  ;;  %v250_v45 = vpop.xlane.xlu0 %249  ;;  %v202_v32 = vpop.xlane.xlu1 %201 }
  0xb8   :  { %v2778_v30 = vsub.f32 %v2479_v42, %v306_v14  ;;  %v31_v14 = vld [vmem:[%s4750_s0 + $0x50] sm:$0xff] }
  0xb9   :  { %v489_v31 = vsel %vm85_vm0, %v417_v39, 0.0  ;;  %v2782_v1 = vsub.f32 %v2489_v44, %v290_v41  ;;  %v164_v41 = vsel %vm85_vm0, %v47_v11, 0.0 }
  0xba   :  { %4771 = vst [vmem:[#allocation2_spill] sm:$0xff] %v2778_v30  ;;  %v434_v18 = vmul.f32 %v2778_v30, %v2778_v30 }
  0xbb   :  { %4772 = vst [vmem:[#allocation3_spill] sm:$0xff] %v2782_v1  ;;  %v418_v44 = vmul.f32 %v2782_v1, %v2782_v1 }
  0xbd   :  { %v492_v36 = vsel %vm85_vm0, %v418_v44, 0.0 }
  0xbe   :  { %634 = vadd.xlane.f32.xlu1 %v633_v2  ;;  %v2785_v2 = vsub.f32 %v2484_v43, %v305_v37  ;;  %v540_v43 = vsel %vm85_vm0, %v434_v18, 0.0 }
  0xbf   :  { %586 = vadd.xlane.f32.xlu2 %v585_v0  ;;  %589 = vadd.xlane.f32.xlu0 %v588_v25  ;;  %v260_v0 = vsel %vm85_vm0, %v79_v7, 0.0  ;;  %v263_v25 = vsel %vm85_vm0, %v80_v38, 0.0  ;;  %v106_v59 = vpop.xlane.xlu0 %105  ;;  %v253_v37 = vpop.xlane.xlu1 %252  ;;  %v119_v38 = vsel %vm85_vm0, %v32_v27, 0.0 }
  0xc0   :  { %4773 = vst [vmem:[#allocation4_spill] sm:$0xff] %v2785_v2  ;;  %v433_v42 = vmul.f32 %v2785_v2, %v2785_v2 }
  0xc2   :  { %v537_v62 = vsel %vm85_vm0, %v433_v42, 0.0  ;;  %v339_v42 = vmul.f32 %v2581_v29, %v250_v45 }
  0xc6   :  { %216 = vadd.xlane.f32.xlu1 %v215_v4  ;;  %v205_v4 = vpop.xlane.xlu2 %204 }
  0xc7   :  { %637 = vadd.xlane.f32.xlu2 %v636_v5  ;;  %213 = vadd.xlane.f32.xlu0 %v212_v20  ;;  %v324_v5 = vmul.f32 %v2581_v29, %v205_v4  ;;  %v323_v20 = vmul.f32 %v2581_v29, %v202_v32  ;;  %v109_v4 = vpop.xlane.xlu1 %108 }
  0xc9   :  { %v2810_v39 = vsub.f32 %v2505_v49, %v324_v5  ;;  %v2814_v7 = vsub.f32 %v2500_v48, %v323_v20  ;;  %v340_v49 = vmul.f32 %v2581_v29, %v253_v37  ;;  %v48_v48 = vld [vmem:[%s4750_s0 + $0xd8] sm:$0xff]  ;;  %v2834_v5 = vsub.f32 %v2510_v50, %v339_v42 }
  0xca   :  { %v292_v42 = vmul.f32 %v2581_v29, %v109_v4 }
  0xcb   :  { %4774 = vst [vmem:[#allocation5_spill] sm:$0xff] %v2810_v39  ;;  %v451_v18 = vmul.f32 %v2814_v7, %v2814_v7  ;;  %v2829_v32 = vsub.f32 %v2521_v54, %v340_v49  ;;  %v65_v54 = vld [vmem:[%s4750_s0 + $0x160] sm:$0xff]  ;;  %v467_v11 = vmul.f32 %v2834_v5, %v2834_v5 }
  0xcc   :  { %4775 = vst [vmem:[#allocation6_spill] sm:$0xff] %v2814_v7  ;;  %v218_v27 = vsel %vm85_vm0, %v65_v54, 0.0  ;;  %v81_v49 = vld [vmem:[%s4750_s0 + $0x1e0] sm:$0xff]  ;;  %v2128_v54 = vld [vmem:[%s4753_s3 + $0x8] sm:$0xff]  ;;  %v2876_v4 = vsub.f32 %v2547_v61, %v292_v42 }
  0xcd   :  { %4776 = vst [vmem:[#allocation7_spill] sm:$0xff] %v2829_v32  ;;  %v468_v45 = vmul.f32 %v2829_v32, %v2829_v32  ;;  %2130 = vmatpush.bf16.msra.mxu2 %v2128_v54  ;;  %2131 = vmatpush.bf16.msra.mxu3 %v2128_v54 }
  0xce   :  { %490 = vadd.xlane.f32.xlu1 %v489_v31  ;;  %v116_v31 = vsel %vm85_vm0, %v31_v14, 0.0  ;;  %4777 = vst [vmem:[#allocation8_spill] sm:$0xff] %v2834_v5  ;;  %v639_v14 = vsel %vm85_vm0, %v467_v11, 0.0  ;;  %1791 = vmatpush.bf16.msra.mxu0 %v2128_v54  ;;  %v420_v61 = vmul.f32 %v2876_v4, %v2876_v4 }
  0xcf   :  { %261 = vadd.xlane.f32.xlu2 %v260_v0  ;;  %264 = vadd.xlane.f32.xlu0 %v263_v25  ;;  %v157_v0 = vpop.xlane.xlu0 %156  ;;  %v452_v25 = vmul.f32 %v2810_v39, %v2810_v39  ;;  %v642_v50 = vsel %vm85_vm0, %v468_v45, 0.0  ;;  %v256_v37 = vpop.xlane.xlu1 %255  ;;  %4780 = vst [vmem:[#allocation11_spill] sm:$0xff] %v2876_v4 }
  0xd0   :  { %2129 = vmatpush.bf16.msra.mxu1 %v2128_v54 }
  0xd1   :  { %v594_v44 = vsel %vm85_vm0, %v452_v25, 0.0 }
  0xd6   :  { %541 = vadd.xlane.f32.xlu1 %v540_v43  ;;  %v591_v43 = vsel %vm85_vm0, %v451_v18, 0.0  ;;  %v66_v18 = vld [vmem:[%s4750_s0 + $0x168] sm:$0xff] }
  0xd7   :  { %538 = vadd.xlane.f32.xlu0 %v537_v62  ;;  %493 = vadd.xlane.f32.xlu2 %v492_v36  ;;  %v167_v62 = vsel %vm85_vm0, %v48_v48, 0.0  ;;  %v154_v36 = vpop.xlane.xlu2 %153  ;;  %v2836_v20 = vpop.xlane.xlu0 %210  ;;  %v291_v48 = vmul.f32 %v2581_v29, %v106_v59  ;;  %v221_v45 = vsel %vm85_vm0, %v66_v18, 0.0 }
  0xd9   :  { %v2873_v59 = vsub.f32 %v2526_v55, %v291_v48  ;;  %v308_v55 = vmul.f32 %v2581_v29, %v157_v0  ;;  %v341_v0 = vmul.f32 %v2581_v29, %v256_v37 }
  0xdb   :  { %4779 = vst [vmem:[#allocation10_spill] sm:$0xff] %v2873_v59  ;;  %v2915_v54 = vsub.f32 %v2568_v10, %v341_v0 }
  0xdd   :  { %4783 = vst [vmem:[#allocation14_spill] sm:$0xff] %v2915_v54 }
  0xde   :  { %165 = vadd.xlane.f32.xlu1 %v164_v41 }
  0xdf   :  { %120 = vadd.xlane.f32.xlu0 %v119_v38  ;;  %117 = vadd.xlane.f32.xlu2 %v116_v31  ;;  %v208_v41 = vpop.xlane.xlu2 %207  ;;  %v82_v38 = vld [vmem:[%s4750_s0 + $0x1e8] sm:$0xff]  ;;  %v307_v31 = vmul.f32 %v2581_v29, %v154_v36  ;;  %v266_v36 = vsel %vm85_vm0, %v81_v49, 0.0 }
  0xe1   :  { %v2870_v11 = vsub.f32 %v2542_v60, %v307_v31  ;;  %v325_v31 = vmul.f32 %v2581_v29, %v208_v41  ;;  %v498_v41 = vsel %vm85_vm0, %v420_v61, 0.0 }
  0xe3   :  { %4778 = vst [vmem:[#allocation9_spill] sm:$0xff] %v2870_v11  ;;  %v435_v60 = vmul.f32 %v2870_v11, %v2870_v11  ;;  %v2906_v37 = vsub.f32 %v2563_v9, %v325_v31  ;;  %v33_v9 = vld [vmem:[%s4750_s0 + $0x60] sm:$0xff] }
  0xe5   :  { %v543_v42 = vsel %vm85_vm0, %v435_v60, 0.0  ;;  %4782 = vst [vmem:[#allocation13_spill] sm:$0xff] %v2906_v37 }
  0xe6   :  { %595 = vadd.xlane.f32.xlu1 %v594_v44 }
  0xe7   :  { %592 = vadd.xlane.f32.xlu0 %v591_v43  ;;  %168 = vadd.xlane.f32.xlu2 %v167_v62  ;;  %v269_v43 = vsel %vm85_vm0, %v82_v38, 0.0  ;;  %v419_v38 = vmul.f32 %v2873_v59, %v2873_v59 }
  0xee   :  { %219 = vadd.xlane.f32.xlu1 %v218_v27  ;;  %v259_v27 = vpop.xlane.xlu2 %258 }
  0xef   :  { %643 = vadd.xlane.f32.xlu0 %v642_v50  ;;  %640 = vadd.xlane.f32.xlu2 %v639_v14 }
  0xf1   :  { %v575_v25 = vpop.xlane.xlu0 %574 }
  0xf2   :  { %v701_v44 = vmul.f32 %v575_v25, %v2581_v29  ;;  %v2127_v25 = vld [vmem:[%s4753_s3] sm:$0xff] }
  0xf3   :  { %2133 = vmatpush.bf16.msra.mxu2 %v2127_v25  ;;  %2134 = vmatpush.bf16.msra.mxu3 %v2127_v25 }
  0xf4   :  { %v2862_v62 = vadd.f32 1e-05, %v701_v44  ;;  %v2900_v44 = vsub.f32 %v2535_v58, %v308_v55  ;;  %1792 = vmatpush.bf16.msra.mxu0 %v2127_v25  ;;  %v34_v58 = vld [vmem:[%s4750_s0 + $0x68] sm:$0xff]  ;;  %2132 = vmatpush.bf16.msra.mxu1 %v2127_v25 }
  0xf5   :  { %v125_v0 = vsel %vm85_vm0, %v34_v58, 0.0 }
  0xf6   :  { %2141 = vrsqrt.f32 %v2862_v62  ;;  %270 = vadd.xlane.f32.xlu1 %v269_v43  ;;  %4781 = vst [vmem:[#allocation12_spill] sm:$0xff] %v2900_v44  ;;  %v495_v43 = vsel %vm85_vm0, %v419_v38, 0.0  ;;  %vm1123_vm2 = vweird.f32 %v2862_v62 }
  0xf7   :  { %267 = vadd.xlane.f32.xlu0 %v266_v36  ;;  %222 = vadd.xlane.f32.xlu2 %v221_v45  ;;  %v326_v45 = vmul.f32 %v2581_v29, %v2836_v20  ;;  %v436_v20 = vmul.f32 %v2900_v44, %v2900_v44 }
  0xf9   :  { %v578_v50 = vpop.xlane.xlu1 %577  ;;  %v2941_v58 = vsub.f32 %v2556_v3, %v326_v45 }
  0xfa   :  { %v702_v14 = vmul.f32 %v578_v50, %v2581_v29 }
  0xfb   :  { %4784 = vst [vmem:[#allocation15_spill] sm:$0xff] %v2941_v58 }
  0xfc   :  { %v2891_v49 = vpop.eup %2141  ;;  %v2893_v18 = vadd.f32 1e-05, %v702_v14  ;;  %v342_v14 = vmul.f32 %v2581_v29, %v259_v27 }
  0xfd   :  { %v1118_v48 = vmul.f32 %v2891_v49, %v2862_v62  ;;  %vm1124_vm3 = vweird.f32 %v2891_v49  ;;  %v49_v62 = vld [vmem:[%s4750_s0 + $0xe0] sm:$0xff] }
  0xfe   :  { %2143 = vrsqrt.f32 %v2893_v18  ;;  %544 = vadd.xlane.f32.xlu1 %v543_v42  ;;  %vm2951_vm4 = vmor %vm1123_vm2, %vm1124_vm3  ;;  %vm1133_vm5 = vweird.f32 %v2893_v18 }
  0xff   :  { %v1119_v36 = vmul.f32 %v2891_v49, %v1118_v48  ;;  %499 = vadd.xlane.f32.xlu0 %v498_v41  ;;  %496 = vadd.xlane.f32.xlu2 %v495_v43  ;;  %v453_v48 = vmul.f32 %v2906_v37, %v2906_v37  ;;  %v122_v43 = vsel %vm85_vm0, %v33_v9, 0.0 }
 0x101   :  { %v1120_v50 = vmul.f32 0.5, %v1119_v36  ;;  %v527_v60 = vpop.xlane.xlu1 %526  ;;  %v626_v55 = vpop.xlane.xlu0 %625 }
 0x102   :  { %v685_v61 = vmul.f32 %v527_v60, %v2581_v29  ;;  %v623_v38 = vpop.xlane.xlu2 %622  ;;  %v718_v31 = vmul.f32 %v626_v55, %v2581_v29  ;;  %v2944_v55 = vsub.f32 %v2577_v21, %v342_v14 }
 0x103   :  { %v1121_v25 = vsub.f32 1.5, %v1120_v50  ;;  %v717_v10 = vmul.f32 %v623_v38, %v2581_v29 }
 0x104   :  { %v2144_v42 = vpop.eup %2143  ;;  %v2930_v27 = vadd.f32 1e-05, %v685_v61  ;;  %v2932_v41 = vadd.f32 1e-05, %v718_v31  ;;  %4785 = vst [vmem:[#allocation16_spill] sm:$0xff] %v2944_v55  ;;  %v546_v61 = vsel %vm85_vm0, %v436_v20, 0.0 }
 0x105   :  { %v1122_v36 = vmul.f32 %v2891_v49, %v1121_v25  ;;  %v1128_v50 = vmul.f32 %v2144_v42, %v2893_v18  ;;  %v2938_v60 = vadd.f32 1e-05, %v717_v10  ;;  %v50_v31 = vld [vmem:[%s4750_s0 + $0xe8] sm:$0xff]  ;;  %v597_v20 = vsel %vm85_vm0, %v453_v48, 0.0 }
 0x106   :  { %2145 = vrsqrt.f32 %v2930_v27  ;;  %126 = vadd.xlane.f32.xlu1 %v125_v0  ;;  %v469_v25 = vmul.f32 %v2915_v54, %v2915_v54  ;;  %vm1134_vm6 = vweird.f32 %v2144_v42  ;;  %vm1293_vm8 = vweird.f32 %v2932_v41 }
 0x107   :  { %v1129_v9 = vmul.f32 %v2144_v42, %v1128_v50  ;;  %2147 = vrsqrt.f32 %v2938_v60  ;;  %123 = vadd.xlane.f32.xlu0 %v122_v43  ;;  %547 = vadd.xlane.f32.xlu2 %v546_v61  ;;  %v1126_v3 = vsel %vm2951_vm4, %v2891_v49, %v1122_v36  ;;  %v470_v43 = vmul.f32 %v2944_v55, %v2944_v55  ;;  %vm1135_vm7 = vmor %vm1133_vm5, %vm1134_vm6 }
 0x108   :  { %2149 = vrsqrt.f32 %v2932_v41  ;;  %v454_v36 = vmul.f32 %v2941_v58, %v2941_v58  ;;  %vm963_vm9 = vweird.f32 %v2930_v27  ;;  %vm1283_vm10 = vweird.f32 %v2938_v60 }
 0x109   :  { %v1130_v21 = vmul.f32 0.5, %v1129_v9  ;;  %v581_v45 = vpop.xlane.xlu1 %580  ;;  %v482_v14 = vpop.xlane.xlu0 %481  ;;  %v1469_v9 = vmul.f32 %v1126_v3, %v2587_v40  ;;  %v2994_v40 = vld [vmem:[%s4751_s1] ss:$0 sm:$0xff] }
 0x10a   :  { %v703_v10 = vmul.f32 %v581_v45, %v2581_v29  ;;  %v479_v0 = vpop.xlane.xlu2 %478  ;;  %v670_v49 = vmul.f32 %v482_v14, %v2581_v29  ;;  %v173_v45 = vsel %vm85_vm0, %v50_v31, 0.0  ;;  %v170_v14 = vsel %vm85_vm0, %v49_v62, 0.0 }
 0x10b   :  { %v1131_v50 = vsub.f32 1.5, %v1130_v21  ;;  %v669_v48 = vmul.f32 %v479_v0, %v2581_v29  ;;  %v645_v62 = vsel %vm85_vm0, %v469_v25, 0.0 }
 0x10c   :  { %v2976_v61 = vpop.eup %2145  ;;  %v2979_v38 = vadd.f32 1e-05, %v703_v10  ;;  %v2989_v37 = vadd.f32 1e-05, %v670_v49 }
 0x10d   :  { %v2983_v54 = vpop.eup %2147  ;;  %v1132_v55 = vmul.f32 %v2144_v42, %v1131_v50  ;;  %v958_v21 = vmul.f32 %v2976_v61, %v2930_v27  ;;  %v2987_v58 = vadd.f32 1e-05, %v669_v48  ;;  %v648_v50 = vsel %vm85_vm0, %v470_v43, 0.0 }
 0x10e   :  { %v2996_v3 = vpop.eup %2149  ;;  %v1278_v31 = vmul.f32 %v2983_v54, %v2938_v60  ;;  %2151 = vrsqrt.f32 %v2979_v38  ;;  %598 = vadd.xlane.f32.xlu1 %v597_v20  ;;  %v600_v20 = vsel %vm85_vm0, %v454_v36, 0.0  ;;  %v1537_v43 = vmul.f32 %v2994_v40, %v1469_v9  ;;  %v3025_v36 = vld [vmem:[%s4752_s2] ss:$0 sm:$0xff] }
 0x10f   :  { %v1136_v10 = vsel %vm1135_vm7, %v2144_v42, %v1132_v55  ;;  %v959_v0 = vmul.f32 %v2976_v61, %v958_v21  ;;  %v1288_v49 = vmul.f32 %v2996_v3, %v2932_v41  ;;  %174 = vadd.xlane.f32.xlu0 %v173_v45  ;;  %171 = vadd.xlane.f32.xlu2 %v170_v14  ;;  %2153 = vrsqrt.f32 %v2987_v58  ;;  %v68_v42 = vld [vmem:[%s4750_s0 + $0x178] sm:$0xff]  ;;  %v83_v55 = vld [vmem:[%s4750_s0 + $0x1f0] sm:$0xff] }
 0x110   :  { %v1470_v18 = vmul.f32 %v1136_v10, %v2594_v53  ;;  %v1279_v48 = vmul.f32 %v2983_v54, %v1278_v31  ;;  %2155 = vrsqrt.f32 %v2989_v37  ;;  %v67_v45 = vld [vmem:[%s4750_s0 + $0x170] sm:$0xff]  ;;  %v3035_v11 = vsel %vm85_vm0, %v68_v42, 0.0 }
 0x111   :  { %v1289_v25 = vmul.f32 %v2996_v3, %v1288_v49  ;;  %v632_v53 = vpop.xlane.xlu1 %631  ;;  %v960_v14 = vmul.f32 0.5, %v959_v0  ;;  %v272_v4 = vsel %vm85_vm0, %v83_v55, 0.0  ;;  %v3044_v5 = vsel %vm85_vm0, %v67_v45, 0.0 }
 0x112   :  { %v1280_v21 = vmul.f32 0.5, %v1279_v48  ;;  %v720_v31 = vmul.f32 %v632_v53, %v2581_v29  ;;  %v530_v10 = vpop.xlane.xlu2 %529  ;;  %v629_v49 = vpop.xlane.xlu0 %628  ;;  %v1538_v48 = vmul.f32 %v2994_v40, %v1470_v18  ;;  %vm964_vm11 = vweird.f32 %v2976_v61  ;;  %v84_v18 = vld [vmem:[%s4750_s0 + $0x1f8] sm:$0xff] }
 0x113   :  { %v1290_v9 = vmul.f32 0.5, %v1289_v25  ;;  %v686_v44 = vmul.f32 %v530_v10, %v2581_v29  ;;  %v1605_v42 = vadd.f32 %v3025_v36, %v1537_v43  ;;  %v961_v55 = vsub.f32 1.5, %v960_v14  ;;  %vm3111_vm5 = vmor %vm963_vm9, %vm964_vm11 }
 0x114   :  { %v3038_v59 = vpop.eup %2151  ;;  %v1281_v0 = vsub.f32 1.5, %v1280_v21  ;;  %v3040_v32 = vadd.f32 1e-05, %v720_v31  ;;  %vm1284_vm12 = vweird.f32 %v2983_v54  ;;  %vm1294_vm13 = vweird.f32 %v2996_v3 }
 0x115   :  { %v1291_v25 = vsub.f32 1.5, %v1290_v9  ;;  %v1138_v53 = vmul.f32 %v3038_v59, %v2979_v38  ;;  %v3050_v10 = vpop.eup %2153  ;;  %v3054_v21 = vadd.f32 1e-05, %v686_v44  ;;  %v719_v9 = vmul.f32 %v629_v49, %v2581_v29  ;;  %vm3081_vm15 = vmor %vm1283_vm10, %vm1284_vm12 }
 0x116   :  { %2157 = vrsqrt.f32 %v3040_v32  ;;  %649 = vadd.xlane.f32.xlu1 %v648_v50  ;;  %v3059_v45 = vpop.eup %2155  ;;  %v1282_v31 = vmul.f32 %v2983_v54, %v1281_v0  ;;  %v798_v14 = vmul.f32 %v3050_v10, %v2987_v58  ;;  %vm1143_vm14 = vweird.f32 %v2979_v38  ;;  %vm3101_vm4 = vmor %vm1293_vm8, %vm1294_vm13 }
 0x117   :  { %v1139_v43 = vmul.f32 %v3038_v59, %v1138_v53  ;;  %646 = vadd.xlane.f32.xlu0 %v645_v62  ;;  %v808_v44 = vmul.f32 %v3059_v45, %v2989_v37  ;;  %601 = vadd.xlane.f32.xlu2 %v600_v20  ;;  %v1606_v50 = vadd.f32 %v3025_v36, %v1538_v48  ;;  %v3074_v2 = vsel %vm85_vm0, %v84_v18, 0.0 }
 0x118   :  { %v1292_v0 = vmul.f32 %v2996_v3, %v1291_v25  ;;  %v799_v53 = vmul.f32 %v3050_v10, %v798_v14  ;;  %v962_v62 = vmul.f32 %v2976_v61, %v961_v55  ;;  %vm1144_vm1 = vweird.f32 %v3038_v59 }
 0x119   :  { %v1140_v7 = vmul.f32 0.5, %v1139_v43  ;;  %v488_v39 = vpop.xlane.xlu1 %487  ;;  %vm803_vm2 = vweird.f32 %v2987_v58  ;;  %v809_v20 = vmul.f32 %v3059_v45, %v808_v44  ;;  %2159 = vrsqrt.f32 %v3054_v21  ;;  %vm3133_vm6 = vmor %vm1143_vm14, %vm1144_vm1 }
 0x11a   :  { %v584_v48 = vpop.xlane.xlu2 %583  ;;  %v485_v25 = vpop.xlane.xlu0 %484  ;;  %v1286_v55 = vsel %vm3081_vm15, %v2983_v54, %v1282_v31  ;;  %v800_v60 = vmul.f32 0.5, %v799_v53  ;;  %vm813_vm3 = vweird.f32 %v2989_v37  ;;  %v3093_v43 = vadd.f32 1e-05, %v719_v9 }
 0x11b   :  { %v1141_v18 = vsub.f32 1.5, %v1140_v7  ;;  %v810_v1 = vmul.f32 0.5, %v809_v20  ;;  %v1653_v30 = vpack.c.bf16 %v1606_v50, %v1605_v42  ;;  %v672_v54 = vmul.f32 %v488_v39, %v2581_v29 }
 0x11c   :  { %v3095_v14 = vpop.eup %2157  ;;  %v704_v7 = vmul.f32 %v584_v48, %v2581_v29  ;;  %v1296_v41 = vsel %vm3101_vm4, %v2996_v3, %v1292_v0  ;;  %v801_v53 = vsub.f32 1.5, %v800_v60  ;;  %v966_v42 = vsel %vm3111_vm5, %v2976_v61, %v962_v62 }
 0x11d   :  { %v1142_v9 = vmul.f32 %v3038_v59, %v1141_v18  ;;  %v1308_v39 = vmul.f32 %v3095_v14, %v3040_v32  ;;  %v811_v50 = vsub.f32 1.5, %v810_v1  ;;  %2161 = vrsqrt.f32 %v3093_v43  ;;  %2111 = vmatmul.msk.bf16.vlgmr.msra.gmra.mxu2 %vm85_vm0, %v1653_v30 }
 0x11e   :  { %v3126_v27 = vadd.f32 1e-05, %v672_v54  ;;  %273 = vadd.xlane.f32.xlu1 %v272_v4  ;;  %v1485_v3 = vmul.f32 %v1286_v55, %v2611_v17  ;;  %vm804_vm7 = vweird.f32 %v3050_v10  ;;  %vm1313_vm8 = vweird.f32 %v3040_v32 }
 0x11f   :  { %v1309_v1 = vmul.f32 %v3095_v14, %v1308_v39  ;;  %v3140_v30 = vadd.f32 1e-05, %v704_v7  ;;  %228 = vadd.xlane.f32.xlu0 %v3035_v11  ;;  %v3143_v4 = vpop.eup %2159  ;;  %v1486_v17 = vmul.f32 %v1296_v41, %v2607_v15  ;;  %v1146_v61 = vsel %vm3133_vm6, %v3038_v59, %v1142_v9  ;;  %225 = vadd.xlane.f32.xlu2 %v3044_v5  ;;  %vm3169_vm12 = vmor %vm803_vm2, %vm804_vm7 }
 0x120   :  { %v802_v38 = vmul.f32 %v3050_v10, %v801_v53  ;;  %2163 = vrsqrt.f32 %v3126_v27  ;;  %v812_v62 = vmul.f32 %v3059_v45, %v811_v50  ;;  %vm814_vm9 = vweird.f32 %v3059_v45 }
 0x121   :  { %v1310_v49 = vmul.f32 0.5, %v1309_v1  ;;  %v968_v11 = vmul.f32 %v3143_v4, %v3054_v21  ;;  %v112_v20 = vpop.xlane.xlu1 %111  ;;  %v3157_v15 = vmul.f32 %v966_v42, %v2604_v6  ;;  %vm1314_vm10 = vweird.f32 %v3095_v14  ;;  %vm3185_vm14 = vmor %vm813_vm3, %vm814_vm9 }
 0x122   :  { %vm973_vm11 = vweird.f32 %v3054_v21  ;;  %2165 = vrsqrt.f32 %v3140_v30  ;;  %v533_v59 = vpop.xlane.xlu2 %532  ;;  %v536_v5 = vpop.xlane.xlu0 %535  ;;  %v3163_v48 = vmul.f32 %v1146_v61, %v2631_v8  ;;  %vm1303_vm13 = vweird.f32 %v3093_v43  ;;  %vm3225_vm3 = vmor %vm1313_vm8, %vm1314_vm10 }
 0x123   :  { %v1311_v6 = vsub.f32 1.5, %v1310_v49  ;;  %v969_v18 = vmul.f32 %v3143_v4, %v968_v11  ;;  %v671_v60 = vmul.f32 %v485_v25, %v2581_v29  ;;  %v3176_v44 = vpop.eup %2161  ;;  %v806_v8 = vsel %vm3169_vm12, %v3050_v10, %v802_v38 }
 0x124   :  { %vm974_vm15 = vweird.f32 %v3143_v4  ;;  %v1553_v54 = vmul.f32 %v2994_v40, %v1485_v3  ;;  %v1554_v25 = vmul.f32 %v2994_v40, %v1486_v17  ;;  %v816_v7 = vsel %vm3185_vm14, %v3059_v45, %v812_v62 }
 0x125   :  { %v970_v31 = vmul.f32 0.5, %v969_v18  ;;  %v1298_v10 = vmul.f32 %v3176_v44, %v3093_v43  ;;  %v293_v37 = vmul.f32 %v2581_v29, %v112_v20  ;;  %v3200_v9 = vadd.f32 1e-05, %v671_v60  ;;  %vm3243_vm5 = vmor %vm973_vm11, %vm974_vm15 }
 0x126   :  { %v3198_v41 = vpop.eup %2163  ;;  %v1621_v53 = vadd.f32 %v3025_v36, %v1553_v54  ;;  %v1622_v39 = vadd.f32 %v3025_v36, %v1554_v25  ;;  %v687_v42 = vmul.f32 %v533_v59, %v2581_v29  ;;  %v1312_v50 = vmul.f32 %v3095_v14, %v1311_v6 }
 0x127   :  { %v971_v3 = vsub.f32 1.5, %v970_v31  ;;  %v1299_v45 = vmul.f32 %v3176_v44, %v1298_v10  ;;  %v828_v0 = vmul.f32 %v3198_v41, %v3126_v27  ;;  %vm833_vm1 = vweird.f32 %v3126_v27  ;;  %276 = vadd.xlane.f32.xlu2 %v3074_v2 }
 0x128   :  { %v3210_v1 = vpop.eup %2165  ;;  %v1437_v17 = vmul.f32 %v806_v8, %v2625_v33  ;;  %v1438_v61 = vmul.f32 %v816_v7, %v2620_v12  ;;  %vm1304_vm2 = vweird.f32 %v3176_v44  ;;  %2167 = vrsqrt.f32 %v3200_v9 }
 0x129   :  { %v972_v38 = vmul.f32 %v3143_v4, %v971_v3  ;;  %v1300_v62 = vmul.f32 0.5, %v1299_v45  ;;  %v829_v49 = vmul.f32 %v3198_v41, %v828_v0  ;;  %v1148_v11 = vmul.f32 %v3210_v1, %v3140_v30  ;;  %v163_v20 = vpop.xlane.xlu1 %162  ;;  %vm1305_vm7 = vmor %vm1303_vm13, %vm1304_vm2 }
 0x12a   :  { %vm1153_vm4 = vweird.f32 %v3140_v30  ;;  %v1661_v33 = vpack.c.bf16 %v1622_v39, %v1621_v53  ;;  %v3231_v2 = vsub.f32 %v2695_v57, %v293_v37  ;;  %v3233_v59 = vadd.f32 1e-05, %v687_v42  ;;  %v115_v6 = vpop.xlane.xlu2 %114  ;;  %v160_v18 = vpop.xlane.xlu0 %159 }
 0x12b   :  { %v688_v55 = vmul.f32 %v536_v5, %v2581_v29  ;;  %v1316_v32 = vsel %vm3225_vm3, %v3095_v14, %v1312_v50  ;;  %v1301_v57 = vsub.f32 1.5, %v1300_v62  ;;  %v830_v8 = vmul.f32 0.5, %v829_v49 }
 0x12c   :  { %v1149_v58 = vmul.f32 %v3210_v1, %v1148_v11  ;;  %v976_v5 = vsel %vm3243_vm5, %v3143_v4, %v972_v38  ;;  %vm834_vm6 = vweird.f32 %v3198_v41  ;;  %2119 = vmatmul.msk.bf16.vlgmr.msra.gmra.mxu3 %vm85_vm0, %v1661_v33  ;;  %2169 = vrsqrt.f32 %v3233_v59 }
 0x12d   :  { %v3254_v14 = vadd.f32 1e-05, %v688_v55  ;;  %v1302_v21 = vmul.f32 %v3176_v44, %v1301_v57  ;;  %v831_v54 = vsub.f32 1.5, %v830_v8  ;;  %v1505_v7 = vmul.f32 %v2994_v40, %v1437_v17  ;;  %vm3278_vm9 = vmor %vm833_vm1, %vm834_vm6 }
 0x12e   :  { %v1150_v25 = vmul.f32 0.5, %v1149_v58  ;;  %v3258_v31 = vpop.eup %2167  ;;  %v1488_v10 = vmul.f32 %v1316_v32, %v2652_v16  ;;  %v1506_v4 = vmul.f32 %v2994_v40, %v1438_v61  ;;  %v310_v37 = vmul.f32 %v2581_v29, %v163_v20 }
 0x12f   :  { %2171 = vrsqrt.f32 %v3254_v14  ;;  %v1306_v53 = vsel %vm1305_vm7, %v3176_v44, %v1302_v21  ;;  %v832_v39 = vmul.f32 %v3198_v41, %v831_v54  ;;  %v818_v50 = vmul.f32 %v3258_v31, %v3200_v9 }
 0x130   :  { %v1151_v42 = vsub.f32 1.5, %v1150_v25  ;;  %vm823_vm8 = vweird.f32 %v3200_v9  ;;  %v1454_v16 = vmul.f32 %v976_v5, %v2640_v56  ;;  %vm1154_vm10 = vweird.f32 %v3210_v1 }
 0x131   :  { %v1573_v44 = vadd.f32 %v3025_v36, %v1505_v7  ;;  %v1574_v3 = vadd.f32 %v3025_v36, %v1506_v4  ;;  %v1487_v45 = vmul.f32 %v1306_v53, %v2657_v23  ;;  %v836_v56 = vsel %vm3278_vm9, %v3198_v41, %v832_v39  ;;  %v635_v17 = vpop.xlane.xlu1 %634  ;;  %vm3304_vm12 = vmor %vm1153_vm4, %vm1154_vm10 }
 0x132   :  { %v1152_v0 = vmul.f32 %v3210_v1, %v1151_v42  ;;  %v819_v27 = vmul.f32 %v3258_v31, %v818_v50  ;;  %v3291_v61 = vpop.eup %2169  ;;  %vm824_vm11 = vweird.f32 %v3258_v31  ;;  %v294_v62 = vmul.f32 %v2581_v29, %v115_v6  ;;  %v587_v23 = vpop.xlane.xlu2 %586 }
 0x133   :  { %v1637_v38 = vpack.c.bf16 %v1574_v3, %v1573_v44  ;;  %v421_v49 = vmul.f32 %v3231_v2, %v3231_v2  ;;  %v590_v11 = vpop.xlane.xlu0 %589  ;;  %v3298_v20 = vmul.f32 %v836_v56, %v2668_v24  ;;  %v978_v33 = vmul.f32 %v3291_v61, %v3233_v59  ;;  %vm825_vm1 = vmor %vm823_vm8, %vm824_vm11 }
 0x134   :  { %v820_v12 = vmul.f32 0.5, %v819_v27  ;;  %v3311_v55 = vsub.f32 %v2710_v22, %v310_v37  ;;  %v1156_v24 = vsel %vm3304_vm12, %v3210_v1, %v1152_v0  ;;  %vm984_vm13 = vweird.f32 %v3291_v61 }
 0x135   :  { %v3313_v6 = vpop.eup %2171  ;;  %2095 = vmatmul.msk.bf16.vlgmr.msra.gmra.mxu0 %vm85_vm0, %v1637_v38  ;;  %v501_v30 = vsel %vm85_vm0, %v421_v49, 0.0  ;;  %v309_v32 = vmul.f32 %v2581_v29, %v160_v18  ;;  %v979_v57 = vmul.f32 %v3291_v61, %v978_v33  ;;  %vm983_vm14 = vweird.f32 %v3233_v59 }
 0x136   :  { %v821_v60 = vsub.f32 1.5, %v820_v12  ;;  %v988_v22 = vmul.f32 %v3313_v6, %v3254_v14  ;;  %vm993_vm15 = vweird.f32 %v3254_v14  ;;  %v3328_v1 = vsub.f32 %v2716_v28, %v294_v62  ;;  %502 = vadd.xlane.f32.xlu0 %v501_v30  ;;  %vm3373_vm3 = vmor %vm983_vm14, %vm984_vm13 }
 0x137   :  { %v3331_v8 = vsub.f32 %v2721_v47, %v309_v32  ;;  %v1521_v18 = vmul.f32 %v2994_v40, %v3157_v15  ;;  %v1522_v58 = vmul.f32 %v2994_v40, %v1454_v16  ;;  %v1555_v5 = vmul.f32 %v2994_v40, %v1487_v45  ;;  %v51_v32 = vld [vmem:[%s4750_s0 + $0xf0] sm:$0xff] }
 0x138   :  { %v822_v21 = vmul.f32 %v3258_v31, %v821_v60  ;;  %v980_v54 = vmul.f32 0.5, %v979_v57  ;;  %v989_v25 = vmul.f32 %v3313_v6, %v988_v22  ;;  %v1556_v7 = vmul.f32 %v2994_v40, %v1488_v10  ;;  %v35_v57 = vld [vmem:[%s4750_s0 + $0x70] sm:$0xff] }
 0x139   :  { %v1589_v28 = vadd.f32 %v3025_v36, %v1521_v18  ;;  %v1590_v47 = vadd.f32 %v3025_v36, %v1522_v58  ;;  %v1623_v15 = vadd.f32 %v3025_v36, %v1555_v5  ;;  %v705_v4 = vmul.f32 %v587_v23, %v2581_v29  ;;  %v217_v10 = vpop.xlane.xlu1 %216 }
 0x13a   :  { %v826_v37 = vsel %vm825_vm1, %v3258_v31, %v822_v21  ;;  %v981_v53 = vsub.f32 1.5, %v980_v54  ;;  %v990_v39 = vmul.f32 0.5, %v989_v25  ;;  %v1624_v42 = vadd.f32 %v3025_v36, %v1556_v7  ;;  %v638_v44 = vpop.xlane.xlu2 %637  ;;  %v36_v21 = vld [vmem:[%s4750_s0 + $0x78] sm:$0xff] }
 0x13b   :  { %v1439_v50 = vmul.f32 %v826_v37, %v2672_v26  ;;  %v1645_v16 = vpack.c.bf16 %v1590_v47, %v1589_v28  ;;  %v3351_v9 = vadd.f32 1e-05, %v705_v4  ;;  %v438_v43 = vmul.f32 %v3311_v55, %v3311_v55  ;;  %v214_v3 = vpop.xlane.xlu0 %213 }
 0x13c   :  { %v982_v45 = vmul.f32 %v3291_v61, %v981_v53  ;;  %v991_v56 = vsub.f32 1.5, %v990_v39  ;;  %v1662_v0 = vpack.c.bf16 %v1624_v42, %v1623_v15  ;;  %v422_v31 = vmul.f32 %v3328_v1, %v3328_v1 }
 0x13d   :  { %v1472_v27 = vmul.f32 %v1156_v24, %v2662_v13  ;;  %2103 = vmatmul.msk.bf16.vlgmr.msra.gmra.mxu1 %vm85_vm0, %v1645_v16  ;;  %2173 = vrsqrt.f32 %v3351_v9  ;;  %v552_v26 = vsel %vm85_vm0, %v438_v43, 0.0  ;;  %v721_v38 = vmul.f32 %v635_v17, %v2581_v29 }
 0x13e   :  { %v992_v62 = vmul.f32 %v3313_v6, %v991_v56  ;;  %vm994_vm2 = vweird.f32 %v3313_v6  ;;  %2120 = vmatmul.msk.bf16.gmra.mxu3 %vm85_vm0, %v1662_v0  ;;  %553 = vadd.xlane.f32.xlu0 %v552_v26  ;;  %v504_v49 = vsel %vm85_vm0, %v422_v31, 0.0  ;;  %v437_v13 = vmul.f32 %v3331_v8, %v3331_v8  ;;  %v2270_v0 = vld [vmem:[%s4750_s0 + $0x150] sm:$0xff] }
 0x13f   :  { %505 = vadd.xlane.f32.xlu1 %v504_v49  ;;  %v3377_v17 = vadd.f32 1e-05, %v721_v38  ;;  %v706_v41 = vmul.f32 %v590_v11, %v2581_v29  ;;  %v1507_v12 = vmul.f32 %v2994_v40, %v1439_v50  ;;  %v986_v33 = vsel %vm3373_vm3, %v3291_v61, %v982_v45  ;;  %vm3396_vm4 = vmor %vm993_vm15, %vm994_vm2  ;;  %v52_v45 = vld [vmem:[%s4750_s0 + $0xf8] sm:$0xff] }
 0x140   :  { %v549_v24 = vsel %vm85_vm0, %v437_v13, 0.0  ;;  %v1508_v59 = vmul.f32 %v2994_v40, %v3298_v20  ;;  %v1539_v30 = vmul.f32 %v2994_v40, %v3163_v48  ;;  %v996_v48 = vsel %vm3396_vm4, %v3313_v6, %v992_v62 }
 0x141   :  { %2175 = vrsqrt.f32 %v3377_v17  ;;  %550 = vadd.xlane.f32.xlu2 %v549_v24  ;;  %v3401_v61 = vadd.f32 1e-05, %v706_v41  ;;  %vm1163_vm5 = vweird.f32 %v3351_v9  ;;  %v1575_v20 = vadd.f32 %v3025_v36, %v1507_v12  ;;  %v491_v22 = vpop.xlane.xlu1 %490 }
 0x142   :  { %v1576_v60 = vadd.f32 %v3025_v36, %v1508_v59  ;;  %v1540_v14 = vmul.f32 %v2994_v40, %v1472_v27  ;;  %v1455_v58 = vmul.f32 %v986_v33, %v2684_v46  ;;  %v722_v6 = vmul.f32 %v638_v44, %v2581_v29  ;;  %v262_v54 = vpop.xlane.xlu2 %261  ;;  %v2271_v59 = vld [vmem:[%s4750_s0 + $0x1d0] sm:$0xff] }
 0x143   :  { %v3413_v18 = vpop.eup %2173  ;;  %2177 = vrsqrt.f32 %v3401_v61  ;;  %v176_v5 = vsel %vm85_vm0, %v51_v32, 0.0  ;;  %v265_v25 = vpop.xlane.xlu0 %264  ;;  %v1607_v47 = vadd.f32 %v3025_v36, %v1539_v30  ;;  %v1456_v15 = vmul.f32 %v996_v48, %v2688_v51  ;;  %v2269_v51 = vld [vmem:[%s4750_s0 + $0x158] sm:$0xff] }
 0x144   :  { %v1158_v7 = vmul.f32 %v3413_v18, %v3351_v9  ;;  %v1638_v28 = vpack.c.bf16 %v1576_v60, %v1575_v20  ;;  %v1608_v46 = vadd.f32 %v3025_v36, %v1540_v14  ;;  %v3427_v4 = vadd.f32 1e-05, %v722_v6 }
 0x145   :  { %v128_v37 = vsel %vm85_vm0, %v35_v57, 0.0  ;;  %v328_v53 = vmul.f32 %v2581_v29, %v217_v10  ;;  %v131_v50 = vsel %vm85_vm0, %v36_v21, 0.0  ;;  %v327_v16 = vmul.f32 %v2581_v29, %v214_v3 }
 0x146   :  { %v1159_v39 = vmul.f32 %v3413_v18, %v1158_v7  ;;  %2096 = vmatmul.msk.bf16.gmra.mxu0 %vm85_vm0, %v1638_v28  ;;  %v1654_v42 = vpack.c.bf16 %v1608_v46, %v1607_v47  ;;  %177 = vadd.xlane.f32.xlu0 %v176_v5  ;;  %vm1323_vm6 = vweird.f32 %v3377_v17  ;;  %2179 = vrsqrt.f32 %v3427_v4 }
 0x147   :  { %v3435_v43 = vpop.eup %2175  ;;  %129 = vadd.xlane.f32.xlu1 %v128_v37  ;;  %v3442_v10 = vsub.f32 %v2269_v51, %v328_v53  ;;  %v1523_v44 = vmul.f32 %v2994_v40, %v1455_v58  ;;  %vm1164_vm7 = vweird.f32 %v3413_v18  ;;  %vm1173_vm8 = vweird.f32 %v3401_v61 }
 0x148   :  { %v1160_v3 = vmul.f32 0.5, %v1159_v39  ;;  %v1318_v56 = vmul.f32 %v3435_v43, %v3377_v17  ;;  %2112 = vmatmul.msk.bf16.gmra.mxu2 %vm85_vm0, %v1654_v42  ;;  %v3456_v31 = vsub.f32 %v2270_v0, %v327_v16  ;;  %v1524_v26 = vmul.f32 %v2994_v40, %v1456_v15  ;;  %vm1165_vm10 = vmor %vm1163_vm5, %vm1164_vm7 }
 0x149   :  { %v3458_v27 = vpop.eup %2177  ;;  %132 = vadd.xlane.f32.xlu2 %v131_v50  ;;  %v1591_v38 = vadd.f32 %v3025_v36, %v1523_v44  ;;  %v343_v62 = vmul.f32 %v2581_v29, %v262_v54  ;;  %v456_v49 = vmul.f32 %v3442_v10, %v3442_v10  ;;  %v179_v12 = vsel %vm85_vm0, %v52_v45, 0.0  ;;  %v542_v33 = vpop.xlane.xlu1 %541 }
 0x14a   :  { %v1161_v13 = vsub.f32 1.5, %v1160_v3  ;;  %v1319_v23 = vmul.f32 %v3435_v43, %v1318_v56  ;;  %v1168_v41 = vmul.f32 %v3458_v27, %v3401_v61  ;;  %v1592_v24 = vadd.f32 %v3025_v36, %v1524_v26  ;;  %v494_v48 = vpop.xlane.xlu2 %493 }
 0x14b   :  { %v3473_v30 = vsub.f32 %v2271_v59, %v343_v62  ;;  %v606_v32 = vsel %vm85_vm0, %v456_v49, 0.0  ;;  %v673_v11 = vmul.f32 %v491_v22, %v2581_v29  ;;  %v539_v20 = vpop.xlane.xlu0 %538  ;;  %vm1333_vm9 = vweird.f32 %v3427_v4 }
 0x14c   :  { %v1162_v60 = vmul.f32 %v3413_v18, %v1161_v13  ;;  %v1320_v14 = vmul.f32 0.5, %v1319_v23  ;;  %v1169_v57 = vmul.f32 %v3458_v27, %v1168_v41  ;;  %v455_v58 = vmul.f32 %v3456_v31, %v3456_v31  ;;  %v2180_v6 = vpop.eup %2179 }
 0x14d   :  { %v1646_v5 = vpack.c.bf16 %v1592_v24, %v1591_v38  ;;  %v3486_v22 = vadd.f32 1e-05, %v673_v11  ;;  %v344_v21 = vmul.f32 %v2581_v29, %v265_v25  ;;  %v471_v54 = vmul.f32 %v3473_v30, %v3473_v30 }
 0x14e   :  { %v1166_v7 = vsel %vm1165_vm10, %v3413_v18, %v1162_v60  ;;  %v1321_v28 = vsub.f32 1.5, %v1320_v14  ;;  %v1170_v47 = vmul.f32 0.5, %v1169_v57  ;;  %v1328_v46 = vmul.f32 %v2180_v6, %v3427_v4  ;;  %607 = vadd.xlane.f32.xlu0 %v606_v32 }
 0x14f   :  { %v1473_v15 = vmul.f32 %v1166_v7, %v2732_v19  ;;  %vm1324_vm11 = vweird.f32 %v3435_v43  ;;  %vm1174_vm12 = vweird.f32 %v3458_v27  ;;  %2104 = vmatmul.msk.bf16.gmra.mxu1 %vm85_vm0, %v1646_v5  ;;  %180 = vadd.xlane.f32.xlu1 %v179_v12  ;;  %2181 = vrsqrt.f32 %v3486_v22  ;;  %v2272_v19 = vld [vmem:[%s4750_s0 + $0x1d8] sm:$0xff]  ;;  %v2273_v5 = vld [vmem:[%s4750_s0 + $0xd0] sm:$0xff] }
 0x150   :  { %v1322_v9 = vmul.f32 %v3435_v43, %v1321_v28  ;;  %v1171_v25 = vsub.f32 1.5, %v1170_v47  ;;  %v1329_v18 = vmul.f32 %v2180_v6, %v1328_v46  ;;  %v603_v37 = vsel %vm85_vm0, %v455_v58, 0.0  ;;  %vm3511_vm14 = vmor %vm1323_vm6, %vm1324_vm11 }
 0x151   :  { %vm1334_vm13 = vweird.f32 %v2180_v6  ;;  %604 = vadd.xlane.f32.xlu2 %v603_v37  ;;  %v3503_v53 = vsub.f32 %v2272_v19, %v344_v21  ;;  %v690_v39 = vmul.f32 %v542_v33, %v2581_v29  ;;  %v674_v42 = vmul.f32 %v494_v48, %v2581_v29  ;;  %v166_v3 = vpop.xlane.xlu1 %165  ;;  %vm1175_vm15 = vmor %vm1173_vm8, %vm1174_vm12 }
 0x152   :  { %v1172_v16 = vmul.f32 %v3458_v27, %v1171_v25  ;;  %v1330_v51 = vmul.f32 0.5, %v1329_v18  ;;  %v651_v44 = vsel %vm85_vm0, %v471_v54, 0.0  ;;  %v689_v45 = vmul.f32 %v539_v20, %v2581_v29  ;;  %v118_v38 = vpop.xlane.xlu2 %117  ;;  %vm1335_vm1 = vmor %vm1333_vm9, %vm1334_vm13  ;;  %v2274_v54 = vld [vmem:[%s4750_s0 + $0x50] sm:$0xff]  ;;  %v2275_v18 = vld [vmem:[%s4750_s0 + $0x58] sm:$0xff] }
 0x153   :  { %v1326_v56 = vsel %vm3511_vm14, %v3435_v43, %v1322_v9  ;;  %v3525_v17 = vadd.f32 1e-05, %v690_v39  ;;  %v3527_v0 = vadd.f32 1e-05, %v674_v42  ;;  %v472_v26 = vmul.f32 %v3503_v53, %v3503_v53  ;;  %v121_v62 = vpop.xlane.xlu0 %120 }
 0x154   :  { %v1176_v49 = vsel %vm1175_vm15, %v3458_v27, %v1172_v16  ;;  %v1331_v13 = vsub.f32 1.5, %v1330_v51  ;;  %v3532_v23 = vadd.f32 1e-05, %v689_v45  ;;  %v1541_v43 = vmul.f32 %v2994_v40, %v1473_v15 }
 0x155   :  { %v3535_v41 = vpop.eup %2181  ;;  %v1474_v61 = vmul.f32 %v1176_v49, %v2729_v35  ;;  %2183 = vrsqrt.f32 %v3525_v17  ;;  %v1489_v12 = vmul.f32 %v1326_v56, %v2726_v34  ;;  %vm843_vm2 = vweird.f32 %v3486_v22 }
 0x156   :  { %v1332_v33 = vmul.f32 %v2180_v6, %v1331_v13  ;;  %v838_v24 = vmul.f32 %v3535_v41, %v3486_v22  ;;  %2185 = vrsqrt.f32 %v3527_v0  ;;  %v654_v27 = vsel %vm85_vm0, %v472_v26, 0.0 }
 0x157   :  { %652 = vadd.xlane.f32.xlu1 %v651_v44  ;;  %2187 = vrsqrt.f32 %v3532_v23  ;;  %v1542_v35 = vmul.f32 %v2994_v40, %v1474_v61  ;;  %v1609_v32 = vadd.f32 %v3025_v36, %v1541_v43  ;;  %v311_v11 = vmul.f32 %v2581_v29, %v166_v3 }
 0x158   :  { %v1336_v34 = vsel %vm1335_vm1, %v2180_v6, %v1332_v33  ;;  %v839_v59 = vmul.f32 %v3535_v41, %v838_v24  ;;  %v295_v20 = vmul.f32 %v2581_v29, %v118_v38  ;;  %v296_v60 = vmul.f32 %v2581_v29, %v121_v62 }
 0x159   :  { %v1490_v48 = vmul.f32 %v1336_v34, %v2747_v52  ;;  %655 = vadd.xlane.f32.xlu2 %v654_v27  ;;  %v1610_v4 = vadd.f32 %v3025_v36, %v1542_v35  ;;  %vm844_vm3 = vweird.f32 %v3535_v41  ;;  %vm1013_vm4 = vweird.f32 %v3525_v17  ;;  %v596_v58 = vpop.xlane.xlu1 %595 }
 0x15a   :  { %v840_v14 = vmul.f32 0.5, %v839_v59  ;;  %v1557_v57 = vmul.f32 %v2994_v40, %v1489_v12  ;;  %vm853_vm5 = vweird.f32 %v3527_v0  ;;  %v3566_v21 = vsub.f32 %v2273_v5, %v311_v11  ;;  %v169_v47 = vpop.xlane.xlu2 %168  ;;  %vm845_vm9 = vmor %vm843_vm2, %vm844_vm3 }
 0x15b   :  { %v3560_v6 = vpop.eup %2183  ;;  %v1655_v52 = vpack.c.bf16 %v1610_v4, %v1609_v32  ;;  %v3571_v7 = vsub.f32 %v2274_v54, %v295_v20  ;;  %v1558_v28 = vmul.f32 %v2994_v40, %v1490_v48  ;;  %v593_v46 = vpop.xlane.xlu0 %592  ;;  %vm1003_vm7 = vweird.f32 %v3532_v23 }
 0x15c   :  { %v3574_v15 = vpop.eup %2185  ;;  %v841_v9 = vsub.f32 1.5, %v840_v14  ;;  %v1008_v25 = vmul.f32 %v3560_v6, %v3525_v17  ;;  %vm1014_vm6 = vweird.f32 %v3560_v6  ;;  %v3583_v37 = vsub.f32 %v2275_v18, %v296_v60 }
 0x15d   :  { %v3585_v19 = vpop.eup %2187  ;;  %v848_v39 = vmul.f32 %v3574_v15, %v3527_v0  ;;  %2113 = vmatmul.msk.bf16.gmra.mxu2 %vm85_vm0, %v1655_v52  ;;  %v1625_v42 = vadd.f32 %v3025_v36, %v1557_v57  ;;  %v1626_v50 = vadd.f32 %v3025_v36, %v1558_v28  ;;  %v708_v16 = vmul.f32 %v596_v58, %v2581_v29  ;;  %vm1015_vm11 = vmor %vm1013_vm4, %vm1014_vm6  ;;  %v2277_v0 = vld [vmem:[%s4750_s0 + $0x160] sm:$0xff] }
 0x15e   :  { %v842_v51 = vmul.f32 %v3535_v41, %v841_v9  ;;  %v1009_v44 = vmul.f32 %v3560_v6, %v1008_v25  ;;  %vm854_vm8 = vweird.f32 %v3574_v15  ;;  %v998_v45 = vmul.f32 %v3585_v19, %v3532_v23  ;;  %v4815_v25 = vld [vmem:[#allocation3_spill] sm:$0xff] }
 0x15f   :  { %v849_v3 = vmul.f32 %v3574_v15, %v848_v39  ;;  %v1663_v56 = vpack.c.bf16 %v1626_v50, %v1625_v42  ;;  %v3603_v26 = vadd.f32 1e-05, %v708_v16  ;;  %v423_v38 = vmul.f32 %v3571_v7, %v3571_v7  ;;  %vm855_vm12 = vmor %vm853_vm5, %vm854_vm8  ;;  %v4816_v50 = vld [vmem:[#allocation4_spill] sm:$0xff] }
 0x160   :  { %v846_v62 = vsel %vm845_vm9, %v3535_v41, %v842_v51  ;;  %v1010_v49 = vmul.f32 0.5, %v1009_v44  ;;  %v999_v13 = vmul.f32 %v3585_v19, %v998_v45  ;;  %v312_v43 = vmul.f32 %v2581_v29, %v169_v47  ;;  %v2276_v41 = vld [vmem:[%s4750_s0 + $0xd8] sm:$0xff]  ;;  %v4814_v47 = vld [vmem:[#allocation2_spill] sm:$0xff] }
 0x161   :  { %v1441_v61 = vmul.f32 %v846_v62, %v2761_v63  ;;  %v850_v12 = vmul.f32 0.5, %v849_v3  ;;  %vm1004_vm10 = vweird.f32 %v3585_v19  ;;  %2121 = vmatmul.msk.bf16.gmra.mxu3 %vm85_vm0, %v1663_v56  ;;  %2189 = vrsqrt.f32 %v3603_v26  ;;  %v220_v35 = vpop.xlane.xlu1 %219 }
 0x162   :  { %v1011_v22 = vsub.f32 1.5, %v1010_v49  ;;  %v1000_v33 = vmul.f32 0.5, %v999_v13  ;;  %v507_v24 = vsel %vm85_vm0, %v423_v38, 0.0  ;;  %v3618_v27 = vsub.f32 %v2276_v41, %v312_v43  ;;  %v641_v11 = vpop.xlane.xlu2 %640  ;;  %vm1005_vm13 = vmor %vm1003_vm7, %vm1004_vm10 }
 0x163   :  { %v851_v34 = vsub.f32 1.5, %v850_v12  ;;  %508 = vadd.xlane.f32.xlu0 %v507_v24  ;;  %v439_v63 = vmul.f32 %v3566_v21, %v3566_v21  ;;  %v424_v59 = vmul.f32 %v3583_v37, %v3583_v37  ;;  %v707_v32 = vmul.f32 %v593_v46, %v2581_v29  ;;  %v644_v48 = vpop.xlane.xlu0 %643 }
 0x164   :  { %v1012_v4 = vmul.f32 %v3560_v6, %v1011_v22  ;;  %v1001_v20 = vsub.f32 1.5, %v1000_v33  ;;  %v329_v60 = vmul.f32 %v2581_v29, %v220_v35  ;;  %v440_v14 = vmul.f32 %v3618_v27, %v3618_v27 }
 0x165   :  { %v852_v57 = vmul.f32 %v3574_v15, %v851_v34  ;;  %v555_v58 = vsel %vm85_vm0, %v439_v63, 0.0  ;;  %v510_v52 = vsel %vm85_vm0, %v424_v59, 0.0  ;;  %v3636_v5 = vadd.f32 1e-05, %v707_v32 }
 0x166   :  { %v1016_v54 = vsel %vm1015_vm11, %v3560_v6, %v1012_v4  ;;  %v1002_v28 = vmul.f32 %v3585_v19, %v1001_v20  ;;  %556 = vadd.xlane.f32.xlu2 %v555_v58  ;;  %511 = vadd.xlane.f32.xlu1 %v510_v52  ;;  %v3656_v6 = vsub.f32 %v2277_v0, %v329_v60  ;;  %v558_v42 = vsel %vm85_vm0, %v440_v14, 0.0  ;;  %v2279_v58 = vld [vmem:[%s4750_s0 + $0x168] sm:$0xff] }
 0x167   :  { %v3644_v17 = vpop.eup %2189  ;;  %v1458_v46 = vmul.f32 %v1016_v54, %v4814_v47  ;;  %v856_v9 = vsel %vm855_vm12, %v3574_v15, %v852_v57  ;;  %2191 = vrsqrt.f32 %v3636_v5  ;;  %v723_v16 = vmul.f32 %v641_v11, %v2581_v29  ;;  %v2278_v11 = vld [vmem:[%s4750_s0 + $0x1e8] sm:$0xff] }
 0x168   :  { %v1442_v18 = vmul.f32 %v856_v9, %v4815_v25  ;;  %v1006_v39 = vsel %vm1005_vm13, %v3585_v19, %v1002_v28  ;;  %v1188_v15 = vmul.f32 %v3644_v17, %v3603_v26  ;;  %v724_v51 = vmul.f32 %v644_v48, %v2581_v29 }
 0x169   :  { %v1457_v23 = vmul.f32 %v1006_v39, %v4816_v50  ;;  %v1509_v44 = vmul.f32 %v2994_v40, %v1441_v61  ;;  %v1526_v56 = vmul.f32 %v2994_v40, %v1458_v46  ;;  %v271_v19 = vpop.xlane.xlu1 %270  ;;  %v3670_v38 = vadd.f32 1e-05, %v723_v16  ;;  %v4819_v16 = vld [vmem:[#allocation5_spill] sm:$0xff] }
 0x16a   :  { %v1189_v45 = vmul.f32 %v3644_v17, %v1188_v15  ;;  %v1510_v3 = vmul.f32 %v2994_v40, %v1442_v18  ;;  %v3672_v62 = vadd.f32 1e-05, %v724_v51  ;;  %v223_v13 = vpop.xlane.xlu2 %222  ;;  %v457_v43 = vmul.f32 %v3656_v6, %v3656_v6 }
 0x16b   :  { %559 = vadd.xlane.f32.xlu0 %v558_v42  ;;  %v1525_v49 = vmul.f32 %v2994_v40, %v1457_v23  ;;  %v268_v12 = vpop.xlane.xlu0 %267  ;;  %v1594_v33 = vadd.f32 %v3025_v36, %v1526_v56  ;;  %v346_v24 = vmul.f32 %v2581_v29, %v271_v19  ;;  %vm1193_vm14 = vweird.f32 %v3603_v26  ;;  %v2280_v26 = vld [vmem:[%s4750_s0 + $0x1e0] sm:$0xff] }
 0x16c   :  { %v1190_v61 = vmul.f32 0.5, %v1189_v45  ;;  %v1578_v22 = vadd.f32 %v3025_v36, %v1510_v3  ;;  %2193 = vrsqrt.f32 %v3670_v38  ;;  %v1577_v35 = vadd.f32 %v3025_v36, %v1509_v44 }
 0x16d   :  { %v2192_v41 = vpop.eup %2191  ;;  %v1593_v40 = vadd.f32 %v3025_v36, %v1525_v49  ;;  %vm1194_vm15 = vweird.f32 %v3644_v17  ;;  %2195 = vrsqrt.f32 %v3672_v62  ;;  %v3690_v48 = vsub.f32 %v2278_v11, %v346_v24  ;;  %v4820_v24 = vld [vmem:[#allocation6_spill] sm:$0xff] }
 0x16e   :  { %v1191_v34 = vsub.f32 1.5, %v1190_v61  ;;  %v1178_v63 = vmul.f32 %v2192_v41, %v3636_v5  ;;  %v1639_v59 = vpack.c.bf16 %v1578_v22, %v1577_v35  ;;  %v330_v4 = vmul.f32 %v2581_v29, %v223_v13  ;;  %vm3698_vm1 = vmor %vm1193_vm14, %vm1194_vm15 }
 0x16f   :  { %v1647_v32 = vpack.c.bf16 %v1594_v33, %v1593_v40  ;;  %v609_v60 = vsel %vm85_vm0, %v457_v43, 0.0  ;;  %v345_v14 = vmul.f32 %v2581_v29, %v268_v12  ;;  %vm1183_vm2 = vweird.f32 %v3636_v5 }
 0x170   :  { %v1192_v20 = vmul.f32 %v3644_v17, %v1191_v34  ;;  %v1179_v36 = vmul.f32 %v2192_v41, %v1178_v63  ;;  %2097 = vmatmul.msk.bf16.gmra.mxu0 %vm85_vm0, %v1639_v59  ;;  %v3707_v52 = vsub.f32 %v2279_v58, %v330_v4  ;;  %610 = vadd.xlane.f32.xlu1 %v609_v60  ;;  %vm1184_vm3 = vweird.f32 %v2192_v41 }
 0x171   :  { %2105 = vmatmul.msk.bf16.gmra.mxu1 %vm85_vm0, %v1647_v32  ;;  %v3715_v47 = vsub.f32 %v2280_v26, %v345_v14  ;;  %v545_v46 = vpop.xlane.xlu1 %544  ;;  %vm1185_vm4 = vmor %vm1183_vm2, %vm1184_vm3  ;;  %vm1343_vm5 = vweird.f32 %v3670_v38  ;;  %v3762_v14 = vld [vmem:[%s4752_s2] ss:$0 sm:$0xff]  ;;  %vm1353_vm9 = vweird.f32 %v3672_v62 }
 0x172   :  { %v1196_v54 = vsel %vm3698_vm1, %v3644_v17, %v1192_v20  ;;  %v1180_v28 = vmul.f32 0.5, %v1179_v36  ;;  %v3717_v9 = vpop.eup %2193  ;;  %v691_v0 = vmul.f32 %v545_v46, %v2581_v29  ;;  %v497_v25 = vpop.xlane.xlu2 %496  ;;  %v458_v18 = vmul.f32 %v3707_v52, %v3707_v52 }
 0x173   :  { %v474_v17 = vmul.f32 %v3690_v48, %v3690_v48  ;;  %v500_v39 = vpop.xlane.xlu0 %499  ;;  %v2196_v15 = vpop.eup %2195  ;;  %v1338_v50 = vmul.f32 %v3717_v9, %v3670_v38  ;;  %v675_v23 = vmul.f32 %v497_v25, %v2581_v29  ;;  %v1476_v51 = vmul.f32 %v1196_v54, %v4819_v16  ;;  %v2283_v38 = vld [vmem:[%s4750_s0 + $0x68] sm:$0xff] }
 0x174   :  { %v1181_v42 = vsub.f32 1.5, %v1180_v28  ;;  %v1348_v44 = vmul.f32 %v2196_v15, %v3672_v62  ;;  %v3730_v45 = vadd.f32 1e-05, %v691_v0  ;;  %v612_v3 = vsel %vm85_vm0, %v458_v18, 0.0  ;;  %v4821_v62 = vld [vmem:[#allocation8_spill] sm:$0xff] }
 0x175   :  { %v1339_v19 = vmul.f32 %v3717_v9, %v1338_v50  ;;  %v3734_v49 = vadd.f32 1e-05, %v675_v23  ;;  %613 = vadd.xlane.f32.xlu2 %v612_v3  ;;  %v473_v13 = vmul.f32 %v3715_v47, %v3715_v47  ;;  %v660_v12 = vsel %vm85_vm0, %v474_v17, 0.0 }
 0x176   :  { %v1182_v56 = vmul.f32 %v2192_v41, %v1181_v42  ;;  %v1349_v43 = vmul.f32 %v2196_v15, %v1348_v44  ;;  %2197 = vrsqrt.f32 %v3730_v45  ;;  %v676_v61 = vmul.f32 %v500_v39, %v2581_v29 }
 0x177   :  { %v1340_v33 = vmul.f32 0.5, %v1339_v19  ;;  %2199 = vrsqrt.f32 %v3734_v49  ;;  %v657_v34 = vsel %vm85_vm0, %v473_v13, 0.0  ;;  %vm1344_vm6 = vweird.f32 %v3717_v9 }
 0x178   :  { %v1186_v22 = vsel %vm1185_vm4, %v2192_v41, %v1182_v56  ;;  %v1350_v40 = vmul.f32 0.5, %v1349_v43  ;;  %v3746_v63 = vadd.f32 1e-05, %v676_v61  ;;  %661 = vadd.xlane.f32.xlu1 %v660_v12  ;;  %658 = vadd.xlane.f32.xlu0 %v657_v34  ;;  %v3753_v41 = vld [vmem:[%s4751_s1] ss:$0 sm:$0xff]  ;;  %vm1354_vm7 = vweird.f32 %v2196_v15  ;;  %vm1345_vm8 = vmor %vm1343_vm5, %vm1344_vm6 }
 0x179   :  { %v1475_v35 = vmul.f32 %v1186_v22, %v4820_v24  ;;  %v1341_v5 = vsub.f32 1.5, %v1340_v33  ;;  %v1544_v59 = vmul.f32 %v3753_v41, %v1476_v51  ;;  %v127_v32 = vpop.xlane.xlu1 %126  ;;  %vm1355_vm10 = vmor %vm1353_vm9, %vm1354_vm7  ;;  %vm863_vm11 = vweird.f32 %v3734_v49 }
 0x17a   :  { %v1351_v11 = vsub.f32 1.5, %v1350_v40  ;;  %2201 = vrsqrt.f32 %v3746_v63  ;;  %v548_v20 = vpop.xlane.xlu2 %547  ;;  %v298_v58 = vmul.f32 %v2581_v29, %v127_v32  ;;  %vm1023_vm1 = vweird.f32 %v3730_v45 }
 0x17b   :  { %v1543_v4 = vmul.f32 %v3753_v41, %v1475_v35  ;;  %v124_v36 = vpop.xlane.xlu0 %123  ;;  %v1342_v60 = vmul.f32 %v3717_v9, %v1341_v5  ;;  %v1612_v57 = vadd.f32 %v3762_v14, %v1544_v59  ;;  %v692_v54 = vmul.f32 %v548_v20, %v2581_v29 }
 0x17c   :  { %v3767_v28 = vpop.eup %2197  ;;  %v1352_v26 = vmul.f32 %v2196_v15, %v1351_v11  ;;  %v297_v0 = vmul.f32 %v2581_v29, %v124_v36  ;;  %v3785_v39 = vsub.f32 %v2283_v38, %v298_v58  ;;  %vm873_vm2 = vweird.f32 %v3746_v63 }
 0x17d   :  { %v1611_v46 = vadd.f32 %v3762_v14, %v1543_v4  ;;  %v3776_v25 = vpop.eup %2199  ;;  %v1346_v18 = vsel %vm1345_vm8, %v3717_v9, %v1342_v60  ;;  %v1018_v17 = vmul.f32 %v3767_v28, %v3730_v45  ;;  %v4822_v9 = vld [vmem:[#allocation7_spill] sm:$0xff]  ;;  %v3793_v3 = vadd.f32 1e-05, %v692_v54 }
 0x17e   :  { %v1491_v42 = vmul.f32 %v1346_v18, %v4821_v62  ;;  %v1356_v50 = vsel %vm1355_vm10, %v2196_v15, %v1352_v26  ;;  %v858_v23 = vmul.f32 %v3776_v25, %v3734_v49  ;;  %v2284_v15 = vld [vmem:[%s4750_s0 + $0x60] sm:$0xff]  ;;  %v426_v12 = vmul.f32 %v3785_v39, %v3785_v39  ;;  %v2286_v45 = vld [vmem:[%s4750_s0 + $0xe8] sm:$0xff] }
 0x17f   :  { %v1492_v16 = vmul.f32 %v1356_v50, %v4822_v9  ;;  %v1019_v51 = vmul.f32 %v3767_v28, %v1018_v17  ;;  %v1656_v44 = vpack.c.bf16 %v1612_v57, %v1611_v46  ;;  %v3801_v13 = vsub.f32 %v2284_v15, %v297_v0  ;;  %v2285_v46 = vld [vmem:[%s4750_s0 + $0xe0] sm:$0xff] }
 0x180   :  { %v3795_v56 = vpop.eup %2201  ;;  %v859_v19 = vmul.f32 %v3776_v25, %v858_v23  ;;  %v1559_v43 = vmul.f32 %v3753_v41, %v1491_v42  ;;  %vm1024_vm12 = vweird.f32 %v3767_v28  ;;  %2203 = vrsqrt.f32 %v3793_v3 }
 0x181   :  { %v1020_v61 = vmul.f32 0.5, %v1019_v51  ;;  %v868_v22 = vmul.f32 %v3795_v56, %v3746_v63  ;;  %2114 = vmatmul.msk.bf16.gmra.mxu2 %vm85_vm0, %v1656_v44  ;;  %v599_v33 = vpop.xlane.xlu1 %598  ;;  %vm864_vm13 = vweird.f32 %v3776_v25  ;;  %v1560_v35 = vmul.f32 %v3753_v41, %v1492_v16  ;;  %vm3845_vm3 = vmor %vm1023_vm1, %vm1024_vm12  ;;  %v4825_v16 = vld [vmem:[#allocation10_spill] sm:$0xff] }
 0x182   :  { %v860_v24 = vmul.f32 0.5, %v859_v19  ;;  %v1627_v40 = vadd.f32 %v3762_v14, %v1559_v43  ;;  %v172_v34 = vpop.xlane.xlu2 %171  ;;  %v709_v11 = vmul.f32 %v599_v33, %v2581_v29  ;;  %v516_v60 = vsel %vm85_vm0, %v426_v12, 0.0  ;;  %vm865_vm14 = vmor %vm863_vm11, %vm864_vm13 }
 0x183   :  { %v175_v5 = vpop.xlane.xlu0 %174  ;;  %v1021_v59 = vsub.f32 1.5, %v1020_v61  ;;  %v869_v32 = vmul.f32 %v3795_v56, %v868_v22  ;;  %v313_v4 = vmul.f32 %v2581_v29, %v172_v34  ;;  %v1628_v36 = vadd.f32 %v3762_v14, %v1560_v35  ;;  %517 = vadd.xlane.f32.xlu0 %v516_v60  ;;  %v4826_v34 = vld [vmem:[#allocation11_spill] sm:$0xff] }
 0x184   :  { %v861_v20 = vsub.f32 1.5, %v860_v24  ;;  %v425_v57 = vmul.f32 %v3801_v13, %v3801_v13  ;;  %v3822_v26 = vadd.f32 1e-05, %v709_v11  ;;  %v314_v62 = vmul.f32 %v2581_v29, %v175_v5 }
 0x185   :  { %v1022_v58 = vmul.f32 %v3767_v28, %v1021_v59  ;;  %v870_v54 = vmul.f32 0.5, %v869_v32  ;;  %v3827_v0 = vsub.f32 %v2285_v46, %v313_v4  ;;  %v1664_v17 = vpack.c.bf16 %v1628_v36, %v1627_v40  ;;  %v4827_v4 = vld [vmem:[#allocation9_spill] sm:$0xff] }
 0x186   :  { %v862_v18 = vmul.f32 %v3776_v25, %v861_v20  ;;  %v513_v38 = vsel %vm85_vm0, %v425_v57, 0.0  ;;  %v2204_v42 = vpop.eup %2203  ;;  %vm874_vm15 = vweird.f32 %v3795_v56  ;;  %2205 = vrsqrt.f32 %v3822_v26 }
 0x187   :  { %v871_v50 = vsub.f32 1.5, %v870_v54  ;;  %514 = vadd.xlane.f32.xlu2 %v513_v38  ;;  %v1028_v9 = vmul.f32 %v2204_v42, %v3793_v3  ;;  %2122 = vmatmul.msk.bf16.gmra.mxu3 %vm85_vm0, %v1664_v17  ;;  %v441_v19 = vmul.f32 %v3827_v0, %v3827_v0  ;;  %v1026_v15 = vsel %vm3845_vm3, %v3767_v28, %v1022_v58  ;;  %vm875_vm4 = vmor %vm873_vm2, %vm874_vm15 }
 0x188   :  { %v866_v23 = vsel %vm865_vm14, %v3776_v25, %v862_v18  ;;  %v3854_v25 = vsub.f32 %v2286_v45, %v314_v62  ;;  %vm1034_vm5 = vweird.f32 %v2204_v42  ;;  %vm1033_vm6 = vweird.f32 %v3793_v3 }
 0x189   :  { %v1443_v51 = vmul.f32 %v866_v23, %v4825_v16  ;;  %v872_v44 = vmul.f32 %v3795_v56, %v871_v50  ;;  %v650_v63 = vpop.xlane.xlu1 %649  ;;  %v1029_v43 = vmul.f32 %v2204_v42, %v1028_v9  ;;  %v561_v24 = vsel %vm85_vm0, %v441_v19, 0.0  ;;  %vm1035_vm7 = vmor %vm1033_vm6, %vm1034_vm5 }
 0x18a   :  { %v726_v12 = vmul.f32 %v650_v63, %v2581_v29  ;;  %v602_v33 = vpop.xlane.xlu2 %601  ;;  %v442_v35 = vmul.f32 %v3854_v25, %v3854_v25  ;;  %562 = vadd.xlane.f32.xlu1 %v561_v24  ;;  %v2288_v24 = vld [vmem:[%s4750_s0 + $0x178] sm:$0xff]  ;;  %vm1203_vm9 = vweird.f32 %v3822_v26  ;;  %vm2018_vm5 = vcmask 781312  }
 0x18b   :  { %v647_v61 = vpop.xlane.xlu0 %646  ;;  %v876_v22 = vsel %vm875_vm4, %v3795_v56, %v872_v44  ;;  %v1030_v28 = vmul.f32 0.5, %v1029_v43  ;;  %v710_v32 = vmul.f32 %v602_v33, %v2581_v29  ;;  %v1459_v56 = vmul.f32 %v1026_v15, %v4827_v4 }
 0x18c   :  { %v725_v40 = vmul.f32 %v647_v61, %v2581_v29  ;;  %v1444_v5 = vmul.f32 %v876_v22, %v4826_v34  ;;  %v3870_v59 = vadd.f32 1e-05, %v726_v12  ;;  %v3873_v11 = vpop.eup %2205  ;;  %v564_v20 = vsel %vm85_vm0, %v442_v35, 0.0  ;;  %v2287_v12 = vld [vmem:[%s4750_s0 + $0x1f0] sm:$0xff] }
 0x18d   :  { %v1511_v60 = vmul.f32 %v3753_v41, %v1443_v51  ;;  %v1031_v57 = vsub.f32 1.5, %v1030_v28  ;;  %v1198_v58 = vmul.f32 %v3873_v11, %v3822_v26  ;;  %v3884_v54 = vadd.f32 1e-05, %v710_v32  ;;  %v4828_v51 = vld [vmem:[#allocation12_spill] sm:$0xff] }
 0x18e   :  { %v3877_v36 = vadd.f32 1e-05, %v725_v40  ;;  %2207 = vrsqrt.f32 %v3870_v59  ;;  %v1512_v17 = vmul.f32 %v3753_v41, %v1444_v5  ;;  %v1527_v50 = vmul.f32 %v3753_v41, %v1459_v56  ;;  %v2289_v5 = vld [vmem:[%s4750_s0 + $0x170] sm:$0xff] }
 0x18f   :  { %565 = vadd.xlane.f32.xlu2 %v564_v20  ;;  %v1032_v46 = vmul.f32 %v2204_v42, %v1031_v57  ;;  %v1199_v18 = vmul.f32 %v3873_v11, %v1198_v58  ;;  %v1579_v38 = vadd.f32 %v3762_v14, %v1511_v60  ;;  %vm1204_vm8 = vweird.f32 %v3873_v11 }
 0x190   :  { %2209 = vrsqrt.f32 %v3877_v36  ;;  %v1580_v9 = vadd.f32 %v3762_v14, %v1512_v17  ;;  %v1595_v32 = vadd.f32 %v3762_v14, %v1527_v50  ;;  %vm3930_vm10 = vmor %vm1203_vm9, %vm1204_vm8  ;;  %vm1373_vm13 = vweird.f32 %v3870_v59 }
 0x191   :  { %2211 = vrsqrt.f32 %v3884_v54  ;;  %v274_v62 = vpop.xlane.xlu1 %273  ;;  %v1036_v23 = vsel %vm1035_vm7, %v2204_v42, %v1032_v46  ;;  %v1200_v3 = vmul.f32 0.5, %v1199_v18  ;;  %vm1363_vm14 = vweird.f32 %v3877_v36 }
 0x192   :  { %v347_v49 = vmul.f32 %v2581_v29, %v274_v62  ;;  %v1460_v44 = vmul.f32 %v1036_v23, %v4828_v51  ;;  %v226_v45 = vpop.xlane.xlu2 %225  ;;  %v1640_v43 = vpack.c.bf16 %v1580_v9, %v1579_v38  ;;  %vm1213_vm2 = vweird.f32 %v3884_v54 }
 0x193   :  { %v229_v16 = vpop.xlane.xlu0 %228  ;;  %v1201_v15 = vsub.f32 1.5, %v1200_v3  ;;  %v331_v42 = vmul.f32 %v2581_v29, %v226_v45 }
 0x194   :  { %v332_v63 = vmul.f32 %v2581_v29, %v229_v16  ;;  %v2208_v19 = vpop.eup %2207  ;;  %v3899_v61 = vsub.f32 %v2287_v12, %v347_v49  ;;  %v1528_v40 = vmul.f32 %v3753_v41, %v1460_v44  ;;  %2098 = vmatmul.msk.bf16.gmra.mxu0 %vm85_vm0, %v1640_v43 }
 0x195   :  { %v1368_v33 = vmul.f32 %v2208_v19, %v3870_v59  ;;  %v3914_v28 = vsub.f32 %v2289_v5, %v331_v42  ;;  %v1202_v58 = vmul.f32 %v3873_v11, %v1201_v15  ;;  %vm1374_vm11 = vweird.f32 %v2208_v19 }
 0x196   :  { %v2210_v22 = vpop.eup %2209  ;;  %v3906_v35 = vsub.f32 %v2288_v24, %v332_v63  ;;  %v1596_v20 = vadd.f32 %v3762_v14, %v1528_v40  ;;  %v475_v60 = vmul.f32 %v3899_v61, %v3899_v61  ;;  %vm1375_vm15 = vmor %vm1373_vm13, %vm1374_vm11  ;;  %v3951_v24 = vld [vmem:[%s4754_s4] ss:$0 sm:$0xff]  ;;  %v4831_v40 = vld [vmem:[#allocation13_spill] sm:$0xff] }
 0x197   :  { %v1358_v34 = vmul.f32 %v2210_v22, %v3877_v36  ;;  %v2212_v4 = vpop.eup %2211  ;;  %v1369_v56 = vmul.f32 %v2208_v19, %v1368_v33  ;;  %v459_v62 = vmul.f32 %v3914_v28, %v3914_v28  ;;  %vm1364_vm12 = vweird.f32 %v2210_v22  ;;  %v4832_v36 = vld [vmem:[#allocation16_spill] sm:$0xff] }
 0x198   :  { %v460_v57 = vmul.f32 %v3906_v35, %v3906_v35  ;;  %v1208_v46 = vmul.f32 %v2212_v4, %v3884_v54  ;;  %v1648_v38 = vpack.c.bf16 %v1596_v20, %v1595_v32  ;;  %v663_v3 = vsel %vm85_vm0, %v475_v60, 0.0  ;;  %vm1365_vm3 = vmor %vm1363_vm14, %vm1364_vm12  ;;  %v4833_v60 = vld [vmem:[#allocation14_spill] sm:$0xff] }
 0x199   :  { %v1359_v18 = vmul.f32 %v2210_v22, %v1358_v34  ;;  %v1370_v17 = vmul.f32 0.5, %v1369_v56  ;;  %v615_v51 = vsel %vm85_vm0, %v459_v62, 0.0  ;;  %664 = vadd.xlane.f32.xlu2 %v663_v3  ;;  %v1206_v44 = vsel %vm3930_vm10, %v3873_v11, %v1202_v58  ;;  %v2290_v11 = vld [vmem:[%s4750_s0 + $0x1f8] sm:$0xff] }
 0x19a   :  { %v1209_v50 = vmul.f32 %v2212_v4, %v1208_v46  ;;  %v618_v9 = vsel %vm85_vm0, %v460_v57, 0.0  ;;  %2106 = vmatmul.msk.bf16.gmra.mxu1 %vm85_vm0, %v1648_v38  ;;  %v277_v26 = vpop.xlane.xlu2 %276  ;;  %616 = vadd.xlane.f32.xlu0 %v615_v51  ;;  %vm1214_vm1 = vweird.f32 %v2212_v4  ;;  %v1477_v59 = vmul.f32 %v1206_v44, %v4831_v40 }
 0x19b   :  { %v1360_v23 = vmul.f32 0.5, %v1359_v18  ;;  %v1371_v16 = vsub.f32 1.5, %v1370_v17  ;;  %v348_v15 = vmul.f32 %v2581_v29, %v277_v26  ;;  %619 = vadd.xlane.f32.xlu1 %v618_v9  ;;  %vm1215_vm4 = vmor %vm1213_vm2, %vm1214_vm1  ;;  %v4834_v17 = vld [vmem:[#allocation15_spill] sm:$0xff] }
 0x19c   :  { %v1210_v45 = vmul.f32 0.5, %v1209_v50  ;;  %v1545_v62 = vmul.f32 %v3753_v41, %v1477_v59 }
 0x19d   :  { %v1361_v63 = vsub.f32 1.5, %v1360_v23  ;;  %v1372_v43 = vmul.f32 %v2208_v19, %v1371_v16  ;;  %v3946_v33 = vsub.f32 %v2290_v11, %v348_v15 }
 0x19e   :  { %v1211_v12 = vsub.f32 1.5, %v1210_v45  ;;  %v1613_v9 = vadd.f32 %v3762_v14, %v1545_v62 }
 0x19f   :  { %v1362_v42 = vmul.f32 %v2210_v22, %v1361_v63  ;;  %v1376_v34 = vsel %vm1375_vm15, %v2208_v19, %v1372_v43  ;;  %v476_v20 = vmul.f32 %v3946_v33, %v3946_v33 }
 0x1a0   :  { %v1494_v5 = vmul.f32 %v1376_v34, %v4832_v36  ;;  %v1212_v32 = vmul.f32 %v2212_v4, %v1211_v12  ;;  %v1874_v58 = vpop.f32.mrf.mxu2 }
 0x1a1   :  { %v1366_v56 = vsel %vm1365_vm3, %v2210_v22, %v1362_v42  ;;  %v1875_v18 = vadd.f32 %v3951_v24, %v1874_v58  ;;  %v666_v19 = vsel %vm85_vm0, %v476_v20, 0.0 }
 0x1a2   :  { %v1493_v57 = vmul.f32 %v1366_v56, %v4833_v60  ;;  %v1216_v46 = vsel %vm1215_vm4, %v2212_v4, %v1212_v32  ;;  %v1562_v54 = vmul.f32 %v3753_v41, %v1494_v5  ;;  %667 = vadd.xlane.f32.xlu0 %v666_v19 }
 0x1a3   :  { %v1478_v38 = vmul.f32 %v1216_v46, %v4834_v17  ;;  %v1986_v50 = vpack.c.bf16 %v1875_v18, %v1875_v18 }
 0x1a4   :  { %v1561_v22 = vmul.f32 %v3753_v41, %v1493_v57  ;;  %v1630_v23 = vadd.f32 %v3762_v14, %v1562_v54 }
 0x1a5   :  { %v1546_v3 = vmul.f32 %v3753_v41, %v1478_v38  ;;  %2051 = vst.msk [vmem:[%s4755_s5 + $0x80] sm:$0xf] %vm2018_vm5, %v1986_v50 }
 0x1a6   :  { %v1629_v4 = vadd.f32 %v3762_v14, %v1561_v22 }
 0x1a7   :  { %v1614_v49 = vadd.f32 %v3762_v14, %v1546_v3 }
 0x1a8   :  { %v1665_v16 = vpack.c.bf16 %v1630_v23, %v1629_v4  ;;  %v1876_v44 = vpop.f32.mrf.mxu2 }
 0x1a9   :  { %v503_v26 = vpop.xlane.xlu0 %502  ;;  %v1657_v45 = vpack.c.bf16 %v1614_v49, %v1613_v9  ;;  %v1877_v63 = vadd.f32 %v3951_v24, %v1876_v44 }
 0x1aa   :  { %v677_v51 = vmul.f32 %v503_v26, %v2581_v29  ;;  %2123 = vmatmul.msk.bf16.gmra.mxu3 %vm85_vm0, %v1665_v16 }
 0x1ab   :  { %2115 = vmatmul.msk.bf16.gmra.mxu2 %vm85_vm0, %v1657_v45  ;;  %v1987_v43 = vpack.c.bf16 %v1877_v63, %v1877_v63 }
 0x1ac   :  { %v741_v15 = vadd.f32 1e-05, %v677_v51 }
 0x1ad   :  { %2052 = vst.msk [vmem:[%s4755_s5 + $0x84] sm:$0xf] %vm2018_vm5, %v1987_v43 }
 0x1ae   :  { %2213 = vrsqrt.f32 %v741_v15  ;;  %vm883_vm6 = vweird.f32 %v741_v15 }
 0x1af   :  { %v1914_v12 = vpop.f32.mrf.mxu3 }
 0x1b0   :  { %v1915_v42 = vadd.f32 %v3951_v24, %v1914_v12 }
 0x1b1   :  { %v554_v11 = vpop.xlane.xlu0 %553 }
 0x1b2   :  { %v506_v40 = vpop.xlane.xlu1 %505  ;;  %v694_v59 = vmul.f32 %v554_v11, %v2581_v29  ;;  %v1794_v34 = vpop.f32.mrf.mxu0  ;;  %v2002_v36 = vpack.c.bf16 %v1915_v42, %v1915_v42  ;;  %v2291_v42 = vld [vmem:[%s4750_s0 + $0x70] sm:$0xff] }
 0x1b3   :  { %v678_v5 = vmul.f32 %v506_v40, %v2581_v29  ;;  %v1795_v32 = vadd.f32 %v3951_v24, %v1794_v34  ;;  %v2292_v40 = vld [vmem:[%s4750_s0 + $0xf0] sm:$0xff] }
 0x1b4   :  { %v3987_v56 = vpop.eup %2213  ;;  %v551_v20 = vpop.xlane.xlu2 %550  ;;  %v3989_v60 = vadd.f32 1e-05, %v694_v59  ;;  %2067 = vst.msk [vmem:[%s4755_s5 + $0xc0] sm:$0xf] %vm2018_vm5, %v2002_v36 }
 0x1b5   :  { %v878_v57 = vmul.f32 %v3987_v56, %v741_v15  ;;  %v3996_v58 = vadd.f32 1e-05, %v678_v5  ;;  %v693_v46 = vmul.f32 %v551_v20, %v2581_v29  ;;  %v1954_v18 = vpack.c.bf16 %v1795_v32, %v1795_v32 }
 0x1b6   :  { %2215 = vrsqrt.f32 %v3989_v60  ;;  %vm884_vm7 = vweird.f32 %v3987_v56  ;;  %vm1053_vm11 = vweird.f32 %v3989_v60 }
 0x1b7   :  { %v879_v19 = vmul.f32 %v3987_v56, %v878_v57  ;;  %2217 = vrsqrt.f32 %v3996_v58  ;;  %v4002_v54 = vadd.f32 1e-05, %v693_v46  ;;  %2019 = vst.msk [vmem:[%s4755_s5] sm:$0xf] %vm2018_vm5, %v1954_v18  ;;  %v1916_v17 = vpop.f32.mrf.mxu3  ;;  %vm893_vm8 = vweird.f32 %v3996_v58  ;;  %vm4046_vm10 = vmor %vm883_vm6, %vm884_vm7 }
 0x1b8   :  { %v1917_v62 = vadd.f32 %v3951_v24, %v1916_v17 }
 0x1b9   :  { %v880_v38 = vmul.f32 0.5, %v879_v19  ;;  %2219 = vrsqrt.f32 %v4002_v54  ;;  %v178_v22 = vpop.xlane.xlu0 %177  ;;  %vm1043_vm9 = vweird.f32 %v4002_v54 }
 0x1ba   :  { %v130_v50 = vpop.xlane.xlu1 %129  ;;  %v315_v23 = vmul.f32 %v2581_v29, %v178_v22  ;;  %v1796_v3 = vpop.f32.mrf.mxu0  ;;  %v2003_v9 = vpack.c.bf16 %v1917_v62, %v1917_v62  ;;  %v2293_v62 = vld [vmem:[%s4750_s0 + $0x78] sm:$0xff] }
 0x1bb   :  { %v881_v4 = vsub.f32 1.5, %v880_v38  ;;  %v299_v49 = vmul.f32 %v2581_v29, %v130_v50  ;;  %v1797_v16 = vadd.f32 %v3951_v24, %v1796_v3  ;;  %v1834_v26 = vpop.f32.mrf.mxu1 }
 0x1bc   :  { %v4013_v51 = vpop.eup %2215  ;;  %v133_v44 = vpop.xlane.xlu2 %132  ;;  %v1835_v45 = vadd.f32 %v3951_v24, %v1834_v26  ;;  %2068 = vst.msk [vmem:[%s4755_s5 + $0xc4] sm:$0xf] %vm2018_vm5, %v2003_v9  ;;  %v4034_v59 = vsub.f32 %v2292_v40, %v315_v23 }
 0x1bd   :  { %v4017_v63 = vpop.eup %2217  ;;  %v882_v43 = vmul.f32 %v3987_v56, %v881_v4  ;;  %v1048_v12 = vmul.f32 %v4013_v51, %v3989_v60  ;;  %v4029_v11 = vsub.f32 %v2291_v42, %v299_v49  ;;  %v300_v36 = vmul.f32 %v2581_v29, %v133_v44 }
 0x1be   :  { %v888_v34 = vmul.f32 %v4017_v63, %v3996_v58  ;;  %v1955_v5 = vpack.c.bf16 %v1797_v16, %v1797_v16  ;;  %vm1054_vm12 = vweird.f32 %v4013_v51  ;;  %v1970_v46 = vpack.c.bf16 %v1835_v45, %v1835_v45 }
 0x1bf   :  { %v4041_v32 = vpop.eup %2219  ;;  %v1049_v57 = vmul.f32 %v4013_v51, %v1048_v12  ;;  %v427_v18 = vmul.f32 %v4029_v11, %v4029_v11  ;;  %v886_v19 = vsel %vm4046_vm10, %v3987_v56, %v882_v43  ;;  %vm894_vm13 = vweird.f32 %v4017_v63  ;;  %vm4130_vm2 = vmor %vm1053_vm11, %vm1054_vm12 }
 0x1c0   :  { %v889_v15 = vmul.f32 %v4017_v63, %v888_v34  ;;  %v1038_v17 = vmul.f32 %v4041_v32, %v4002_v54  ;;  %2020 = vst.msk [vmem:[%s4755_s5 + $0x4] sm:$0xf] %vm2018_vm5, %v1955_v5  ;;  %v4069_v22 = vsub.f32 %v2293_v62, %v300_v36  ;;  %v443_v23 = vmul.f32 %v4034_v59, %v4034_v59  ;;  %vm895_vm15 = vmor %vm893_vm8, %vm894_vm13 }
 0x1c1   :  { %v1050_v38 = vmul.f32 0.5, %v1049_v57  ;;  %2035 = vst.msk [vmem:[%s4755_s5 + $0x40] sm:$0xf] %vm2018_vm5, %v1970_v46  ;;  %v1919_v56 = vpop.f32.mrf.mxu3  ;;  %v519_v50 = vsel %vm85_vm0, %v427_v18, 0.0  ;;  %v608_v3 = vpop.xlane.xlu0 %607  ;;  %v1445_v46 = vmul.f32 %v886_v19, %v3231_v2  ;;  %v2294_v18 = vld [vmem:[%s4750_s0 + $0xf8] sm:$0xff]  ;;  %vm1044_vm14 = vweird.f32 %v4041_v32 }
 0x1c2   :  { %v890_v4 = vmul.f32 0.5, %v889_v15  ;;  %v1039_v9 = vmul.f32 %v4041_v32, %v1038_v17  ;;  %v1920_v49 = vadd.f32 %v3951_v24, %v1919_v56  ;;  %v181_v16 = vpop.xlane.xlu1 %180  ;;  %520 = vadd.xlane.f32.xlu1 %v519_v50  ;;  %v712_v26 = vmul.f32 %v608_v3, %v2581_v29  ;;  %vm4118_vm1 = vmor %vm1043_vm9, %vm1044_vm14 }
 0x1c3   :  { %v1051_v44 = vsub.f32 1.5, %v1050_v38  ;;  %v316_v45 = vmul.f32 %v2581_v29, %v181_v16  ;;  %v428_v43 = vmul.f32 %v4069_v22, %v4069_v22  ;;  %v567_v12 = vsel %vm85_vm0, %v443_v23, 0.0  ;;  %v1799_v42 = vpop.f32.mrf.mxu0  ;;  %v1836_v40 = vpop.f32.mrf.mxu1 }
 0x1c4   :  { %v891_v34 = vsub.f32 1.5, %v890_v4  ;;  %v1040_v36 = vmul.f32 0.5, %v1039_v9  ;;  %v2004_v5 = vpack.c.bf16 %v1920_v49, %v1920_v49  ;;  %v605_v20 = vpop.xlane.xlu2 %604  ;;  %568 = vadd.xlane.f32.xlu0 %v567_v12  ;;  %v4085_v57 = vadd.f32 1e-05, %v712_v26 }
 0x1c5   :  { %v4091_v15 = vsub.f32 %v2294_v18, %v316_v45  ;;  %v711_v17 = vmul.f32 %v605_v20, %v2581_v29  ;;  %v522_v38 = vsel %vm85_vm0, %v428_v43, 0.0  ;;  %v1052_v2 = vmul.f32 %v4013_v51, %v1051_v44 }
 0x1c6   :  { %v892_v62 = vmul.f32 %v4017_v63, %v891_v34  ;;  %v1041_v56 = vsub.f32 1.5, %v1040_v36  ;;  %2069 = vst.msk [vmem:[%s4755_s5 + $0xc8] sm:$0xf] %vm2018_vm5, %v2004_v5  ;;  %523 = vadd.xlane.f32.xlu2 %v522_v38  ;;  %2221 = vrsqrt.f32 %v4085_v57  ;;  %v1800_v50 = vadd.f32 %v3951_v24, %v1799_v42 }
 0x1c7   :  { %v4107_v19 = vadd.f32 1e-05, %v711_v17  ;;  %v1837_v23 = vadd.f32 %v3951_v24, %v1836_v40  ;;  %v444_v9 = vmul.f32 %v4091_v15, %v4091_v15  ;;  %v1056_v12 = vsel %vm4130_vm2, %v4013_v51, %v1052_v2 }
 0x1c8   :  { %v896_v3 = vsel %vm895_vm15, %v4017_v63, %v892_v62  ;;  %v1042_v4 = vmul.f32 %v4041_v32, %v1041_v56  ;;  %v1956_v16 = vpack.c.bf16 %v1800_v50, %v1800_v50  ;;  %v1513_v40 = vmul.f32 %v3753_v41, %v1445_v46 }
 0x1c9   :  { %v1446_v49 = vmul.f32 %v896_v3, %v3328_v1  ;;  %2223 = vrsqrt.f32 %v4107_v19  ;;  %v1921_v26 = vpop.f32.mrf.mxu3  ;;  %v1971_v54 = vpack.c.bf16 %v1837_v23, %v1837_v23  ;;  %v570_v43 = vsel %vm85_vm0, %v444_v9, 0.0 }
 0x1ca   :  { %v1046_v63 = vsel %vm4118_vm1, %v4041_v32, %v1042_v4  ;;  %v1922_v44 = vadd.f32 %v3951_v24, %v1921_v26  ;;  %v653_v45 = vpop.xlane.xlu1 %652  ;;  %2021 = vst.msk [vmem:[%s4755_s5 + $0x8] sm:$0xf] %vm2018_vm5, %v1956_v16  ;;  %571 = vadd.xlane.f32.xlu1 %v570_v43  ;;  %v1462_v2 = vmul.f32 %v1056_v12, %v3311_v55  ;;  %vm1233_vm3 = vweird.f32 %v4085_v57 }
 0x1cb   :  { %v1879_v60 = vpop.f32.mrf.mxu2  ;;  %v727_v32 = vmul.f32 %v653_v45, %v2581_v29  ;;  %v1801_v42 = vpop.f32.mrf.mxu0  ;;  %2036 = vst.msk [vmem:[%s4755_s5 + $0x44] sm:$0xf] %vm2018_vm5, %v1971_v54  ;;  %v1514_v17 = vmul.f32 %v3753_v41, %v1446_v49  ;;  %v1461_v38 = vmul.f32 %v1046_v63, %v3331_v8  ;;  %v1581_v58 = vadd.f32 %v3762_v14, %v1513_v40 }
 0x1cc   :  { %v2222_v34 = vpop.eup %2221  ;;  %v1880_v51 = vadd.f32 %v3951_v24, %v1879_v60  ;;  %v2005_v36 = vpack.c.bf16 %v1922_v44, %v1922_v44  ;;  %v656_v5 = vpop.xlane.xlu2 %655  ;;  %v1802_v20 = vadd.f32 %v3951_v24, %v1801_v42  ;;  %v1530_v44 = vmul.f32 %v3753_v41, %v1462_v2 }
 0x1cd   :  { %v1839_v18 = vpop.f32.mrf.mxu1  ;;  %v1228_v62 = vmul.f32 %v2222_v34, %v4085_v57  ;;  %v4154_v46 = vadd.f32 1e-05, %v727_v32  ;;  %v728_v56 = vmul.f32 %v656_v5, %v2581_v29  ;;  %v1582_v16 = vadd.f32 %v3762_v14, %v1514_v17 }
 0x1ce   :  { %v1988_v50 = vpack.c.bf16 %v1880_v51, %v1880_v51  ;;  %2070 = vst.msk [vmem:[%s4755_s5 + $0xcc] sm:$0xf] %vm2018_vm5, %v2005_v36  ;;  %v1957_v23 = vpack.c.bf16 %v1802_v20, %v1802_v20  ;;  %v1840_v3 = vadd.f32 %v3951_v24, %v1839_v18  ;;  %v1529_v63 = vmul.f32 %v3753_v41, %v1461_v38 }
 0x1cf   :  { %v2224_v4 = vpop.eup %2223  ;;  %v1229_v9 = vmul.f32 %v2222_v34, %v1228_v62  ;;  %2225 = vrsqrt.f32 %v4154_v46  ;;  %v4164_v8 = vadd.f32 1e-05, %v728_v56  ;;  %v1641_v54 = vpack.c.bf16 %v1582_v16, %v1581_v58 }
 0x1d0   :  { %v1218_v49 = vmul.f32 %v2224_v4, %v4107_v19  ;;  %2053 = vst.msk [vmem:[%s4755_s5 + $0x88] sm:$0xf] %vm2018_vm5, %v1988_v50  ;;  %v1972_v55 = vpack.c.bf16 %v1840_v3, %v1840_v3  ;;  %vm1234_vm4 = vweird.f32 %v2222_v34  ;;  %v1597_v43 = vadd.f32 %v3762_v14, %v1529_v63 }
 0x1d1   :  { %v1230_v26 = vmul.f32 0.5, %v1229_v9  ;;  %2227 = vrsqrt.f32 %v4164_v8  ;;  %2022 = vst.msk [vmem:[%s4755_s5 + $0xc] sm:$0xf] %vm2018_vm5, %v1957_v23  ;;  %2099 = vmatmul.msk.bf16.gmra.mxu0 %vm85_vm0, %v1641_v54  ;;  %v1598_v32 = vadd.f32 %v3762_v14, %v1530_v44  ;;  %vm1223_vm6 = vweird.f32 %v4107_v19  ;;  %vm1235_vm8 = vmor %vm1233_vm3, %vm1234_vm4 }
 0x1d2   :  { %v1219_v1 = vmul.f32 %v2224_v4, %v1218_v49  ;;  %2037 = vst.msk [vmem:[%s4755_s5 + $0x48] sm:$0xf] %vm2018_vm5, %v1972_v55  ;;  %vm1224_vm7 = vweird.f32 %v2224_v4  ;;  %vm1383_vm10 = vweird.f32 %v4154_v46  ;;  %vm1393_vm12 = vweird.f32 %v4164_v8 }
 0x1d3   :  { %v1231_v45 = vsub.f32 1.5, %v1230_v26  ;;  %v1881_v12 = vpop.f32.mrf.mxu2  ;;  %v1649_v17 = vpack.c.bf16 %v1598_v32, %v1597_v43  ;;  %vm1225_vm9 = vmor %vm1223_vm6, %vm1224_vm7 }
 0x1d4   :  { %v1220_v60 = vmul.f32 0.5, %v1219_v1  ;;  %v1882_v42 = vadd.f32 %v3951_v24, %v1881_v12 }
 0x1d5   :  { %v1841_v40 = vpop.f32.mrf.mxu1  ;;  %v2226_v51 = vpop.eup %2225  ;;  %v1232_v36 = vmul.f32 %v2222_v34, %v1231_v45  ;;  %2107 = vmatmul.msk.bf16.gmra.mxu1 %vm85_vm0, %v1649_v17 }
 0x1d6   :  { %v1842_v5 = vadd.f32 %v3951_v24, %v1841_v40  ;;  %v1221_v20 = vsub.f32 1.5, %v1220_v60  ;;  %v1378_v18 = vmul.f32 %v2226_v51, %v4154_v46  ;;  %v509_v38 = vpop.xlane.xlu0 %508  ;;  %v1989_v2 = vpack.c.bf16 %v1882_v42, %v1882_v42 }
 0x1d7   :  { %v2228_v62 = vpop.eup %2227  ;;  %v1236_v56 = vsel %vm1235_vm8, %v2222_v34, %v1232_v36  ;;  %v679_v23 = vmul.f32 %v509_v38, %v2581_v29  ;;  %vm1384_vm11 = vweird.f32 %v2226_v51 }
 0x1d8   :  { %v1973_v50 = vpack.c.bf16 %v1842_v5, %v1842_v5  ;;  %v1222_v3 = vmul.f32 %v2224_v4, %v1221_v20  ;;  %v1480_v9 = vmul.f32 %v1236_v56, %v3442_v10  ;;  %v1379_v49 = vmul.f32 %v2226_v51, %v1378_v18  ;;  %2054 = vst.msk [vmem:[%s4755_s5 + $0x8c] sm:$0xf] %vm2018_vm5, %v1989_v2  ;;  %vm1385_vm14 = vmor %vm1383_vm10, %vm1384_vm11 }
 0x1d9   :  { %v1388_v55 = vmul.f32 %v2228_v62, %v4164_v8  ;;  %v557_v57 = vpop.xlane.xlu2 %556  ;;  %v512_v34 = vpop.xlane.xlu1 %511  ;;  %v4206_v58 = vadd.f32 1e-05, %v679_v23  ;;  %vm1394_vm13 = vweird.f32 %v2228_v62 }
 0x1da   :  { %v1226_v10 = vsel %vm1225_vm9, %v2224_v4, %v1222_v3  ;;  %v1380_v16 = vmul.f32 0.5, %v1379_v49  ;;  %2038 = vst.msk [vmem:[%s4755_s5 + $0x4c] sm:$0xf] %vm2018_vm5, %v1973_v50  ;;  %v695_v19 = vmul.f32 %v557_v57, %v2581_v29  ;;  %v680_v1 = vmul.f32 %v512_v34, %v2581_v29  ;;  %vm1395_vm15 = vmor %vm1393_vm12, %vm1394_vm13 }
 0x1db   :  { %v1389_v26 = vmul.f32 %v2228_v62, %v1388_v55  ;;  %v1479_v63 = vmul.f32 %v1226_v10, %v3456_v31  ;;  %2229 = vrsqrt.f32 %v4206_v58  ;;  %v1548_v4 = vmul.f32 %v3753_v41, %v1480_v9 }
 0x1dc   :  { %v1381_v54 = vsub.f32 1.5, %v1380_v16  ;;  %v4216_v45 = vadd.f32 1e-05, %v695_v19  ;;  %v4220_v43 = vadd.f32 1e-05, %v680_v1  ;;  %vm903_vm1 = vweird.f32 %v4206_v58 }
 0x1dd   :  { %v1390_v44 = vmul.f32 0.5, %v1389_v26  ;;  %v1547_v12 = vmul.f32 %v3753_v41, %v1479_v63  ;;  %v1616_v40 = vadd.f32 %v3762_v14, %v1548_v4 }
 0x1de   :  { %v1382_v60 = vmul.f32 %v2226_v51, %v1381_v54  ;;  %2231 = vrsqrt.f32 %v4216_v45  ;;  %v560_v31 = vpop.xlane.xlu0 %559  ;;  %vm1063_vm2 = vweird.f32 %v4216_v45  ;;  %vm913_vm4 = vweird.f32 %v4220_v43 }
 0x1df   :  { %v1391_v32 = vsub.f32 1.5, %v1390_v44  ;;  %2233 = vrsqrt.f32 %v4220_v43  ;;  %v1615_v42 = vadd.f32 %v3762_v14, %v1547_v12  ;;  %v696_v18 = vmul.f32 %v560_v31, %v2581_v29 }
 0x1e0   :  { %v1386_v36 = vsel %vm1385_vm14, %v2226_v51, %v1382_v60  ;;  %v1884_v20 = vpop.f32.mrf.mxu2 }
 0x1e1   :  { %v1392_v5 = vmul.f32 %v2228_v62, %v1391_v32  ;;  %v2230_v17 = vpop.eup %2229  ;;  %v1495_v38 = vmul.f32 %v1386_v36, %v3473_v30  ;;  %v1885_v46 = vadd.f32 %v3951_v24, %v1884_v20  ;;  %v1658_v56 = vpack.c.bf16 %v1616_v40, %v1615_v42 }
 0x1e2   :  { %v898_v50 = vmul.f32 %v2230_v17, %v4206_v58  ;;  %v4236_v23 = vadd.f32 1e-05, %v696_v18  ;;  %vm904_vm3 = vweird.f32 %v2230_v17 }
 0x1e3   :  { %v1396_v2 = vsel %vm1395_vm15, %v2228_v62, %v1392_v5  ;;  %v1990_v3 = vpack.c.bf16 %v1885_v46, %v1885_v46  ;;  %2116 = vmatmul.msk.bf16.gmra.mxu2 %vm85_vm0, %v1658_v56  ;;  %v1563_v9 = vmul.f32 %v3753_v41, %v1495_v38  ;;  %v611_v34 = vpop.xlane.xlu1 %610  ;;  %vm905_vm7 = vmor %vm903_vm1, %vm904_vm3 }
 0x1e4   :  { %v1496_v51 = vmul.f32 %v1396_v2, %v3503_v53  ;;  %v4241_v49 = vpop.eup %2231  ;;  %v899_v30 = vmul.f32 %v2230_v17, %v898_v50  ;;  %2235 = vrsqrt.f32 %v4236_v23  ;;  %v1924_v8 = vpop.f32.mrf.mxu3  ;;  %v713_v54 = vmul.f32 %v611_v34, %v2581_v29 }
 0x1e5   :  { %v4244_v55 = vpop.eup %2233  ;;  %v1058_v62 = vmul.f32 %v4241_v49, %v4216_v45  ;;  %2055 = vst.msk [vmem:[%s4755_s5 + $0x90] sm:$0xf] %vm2018_vm5, %v1990_v3  ;;  %v1925_v53 = vadd.f32 %v3951_v24, %v1924_v8  ;;  %v1631_v26 = vadd.f32 %v3762_v14, %v1563_v9  ;;  %vm1064_vm6 = vweird.f32 %v4241_v49 }
 0x1e6   :  { %v1564_v57 = vmul.f32 %v3753_v41, %v1496_v51  ;;  %v908_v10 = vmul.f32 %v4244_v55, %v4220_v43  ;;  %v900_v16 = vmul.f32 0.5, %v899_v30  ;;  %v4268_v31 = vadd.f32 1e-05, %v713_v54  ;;  %vm4295_vm9 = vmor %vm1063_vm2, %vm1064_vm6 }
 0x1e7   :  { %v1059_v19 = vmul.f32 %v4241_v49, %v1058_v62  ;;  %v2006_v63 = vpack.c.bf16 %v1925_v53, %v1925_v53  ;;  %vm914_vm8 = vweird.f32 %v4244_v55  ;;  %vm1073_vm11 = vweird.f32 %v4236_v23 }
 0x1e8   :  { %v1632_v1 = vadd.f32 %v3762_v14, %v1564_v57  ;;  %v909_v41 = vmul.f32 %v4244_v55, %v908_v10  ;;  %v901_v44 = vsub.f32 1.5, %v900_v16  ;;  %v1886_v4 = vpop.f32.mrf.mxu2  ;;  %v614_v14 = vpop.xlane.xlu2 %613  ;;  %2237 = vrsqrt.f32 %v4268_v31  ;;  %vm915_vm10 = vmor %vm913_vm4, %vm914_vm8 }
 0x1e9   :  { %v1060_v12 = vmul.f32 0.5, %v1059_v19  ;;  %v1887_v60 = vadd.f32 %v3951_v24, %v1886_v4  ;;  %2071 = vst.msk [vmem:[%s4755_s5 + $0xd0] sm:$0xf] %vm2018_vm5, %v2006_v63  ;;  %v714_v5 = vmul.f32 %v614_v14, %v2581_v29  ;;  %vm1243_vm14 = vweird.f32 %v4268_v31 }
 0x1ea   :  { %v1666_v32 = vpack.c.bf16 %v1632_v1, %v1631_v26  ;;  %v4270_v42 = vpop.eup %2235  ;;  %v910_v40 = vmul.f32 0.5, %v909_v41  ;;  %v902_v36 = vmul.f32 %v2230_v17, %v901_v44  ;;  %v4331_v44 = vld [vmem:[%s4751_s1] ss:$0 sm:$0xff] }
 0x1eb   :  { %v1061_v20 = vsub.f32 1.5, %v1060_v12  ;;  %v1068_v18 = vmul.f32 %v4270_v42, %v4236_v23  ;;  %v1991_v38 = vpack.c.bf16 %v1887_v60, %v1887_v60  ;;  %v662_v9 = vpop.xlane.xlu1 %661  ;;  %v659_v30 = vpop.xlane.xlu0 %658  ;;  %v4300_v8 = vadd.f32 1e-05, %v714_v5 }
 0x1ec   :  { %2124 = vmatmul.msk.bf16.gmra.mxu3 %vm85_vm0, %v1666_v32  ;;  %v911_v46 = vsub.f32 1.5, %v910_v40  ;;  %v906_v56 = vsel %vm905_vm7, %v2230_v17, %v902_v36  ;;  %v1926_v2 = vpop.f32.mrf.mxu3  ;;  %v730_v62 = vmul.f32 %v662_v9, %v2581_v29  ;;  %v729_v53 = vmul.f32 %v659_v30, %v2581_v29  ;;  %v4354_v36 = vld [vmem:[%s4752_s2] ss:$0 sm:$0xff] }
 0x1ed   :  { %v1062_v50 = vmul.f32 %v4241_v49, %v1061_v20  ;;  %v1447_v51 = vmul.f32 %v906_v56, %v3571_v7  ;;  %v1069_v58 = vmul.f32 %v4270_v42, %v1068_v18  ;;  %2056 = vst.msk [vmem:[%s4755_s5 + $0x94] sm:$0xf] %vm2018_vm5, %v1991_v38  ;;  %v1927_v3 = vadd.f32 %v3951_v24, %v1926_v2  ;;  %v1804_v57 = vpop.f32.mrf.mxu0 }
 0x1ee   :  { %v912_v7 = vmul.f32 %v4244_v55, %v911_v46  ;;  %v1844_v34 = vpop.f32.mrf.mxu1  ;;  %v1805_v16 = vadd.f32 %v3951_v24, %v1804_v57  ;;  %vm1074_vm12 = vweird.f32 %v4270_v42  ;;  %2239 = vrsqrt.f32 %v4300_v8  ;;  %v4323_v41 = vpop.eup %2237 }
 0x1ef   :  { %v1070_v45 = vmul.f32 0.5, %v1069_v58  ;;  %v2007_v10 = vpack.c.bf16 %v1927_v3, %v1927_v3  ;;  %v1066_v26 = vsel %vm4295_vm9, %v4241_v49, %v1062_v50  ;;  %v4321_v1 = vadd.f32 1e-05, %v730_v62  ;;  %vm1075_vm13 = vmor %vm1073_vm11, %vm1074_vm12 }
 0x1f0   :  { %v916_v19 = vsel %vm915_vm10, %v4244_v55, %v912_v7  ;;  %v1958_v54 = vpack.c.bf16 %v1805_v16, %v1805_v16  ;;  %v4325_v49 = vadd.f32 1e-05, %v729_v53  ;;  %v1845_v55 = vadd.f32 %v3951_v24, %v1844_v34 }
 0x1f1   :  { %v1448_v63 = vmul.f32 %v916_v19, %v3583_v37  ;;  %v1071_v43 = vsub.f32 1.5, %v1070_v45  ;;  %2072 = vst.msk [vmem:[%s4755_s5 + $0xd4] sm:$0xf] %vm2018_vm5, %v2007_v10  ;;  %v1515_v37 = vmul.f32 %v4331_v44, %v1447_v51  ;;  %v1463_v4 = vmul.f32 %v1066_v26, %v3566_v21 }
 0x1f2   :  { %v1238_v60 = vmul.f32 %v4323_v41, %v4268_v31  ;;  %2241 = vrsqrt.f32 %v4321_v1  ;;  %2023 = vst.msk [vmem:[%s4755_s5 + $0x10] sm:$0xf] %vm2018_vm5, %v1958_v54  ;;  %v1974_v21 = vpack.c.bf16 %v1845_v55, %v1845_v55  ;;  %vm1244_vm15 = vweird.f32 %v4323_v41 }
 0x1f3   :  { %v1072_v12 = vmul.f32 %v4270_v42, %v1071_v43  ;;  %2243 = vrsqrt.f32 %v4325_v49  ;;  %v1516_v40 = vmul.f32 %v4331_v44, %v1448_v63  ;;  %v1583_v5 = vadd.f32 %v4354_v36, %v1515_v37  ;;  %vm1245_vm2 = vmor %vm1243_vm14, %vm1244_vm15 }
 0x1f4   :  { %v1239_v14 = vmul.f32 %v4323_v41, %v1238_v60  ;;  %v2240_v20 = vpop.eup %2239  ;;  %2039 = vst.msk [vmem:[%s4755_s5 + $0x50] sm:$0xf] %vm2018_vm5, %v1974_v21  ;;  %v1531_v2 = vmul.f32 %v4331_v44, %v1463_v4  ;;  %vm1253_vm1 = vweird.f32 %v4300_v8  ;;  %vm1413_vm4 = vweird.f32 %v4321_v1 }
 0x1f5   :  { %v1076_v32 = vsel %vm1075_vm13, %v4270_v42, %v1072_v12  ;;  %v1806_v42 = vpop.f32.mrf.mxu0  ;;  %v1248_v46 = vmul.f32 %v2240_v20, %v4300_v8  ;;  %v1584_v56 = vadd.f32 %v4354_v36, %v1516_v40  ;;  %vm1254_vm3 = vweird.f32 %v2240_v20 }
 0x1f6   :  { %v1464_v23 = vmul.f32 %v1076_v32, %v3618_v27  ;;  %v1846_v18 = vpop.f32.mrf.mxu1  ;;  %v1240_v38 = vmul.f32 0.5, %v1239_v14  ;;  %v1807_v50 = vadd.f32 %v3951_v24, %v1806_v42  ;;  %v518_v17 = vpop.xlane.xlu0 %517  ;;  %v1599_v16 = vadd.f32 %v4354_v36, %v1531_v2  ;;  %vm1255_vm6 = vmor %vm1253_vm1, %vm1254_vm3 }
 0x1f7   :  { %v1847_v27 = vadd.f32 %v3951_v24, %v1846_v18  ;;  %v1249_v9 = vmul.f32 %v2240_v20, %v1248_v46  ;;  %v1642_v30 = vpack.c.bf16 %v1584_v56, %v1583_v5  ;;  %v682_v54 = vmul.f32 %v518_v17, %v2581_v29 }
 0x1f8   :  { %v1532_v51 = vmul.f32 %v4331_v44, %v1464_v23  ;;  %v4369_v58 = vpop.eup %2241  ;;  %v1241_v3 = vsub.f32 1.5, %v1240_v38  ;;  %v1959_v53 = vpack.c.bf16 %v1807_v50, %v1807_v50  ;;  %vm1403_vm8 = vweird.f32 %v4325_v49 }
 0x1f9   :  { %v2244_v7 = vpop.eup %2243  ;;  %v1408_v62 = vmul.f32 %v4369_v58, %v4321_v1  ;;  %v1975_v57 = vpack.c.bf16 %v1847_v27, %v1847_v27  ;;  %v1250_v45 = vmul.f32 0.5, %v1249_v9  ;;  %2100 = vmatmul.msk.bf16.gmra.mxu0 %vm85_vm0, %v1642_v30  ;;  %v4400_v40 = vadd.f32 1e-05, %v682_v54 }
 0x1fa   :  { %v1242_v34 = vmul.f32 %v4323_v41, %v1241_v3  ;;  %v1398_v10 = vmul.f32 %v2244_v7, %v4325_v49  ;;  %v515_v26 = vpop.xlane.xlu2 %514  ;;  %2024 = vst.msk [vmem:[%s4755_s5 + $0x14] sm:$0xf] %vm2018_vm5, %v1959_v53  ;;  %v1600_v63 = vadd.f32 %v4354_v36, %v1532_v51  ;;  %vm1414_vm7 = vweird.f32 %v4369_v58 }
 0x1fb   :  { %v1409_v19 = vmul.f32 %v4369_v58, %v1408_v62  ;;  %v681_v43 = vmul.f32 %v515_v26, %v2581_v29  ;;  %v1251_v37 = vsub.f32 1.5, %v1250_v45  ;;  %2040 = vst.msk [vmem:[%s4755_s5 + $0x54] sm:$0xf] %vm2018_vm5, %v1975_v57  ;;  %vm1404_vm9 = vweird.f32 %v2244_v7  ;;  %vm1415_vm10 = vmor %vm1413_vm4, %vm1414_vm7 }
 0x1fc   :  { %v1246_v55 = vsel %vm1245_vm2, %v4323_v41, %v1242_v34  ;;  %v1399_v4 = vmul.f32 %v2244_v7, %v1398_v10  ;;  %v1650_v12 = vpack.c.bf16 %v1600_v63, %v1599_v16  ;;  %vm1405_vm11 = vmor %vm1403_vm8, %vm1404_vm9  ;;  %vm933_vm13 = vweird.f32 %v4400_v40 }
 0x1fd   :  { %v1410_v31 = vmul.f32 0.5, %v1409_v19  ;;  %v4397_v60 = vadd.f32 1e-05, %v681_v43  ;;  %v1481_v21 = vmul.f32 %v1246_v55, %v3656_v6  ;;  %v1252_v32 = vmul.f32 %v2240_v20, %v1251_v37  ;;  %v563_v5 = vpop.xlane.xlu1 %562 }
 0x1fe   :  { %v1400_v14 = vmul.f32 0.5, %v1399_v4  ;;  %2108 = vmatmul.msk.bf16.gmra.mxu1 %vm85_vm0, %v1650_v12  ;;  %v697_v18 = vmul.f32 %v563_v5, %v2581_v29 }
 0x1ff   :  { %v1411_v41 = vsub.f32 1.5, %v1410_v31  ;;  %2245 = vrsqrt.f32 %v4397_v60  ;;  %v1256_v23 = vsel %vm1255_vm6, %v2240_v20, %v1252_v32  ;;  %v1549_v56 = vmul.f32 %v4331_v44, %v1481_v21 }
 0x200   :  { %v1401_v42 = vsub.f32 1.5, %v1400_v14  ;;  %2247 = vrsqrt.f32 %v4400_v40  ;;  %v1482_v6 = vmul.f32 %v1256_v23, %v3707_v52  ;;  %v4418_v20 = vadd.f32 1e-05, %v697_v18 }
 0x201   :  { %v1412_v8 = vmul.f32 %v4369_v58, %v1411_v41  ;;  %v1617_v62 = vadd.f32 %v4354_v36, %v1549_v56  ;;  %vm923_vm12 = vweird.f32 %v4397_v60 }
 0x202   :  { %v1402_v38 = vmul.f32 %v2244_v7, %v1401_v42  ;;  %v566_v46 = vpop.xlane.xlu2 %565  ;;  %v1550_v50 = vmul.f32 %v4331_v44, %v1482_v6  ;;  %2249 = vrsqrt.f32 %v4418_v20  ;;  %vm1083_vm2 = vweird.f32 %v4418_v20 }
 0x203   :  { %v1416_v2 = vsel %vm1415_vm10, %v4369_v58, %v1412_v8  ;;  %v698_v52 = vmul.f32 %v566_v46, %v2581_v29 }
 0x204   :  { %v1406_v27 = vsel %vm1405_vm11, %v2244_v7, %v1402_v38  ;;  %v1889_v51 = vpop.f32.mrf.mxu2  ;;  %v1498_v1 = vmul.f32 %v1416_v2, %v3690_v48  ;;  %v1618_v53 = vadd.f32 %v4354_v36, %v1550_v50 }
 0x205   :  { %v2246_v3 = vpop.eup %2245  ;;  %v1497_v9 = vmul.f32 %v1406_v27, %v3715_v47  ;;  %v1890_v30 = vadd.f32 %v3951_v24, %v1889_v51  ;;  %v4427_v17 = vadd.f32 1e-05, %v698_v52 }
 0x206   :  { %v2248_v58 = vpop.eup %2247  ;;  %v918_v49 = vmul.f32 %v2246_v3, %v4397_v60  ;;  %v1659_v47 = vpack.c.bf16 %v1618_v53, %v1617_v62  ;;  %v1566_v10 = vmul.f32 %v4331_v44, %v1498_v1  ;;  %vm924_vm14 = vweird.f32 %v2246_v3 }
 0x207   :  { %v928_v7 = vmul.f32 %v2248_v58, %v4400_v40  ;;  %v1992_v57 = vpack.c.bf16 %v1890_v30, %v1890_v30  ;;  %v1565_v48 = vmul.f32 %v4331_v44, %v1497_v9  ;;  %2251 = vrsqrt.f32 %v4427_v17  ;;  %vm925_vm1 = vmor %vm923_vm12, %vm924_vm14 }
 0x208   :  { %v919_v34 = vmul.f32 %v2246_v3, %v918_v49  ;;  %2117 = vmatmul.msk.bf16.gmra.mxu2 %vm85_vm0, %v1659_v47  ;;  %v4441_v19 = vpop.eup %2249  ;;  %v1634_v54 = vadd.f32 %v4354_v36, %v1566_v10  ;;  %vm934_vm15 = vweird.f32 %v2248_v58  ;;  %vm1093_vm7 = vweird.f32 %v4427_v17 }
 0x209   :  { %v929_v45 = vmul.f32 %v2248_v58, %v928_v7  ;;  %2057 = vst.msk [vmem:[%s4755_s5 + $0x98] sm:$0xf] %vm2018_vm5, %v1992_v57  ;;  %v1633_v16 = vadd.f32 %v4354_v36, %v1565_v48  ;;  %v1078_v37 = vmul.f32 %v4441_v19, %v4418_v20  ;;  %vm935_vm3 = vmor %vm933_vm13, %vm934_vm15  ;;  %vm1084_vm4 = vweird.f32 %v4441_v19 }
 0x20a   :  { %v920_v26 = vmul.f32 0.5, %v919_v34  ;;  %v1929_v43 = vpop.f32.mrf.mxu3  ;;  %vm1085_vm6 = vmor %vm1083_vm2, %vm1084_vm4 }
 0x20b   :  { %v930_v63 = vmul.f32 0.5, %v929_v45  ;;  %v1930_v31 = vadd.f32 %v3951_v24, %v1929_v43  ;;  %v1667_v32 = vpack.c.bf16 %v1634_v54, %v1633_v16  ;;  %v1079_v5 = vmul.f32 %v4441_v19, %v1078_v37 }
 0x20c   :  { %v921_v55 = vsub.f32 1.5, %v920_v26  ;;  %v1891_v4 = vpop.f32.mrf.mxu2  ;;  %v665_v42 = vpop.xlane.xlu2 %664 }
 0x20d   :  { %v931_v12 = vsub.f32 1.5, %v930_v63  ;;  %v1892_v21 = vadd.f32 %v3951_v24, %v1891_v4  ;;  %v2252_v14 = vpop.eup %2251  ;;  %v2008_v23 = vpack.c.bf16 %v1930_v31, %v1930_v31  ;;  %2125 = vmatmul.msk.bf16.gmra.mxu3 %vm85_vm0, %v1667_v32  ;;  %v617_v46 = vpop.xlane.xlu0 %616  ;;  %v1080_v2 = vmul.f32 0.5, %v1079_v5 }
 0x20e   :  { %v922_v41 = vmul.f32 %v2246_v3, %v921_v55  ;;  %v1088_v8 = vmul.f32 %v2252_v14, %v4427_v17  ;;  %v620_v38 = vpop.xlane.xlu1 %619  ;;  %v731_v60 = vmul.f32 %v665_v42, %v2581_v29  ;;  %v715_v40 = vmul.f32 %v617_v46, %v2581_v29 }
 0x20f   :  { %v932_v6 = vmul.f32 %v2248_v58, %v931_v12  ;;  %v1993_v18 = vpack.c.bf16 %v1892_v21, %v1892_v21  ;;  %2073 = vst.msk [vmem:[%s4755_s5 + $0xd8] sm:$0xf] %vm2018_vm5, %v2008_v23  ;;  %v716_v52 = vmul.f32 %v620_v38, %v2581_v29  ;;  %vm1094_vm8 = vweird.f32 %v2252_v14 }
 0x210   :  { %v926_v56 = vsel %vm925_vm1, %v2246_v3, %v922_v41  ;;  %v1089_v51 = vmul.f32 %v2252_v14, %v1088_v8  ;;  %v1081_v3 = vsub.f32 1.5, %v1080_v2  ;;  %v4472_v1 = vadd.f32 1e-05, %v731_v60  ;;  %vm1095_vm9 = vmor %vm1093_vm7, %vm1094_vm8 }
 0x211   :  { %v1449_v50 = vmul.f32 %v926_v56, %v3801_v13  ;;  %v936_v27 = vsel %vm935_vm3, %v2248_v58, %v932_v6  ;;  %2058 = vst.msk [vmem:[%s4755_s5 + $0x9c] sm:$0xf] %vm2018_vm5, %v1993_v18  ;;  %v4474_v9 = vadd.f32 1e-05, %v716_v52  ;;  %v4477_v58 = vadd.f32 1e-05, %v715_v40  ;;  %v1809_v62 = vpop.f32.mrf.mxu0 }
 0x212   :  { %v1450_v30 = vmul.f32 %v936_v27, %v3785_v39  ;;  %v1090_v49 = vmul.f32 0.5, %v1089_v51  ;;  %v1931_v13 = vpop.f32.mrf.mxu3  ;;  %v1082_v7 = vmul.f32 %v4441_v19, %v1081_v3  ;;  %2253 = vrsqrt.f32 %v4472_v1 }
 0x213   :  { %v1517_v53 = vmul.f32 %v4331_v44, %v1449_v50  ;;  %v1932_v57 = vadd.f32 %v3951_v24, %v1931_v13  ;;  %2255 = vrsqrt.f32 %v4474_v9  ;;  %v4492_v24 = vld [vmem:[%s4754_s4] ss:$0 sm:$0xff]  ;;  %vm1423_vm10 = vweird.f32 %v4472_v1 }
 0x214   :  { %v1091_v48 = vsub.f32 1.5, %v1090_v49  ;;  %v1086_v39 = vsel %vm1085_vm6, %v4441_v19, %v1082_v7  ;;  %2257 = vrsqrt.f32 %v4477_v58  ;;  %v1810_v47 = vadd.f32 %v4492_v24, %v1809_v62 }
 0x215   :  { %v2009_v34 = vpack.c.bf16 %v1932_v57, %v1932_v57  ;;  %v1465_v20 = vmul.f32 %v1086_v39, %v3827_v0  ;;  %v1518_v17 = vmul.f32 %v4331_v44, %v1450_v30  ;;  %v1585_v10 = vadd.f32 %v4354_v36, %v1517_v53  ;;  %v668_v16 = vpop.xlane.xlu0 %667 }
 0x216   :  { %v1092_v45 = vmul.f32 %v2252_v14, %v1091_v48  ;;  %v1960_v26 = vpack.c.bf16 %v1810_v47, %v1810_v47  ;;  %v732_v19 = vmul.f32 %v668_v16, %v2581_v29  ;;  %vm1273_vm11 = vweird.f32 %v4474_v9 }
 0x217   :  { %2074 = vst.msk [vmem:[%s4755_s5 + $0xdc] sm:$0xf] %vm2018_vm5, %v2009_v34  ;;  %v1849_v63 = vpop.f32.mrf.mxu1  ;;  %v1586_v54 = vadd.f32 %v4354_v36, %v1518_v17  ;;  %v1533_v31 = vmul.f32 %v4331_v44, %v1465_v20  ;;  %vm1263_vm14 = vweird.f32 %v4477_v58 }
 0x218   :  { %v1096_v43 = vsel %vm1095_vm9, %v2252_v14, %v1092_v45  ;;  %v1850_v0 = vadd.f32 %v4492_v24, %v1849_v63  ;;  %v4505_v55 = vpop.eup %2253  ;;  %2025 = vst.msk [vmem:[%s4755_s5 + $0x18] sm:$0xf] %vm2018_vm5, %v1960_v26  ;;  %v4512_v4 = vadd.f32 1e-05, %v732_v19 }
 0x219   :  { %v1466_v37 = vmul.f32 %v1096_v43, %v3854_v25  ;;  %v2256_v12 = vpop.eup %2255  ;;  %v1418_v21 = vmul.f32 %v4505_v55, %v4472_v1  ;;  %v1643_v32 = vpack.c.bf16 %v1586_v54, %v1585_v10  ;;  %v1811_v14 = vpop.f32.mrf.mxu0  ;;  %v1601_v38 = vadd.f32 %v4354_v36, %v1533_v31 }
 0x21a   :  { %v1976_v41 = vpack.c.bf16 %v1850_v0, %v1850_v0  ;;  %v2258_v5 = vpop.eup %2257  ;;  %v1268_v23 = vmul.f32 %v2256_v12, %v4474_v9  ;;  %2259 = vrsqrt.f32 %v4512_v4  ;;  %v1812_v6 = vadd.f32 %v4492_v24, %v1811_v14 }
 0x21b   :  { %v1419_v25 = vmul.f32 %v4505_v55, %v1418_v21  ;;  %v1258_v42 = vmul.f32 %v2258_v5, %v4477_v58  ;;  %2101 = vmatmul.msk.bf16.gmra.mxu0 %vm85_vm0, %v1643_v32  ;;  %v1534_v18 = vmul.f32 %v4331_v44, %v1466_v37  ;;  %vm1424_vm12 = vweird.f32 %v4505_v55 }
 0x21c   :  { %2041 = vst.msk [vmem:[%s4755_s5 + $0x58] sm:$0xf] %vm2018_vm5, %v1976_v41  ;;  %v1269_v8 = vmul.f32 %v2256_v12, %v1268_v23  ;;  %v1961_v2 = vpack.c.bf16 %v1812_v6, %v1812_v6  ;;  %vm1274_vm13 = vweird.f32 %v2256_v12  ;;  %vm1264_vm15 = vweird.f32 %v2258_v5  ;;  %vm4543_vm1 = vmor %vm1423_vm10, %vm1424_vm12 }
 0x21d   :  { %v1420_v46 = vmul.f32 0.5, %v1419_v25  ;;  %v1259_v56 = vmul.f32 %v2258_v5, %v1258_v42  ;;  %v1602_v52 = vadd.f32 %v4354_v36, %v1534_v18  ;;  %vm1275_vm2 = vmor %vm1273_vm11, %vm1274_vm13  ;;  %vm1433_vm4 = vweird.f32 %v4512_v4 }
 0x21e   :  { %v1270_v60 = vmul.f32 0.5, %v1269_v8  ;;  %2026 = vst.msk [vmem:[%s4755_s5 + $0x1c] sm:$0xf] %vm2018_vm5, %v1961_v2  ;;  %vm1265_vm3 = vmor %vm1263_vm14, %vm1264_vm15 }
 0x21f   :  { %v1851_v50 = vpop.f32.mrf.mxu1  ;;  %v1421_v27 = vsub.f32 1.5, %v1420_v46  ;;  %v1260_v51 = vmul.f32 0.5, %v1259_v56  ;;  %v1651_v49 = vpack.c.bf16 %v1602_v52, %v1601_v38 }
 0x220   :  { %v1852_v40 = vadd.f32 %v4492_v24, %v1851_v50  ;;  %v2260_v3 = vpop.eup %2259  ;;  %v1271_v30 = vsub.f32 1.5, %v1270_v60 }
 0x221   :  { %v1422_v13 = vmul.f32 %v4505_v55, %v1421_v27  ;;  %v1261_v62 = vsub.f32 1.5, %v1260_v51  ;;  %v1428_v53 = vmul.f32 %v2260_v3, %v4512_v4  ;;  %2109 = vmatmul.msk.bf16.gmra.mxu1 %vm85_vm0, %v1651_v49  ;;  %vm1434_vm6 = vweird.f32 %v2260_v3 }
 0x222   :  { %v1272_v57 = vmul.f32 %v2256_v12, %v1271_v30  ;;  %v1977_v48 = vpack.c.bf16 %v1852_v40, %v1852_v40  ;;  %vm1435_vm7 = vmor %vm1433_vm4, %vm1434_vm6 }
 0x223   :  { %v1262_v58 = vmul.f32 %v2258_v5, %v1261_v62  ;;  %v1429_v39 = vmul.f32 %v2260_v3, %v1428_v53  ;;  %v1426_v1 = vsel %vm4543_vm1, %v4505_v55, %v1422_v13 }
 0x224   :  { %v1276_v34 = vsel %vm1275_vm2, %v2256_v12, %v1272_v57  ;;  %2042 = vst.msk [vmem:[%s4755_s5 + $0x5c] sm:$0xf] %vm2018_vm5, %v1977_v48  ;;  %v1499_v16 = vmul.f32 %v1426_v1, %v3899_v61 }
 0x225   :  { %v1484_v47 = vmul.f32 %v1276_v34, %v3906_v35  ;;  %v1266_v20 = vsel %vm1265_vm3, %v2258_v5, %v1262_v58  ;;  %v1430_v45 = vmul.f32 0.5, %v1429_v39 }
 0x226   :  { %v1483_v9 = vmul.f32 %v1266_v20, %v3914_v28  ;;  %v1567_v4 = vmul.f32 %v4331_v44, %v1499_v16 }
 0x227   :  { %v1431_v17 = vsub.f32 1.5, %v1430_v45  ;;  %v1552_v10 = vmul.f32 %v4331_v44, %v1484_v47 }
 0x228   :  { %v1551_v26 = vmul.f32 %v4331_v44, %v1483_v9  ;;  %v1635_v32 = vadd.f32 %v4354_v36, %v1567_v4 }
 0x229   :  { %v1432_v19 = vmul.f32 %v2260_v3, %v1431_v17  ;;  %v1620_v63 = vadd.f32 %v4354_v36, %v1552_v10 }
 0x22a   :  { %v1619_v35 = vadd.f32 %v4354_v36, %v1551_v26 }
 0x22b   :  { %v1436_v54 = vsel %vm1435_vm7, %v2260_v3, %v1432_v19 }
 0x22c   :  { %v1500_v0 = vmul.f32 %v1436_v54, %v3946_v33  ;;  %v1660_v37 = vpack.c.bf16 %v1620_v63, %v1619_v35 }
 0x22d   :  { %v1934_v43 = vpop.f32.mrf.mxu3 }
 0x22e   :  { %v1935_v28 = vadd.f32 %v4492_v24, %v1934_v43  ;;  %v1894_v55 = vpop.f32.mrf.mxu2  ;;  %2118 = vmatmul.msk.bf16.gmra.mxu2 %vm85_vm0, %v1660_v37  ;;  %v1568_v12 = vmul.f32 %v4331_v44, %v1500_v0 }
 0x22f   :  { %v1895_v61 = vadd.f32 %v4492_v24, %v1894_v55 }
 0x230   :  { %v2010_v31 = vpack.c.bf16 %v1935_v28, %v1935_v28  ;;  %v1636_v33 = vadd.f32 %v4354_v36, %v1568_v12 }
 0x231   :  { %v1994_v21 = vpack.c.bf16 %v1895_v61, %v1895_v61 }
 0x232   :  { %2075 = vst.msk [vmem:[%s4755_s5 + $0xe0] sm:$0xf] %vm2018_vm5, %v2010_v31  ;;  %v1668_v5 = vpack.c.bf16 %v1636_v33, %v1635_v32 }
 0x233   :  { %2059 = vst.msk [vmem:[%s4755_s5 + $0xa0] sm:$0xf] %vm2018_vm5, %v1994_v21 }
 0x234   :  { %2126 = vmatmul.msk.bf16.gmra.mxu3 %vm85_vm0, %v1668_v5 }
 0x235   :  { %v521_v14 = vpop.xlane.xlu1 %520  ;;  %v1936_v41 = vpop.f32.mrf.mxu3 }
 0x236   :  { %v683_v23 = vmul.f32 %v521_v14, %v2581_v29  ;;  %v1937_v25 = vadd.f32 %v4492_v24, %v1936_v41  ;;  %v1896_v6 = vpop.f32.mrf.mxu2 }
 0x237   :  { %v569_v42 = vpop.xlane.xlu0 %568  ;;  %v1897_v38 = vadd.f32 %v4492_v24, %v1896_v6 }
 0x238   :  { %v747_v8 = vadd.f32 1e-05, %v683_v23  ;;  %v699_v18 = vmul.f32 %v569_v42, %v2581_v29  ;;  %v2011_v46 = vpack.c.bf16 %v1937_v25, %v1937_v25 }
 0x239   :  { %v524_v56 = vpop.xlane.xlu2 %523  ;;  %v1995_v52 = vpack.c.bf16 %v1897_v38, %v1897_v38 }
 0x23a   :  { %v684_v2 = vmul.f32 %v524_v56, %v2581_v29  ;;  %2261 = vrsqrt.f32 %v747_v8  ;;  %v763_v60 = vadd.f32 1e-05, %v699_v18  ;;  %2076 = vst.msk [vmem:[%s4755_s5 + $0xe4] sm:$0xf] %vm2018_vm5, %v2011_v46  ;;  %vm943_vm9 = vweird.f32 %v747_v8 }
 0x23b   :  { %2060 = vst.msk [vmem:[%s4755_s5 + $0xa4] sm:$0xf] %vm2018_vm5, %v1995_v52 }
 0x23c   :  { %v748_v50 = vadd.f32 1e-05, %v684_v2  ;;  %2263 = vrsqrt.f32 %v763_v60  ;;  %vm1103_vm12 = vweird.f32 %v763_v60 }
 0x23d   :  { %v572_v27 = vpop.xlane.xlu1 %571 }
 0x23e   :  { %2265 = vrsqrt.f32 %v748_v50  ;;  %v700_v51 = vmul.f32 %v572_v27, %v2581_v29  ;;  %vm953_vm10 = vweird.f32 %v748_v50 }
 0x240   :  { %v2262_v40 = vpop.eup %2261  ;;  %v764_v30 = vadd.f32 1e-05, %v700_v51 }
 0x241   :  { %v938_v3 = vmul.f32 %v2262_v40, %v747_v8  ;;  %vm944_vm8 = vweird.f32 %v2262_v40 }
 0x242   :  { %v2264_v49 = vpop.eup %2263  ;;  %2267 = vrsqrt.f32 %v764_v30  ;;  %vm945_vm11 = vmor %vm943_vm9, %vm944_vm8  ;;  %vm1113_vm3 = vweird.f32 %v764_v30 }
 0x243   :  { %v939_v13 = vmul.f32 %v2262_v40, %v938_v3  ;;  %v1098_v62 = vmul.f32 %v2264_v49, %v763_v60  ;;  %vm1104_vm13 = vweird.f32 %v2264_v49 }
 0x244   :  { %v2266_v53 = vpop.eup %2265  ;;  %vm1105_vm15 = vmor %vm1103_vm12, %vm1104_vm13 }
 0x245   :  { %v948_v7 = vmul.f32 %v2266_v53, %v748_v50  ;;  %v940_v57 = vmul.f32 0.5, %v939_v13  ;;  %v1099_v48 = vmul.f32 %v2264_v49, %v1098_v62  ;;  %vm954_vm14 = vweird.f32 %v2266_v53 }
 0x246   :  { %vm955_vm1 = vmor %vm953_vm10, %vm954_vm14 }
 0x247   :  { %v949_v58 = vmul.f32 %v2266_v53, %v948_v7  ;;  %v941_v39 = vsub.f32 1.5, %v940_v57  ;;  %v1100_v34 = vmul.f32 0.5, %v1099_v48 }
 0x248   :  { %v2268_v1 = vpop.eup %2267 }
 0x249   :  { %v950_v47 = vmul.f32 0.5, %v949_v58  ;;  %v942_v20 = vmul.f32 %v2262_v40, %v941_v39  ;;  %v1101_v29 = vsub.f32 1.5, %v1100_v34  ;;  %v1108_v45 = vmul.f32 %v2268_v1, %v764_v30 }
 0x24a   :  { %vm1114_vm2 = vweird.f32 %v2268_v1 }
 0x24b   :  { %v951_v9 = vsub.f32 1.5, %v950_v47  ;;  %v946_v17 = vsel %vm945_vm11, %v2262_v40, %v942_v20  ;;  %v1102_v10 = vmul.f32 %v2264_v49, %v1101_v29  ;;  %v1109_v26 = vmul.f32 %v2268_v1, %v1108_v45  ;;  %vm1115_vm4 = vmor %vm1113_vm3, %vm1114_vm2 }
 0x24c   :  { %v1451_v16 = vmul.f32 %v946_v17, %v4029_v11 }
 0x24d   :  { %v952_v19 = vmul.f32 %v2266_v53, %v951_v9  ;;  %v1106_v63 = vsel %vm1105_vm15, %v2264_v49, %v1102_v10  ;;  %v1110_v35 = vmul.f32 0.5, %v1109_v26 }
 0x24e   :  { %v1519_v43 = vmul.f32 %v4331_v44, %v1451_v16  ;;  %v1467_v55 = vmul.f32 %v1106_v63, %v4034_v59  ;;  %v1814_v37 = vpop.f32.mrf.mxu0 }
 0x24f   :  { %v956_v54 = vsel %vm955_vm1, %v2266_v53, %v952_v19  ;;  %v1111_v0 = vsub.f32 1.5, %v1110_v35  ;;  %v1815_v11 = vadd.f32 %v4492_v24, %v1814_v37 }
 0x250   :  { %v1452_v28 = vmul.f32 %v956_v54, %v4069_v22  ;;  %v1587_v31 = vadd.f32 %v4354_v36, %v1519_v43  ;;  %v1535_v14 = vmul.f32 %v4331_v44, %v1467_v55 }
 0x251   :  { %v1112_v4 = vmul.f32 %v2268_v1, %v1111_v0  ;;  %v1962_v21 = vpack.c.bf16 %v1815_v11, %v1815_v11 }
 0x252   :  { %v1520_v61 = vmul.f32 %v4331_v44, %v1452_v28  ;;  %v1854_v33 = vpop.f32.mrf.mxu1  ;;  %v1603_v42 = vadd.f32 %v4354_v36, %v1535_v14 }
 0x253   :  { %v1116_v12 = vsel %vm1115_vm4, %v2268_v1, %v1112_v4  ;;  %2027 = vst.msk [vmem:[%s4755_s5 + $0x20] sm:$0xf] %vm2018_vm5, %v1962_v21  ;;  %v1855_v59 = vadd.f32 %v4492_v24, %v1854_v33 }
 0x254   :  { %v1588_v32 = vadd.f32 %v4354_v36, %v1520_v61  ;;  %v1468_v22 = vmul.f32 %v1116_v12, %v4091_v15 }
 0x255   :  { %v1978_v23 = vpack.c.bf16 %v1855_v59, %v1855_v59 }
 0x256   :  { %v1644_v41 = vpack.c.bf16 %v1588_v32, %v1587_v31  ;;  %v1536_v5 = vmul.f32 %v4331_v44, %v1468_v22  ;;  %v1816_v25 = vpop.f32.mrf.mxu0 }
 0x257   :  { %2043 = vst.msk [vmem:[%s4755_s5 + $0x60] sm:$0xf] %vm2018_vm5, %v1978_v23  ;;  %v1817_v6 = vadd.f32 %v4492_v24, %v1816_v25 }
 0x258   :  { %2102 = vmatmul.msk.bf16.gmra.mxu0 %vm85_vm0, %v1644_v41  ;;  %v1604_v15 = vadd.f32 %v4354_v36, %v1536_v5 }
 0x259   :  { %v1963_v18 = vpack.c.bf16 %v1817_v6, %v1817_v6 }
 0x25a   :  { %v1652_v8 = vpack.c.bf16 %v1604_v15, %v1603_v42  ;;  %v1856_v38 = vpop.f32.mrf.mxu1 }
 0x25b   :  { %2028 = vst.msk [vmem:[%s4755_s5 + $0x24] sm:$0xf] %vm2018_vm5, %v1963_v18  ;;  %v1857_v44 = vadd.f32 %v4492_v24, %v1856_v38 }
 0x25c   :  { %2110 = vmatmul.msk.bf16.gmra.mxu1 %vm85_vm0, %v1652_v8 }
 0x25d   :  { %v1979_v36 = vpack.c.bf16 %v1857_v44, %v1857_v44 }
 0x25f   :  { %2044 = vst.msk [vmem:[%s4755_s5 + $0x64] sm:$0xf] %vm2018_vm5, %v1979_v36 }
 0x266   :  { %v1899_v46 = vpop.f32.mrf.mxu2 }
 0x267   :  { %v1900_v56 = vadd.f32 %v4492_v24, %v1899_v46 }
 0x269   :  { %v1996_v2 = vpack.c.bf16 %v1900_v56, %v1900_v56 }
 0x26b   :  { %2061 = vst.msk [vmem:[%s4755_s5 + $0xa8] sm:$0xf] %vm2018_vm5, %v1996_v2 }
 0x26e   :  { %v1901_v60 = vpop.f32.mrf.mxu2 }
 0x26f   :  { %v1939_v52 = vpop.f32.mrf.mxu3  ;;  %v1902_v50 = vadd.f32 %v4492_v24, %v1901_v60 }
 0x270   :  { %v1940_v27 = vadd.f32 %v4492_v24, %v1939_v52 }
 0x271   :  { %v1997_v51 = vpack.c.bf16 %v1902_v50, %v1902_v50 }
 0x272   :  { %v2012_v40 = vpack.c.bf16 %v1940_v27, %v1940_v27 }
 0x273   :  { %2062 = vst.msk [vmem:[%s4755_s5 + $0xac] sm:$0xf] %vm2018_vm5, %v1997_v51 }
 0x274   :  { %2077 = vst.msk [vmem:[%s4755_s5 + $0xe8] sm:$0xf] %vm2018_vm5, %v2012_v40 }
 0x276   :  { %v1819_v49 = vpop.f32.mrf.mxu0 }
 0x277   :  { %v1941_v3 = vpop.f32.mrf.mxu3  ;;  %v1820_v62 = vadd.f32 %v4492_v24, %v1819_v49 }
 0x278   :  { %v1942_v30 = vadd.f32 %v4492_v24, %v1941_v3 }
 0x279   :  { %v1964_v53 = vpack.c.bf16 %v1820_v62, %v1820_v62 }
 0x27a   :  { %v2013_v13 = vpack.c.bf16 %v1942_v30, %v1942_v30 }
 0x27b   :  { %2029 = vst.msk [vmem:[%s4755_s5 + $0x28] sm:$0xf] %vm2018_vm5, %v1964_v53  ;;  %v1859_v7 = vpop.f32.mrf.mxu1 }
 0x27c   :  { %2078 = vst.msk [vmem:[%s4755_s5 + $0xec] sm:$0xf] %vm2018_vm5, %v2013_v13  ;;  %v1860_v57 = vadd.f32 %v4492_v24, %v1859_v7 }
 0x27e   :  { %v1821_v48 = vpop.f32.mrf.mxu0  ;;  %v1980_v58 = vpack.c.bf16 %v1860_v57, %v1860_v57 }
 0x27f   :  { %v1822_v39 = vadd.f32 %v4492_v24, %v1821_v48 }
 0x280   :  { %2045 = vst.msk [vmem:[%s4755_s5 + $0x68] sm:$0xf] %vm2018_vm5, %v1980_v58 }
 0x281   :  { %v1965_v34 = vpack.c.bf16 %v1822_v39, %v1822_v39 }
 0x283   :  { %2030 = vst.msk [vmem:[%s4755_s5 + $0x2c] sm:$0xf] %vm2018_vm5, %v1965_v34  ;;  %v1861_v1 = vpop.f32.mrf.mxu1 }
 0x284   :  { %v1862_v47 = vadd.f32 %v4492_v24, %v1861_v1 }
 0x286   :  { %v1981_v20 = vpack.c.bf16 %v1862_v47, %v1862_v47 }
 0x288   :  { %2046 = vst.msk [vmem:[%s4755_s5 + $0x6c] sm:$0xf] %vm2018_vm5, %v1981_v20 }
 0x28b   :  { %v1904_v29 = vpop.f32.mrf.mxu2 }
 0x28c   :  { %v1905_v45 = vadd.f32 %v4492_v24, %v1904_v29 }
 0x28e   :  { %v1998_v9 = vpack.c.bf16 %v1905_v45, %v1905_v45 }
 0x290   :  { %2063 = vst.msk [vmem:[%s4755_s5 + $0xb0] sm:$0xf] %vm2018_vm5, %v1998_v9  ;;  %v1944_v17 = vpop.f32.mrf.mxu3 }
 0x291   :  { %v1945_v10 = vadd.f32 %v4492_v24, %v1944_v17 }
 0x293   :  { %v2014_v16 = vpack.c.bf16 %v1945_v10, %v1945_v10  ;;  %v1906_v26 = vpop.f32.mrf.mxu2 }
 0x294   :  { %v1907_v19 = vadd.f32 %v4492_v24, %v1906_v26 }
 0x295   :  { %2079 = vst.msk [vmem:[%s4755_s5 + $0xf0] sm:$0xf] %vm2018_vm5, %v2014_v16 }
 0x296   :  { %v1999_v63 = vpack.c.bf16 %v1907_v19, %v1907_v19 }
 0x298   :  { %2064 = vst.msk [vmem:[%s4755_s5 + $0xb4] sm:$0xf] %vm2018_vm5, %v1999_v63  ;;  %v1946_v35 = vpop.f32.mrf.mxu3  ;;  %v1824_v43 = vpop.f32.mrf.mxu0 }
 0x299   :  { %v1947_v54 = vadd.f32 %v4492_v24, %v1946_v35  ;;  %v1825_v28 = vadd.f32 %v4492_v24, %v1824_v43 }
 0x29b   :  { %v2015_v0 = vpack.c.bf16 %v1947_v54, %v1947_v54  ;;  %v1966_v55 = vpack.c.bf16 %v1825_v28, %v1825_v28 }
 0x29d   :  { %2080 = vst.msk [vmem:[%s4755_s5 + $0xf4] sm:$0xf] %vm2018_vm5, %v2015_v0 }
 0x29e   :  { %2031 = vst.msk [vmem:[%s4755_s5 + $0x30] sm:$0xf] %vm2018_vm5, %v1966_v55  ;;  %v1864_v37 = vpop.f32.mrf.mxu1 }
 0x29f   :  { %v1865_v11 = vadd.f32 %v4492_v24, %v1864_v37 }
 0x2a0   :  { %v1826_v4 = vpop.f32.mrf.mxu0 }
 0x2a1   :  { %v1827_v61 = vadd.f32 %v4492_v24, %v1826_v4  ;;  %v1982_v31 = vpack.c.bf16 %v1865_v11, %v1865_v11 }
 0x2a3   :  { %v1967_v12 = vpack.c.bf16 %v1827_v61, %v1827_v61  ;;  %2047 = vst.msk [vmem:[%s4755_s5 + $0x70] sm:$0xf] %vm2018_vm5, %v1982_v31 }
 0x2a5   :  { %2032 = vst.msk [vmem:[%s4755_s5 + $0x34] sm:$0xf] %vm2018_vm5, %v1967_v12 }
 0x2a6   :  { %v1866_v21 = vpop.f32.mrf.mxu1 }
 0x2a7   :  { %v1867_v32 = vadd.f32 %v4492_v24, %v1866_v21 }
 0x2a9   :  { %v1983_v22 = vpack.c.bf16 %v1867_v32, %v1867_v32 }
 0x2ab   :  { %2048 = vst.msk [vmem:[%s4755_s5 + $0x74] sm:$0xf] %vm2018_vm5, %v1983_v22 }
 0x2b1   :  { %v1909_v33 = vpop.f32.mrf.mxu2 }
 0x2b2   :  { %v1910_v14 = vadd.f32 %v4492_v24, %v1909_v33 }
 0x2b4   :  { %v2000_v59 = vpack.c.bf16 %v1910_v14, %v1910_v14 }
 0x2b6   :  { %2065 = vst.msk [vmem:[%s4755_s5 + $0xb8] sm:$0xf] %vm2018_vm5, %v2000_v59 }
 0x2b7   :  { %v1949_v41 = vpop.f32.mrf.mxu3 }
 0x2b8   :  { %v1950_v5 = vadd.f32 %v4492_v24, %v1949_v41 }
 0x2b9   :  { %v1911_v23 = vpop.f32.mrf.mxu2 }
 0x2ba   :  { %v1912_v25 = vadd.f32 %v4492_v24, %v1911_v23  ;;  %v2016_v42 = vpack.c.bf16 %v1950_v5, %v1950_v5 }
 0x2bc   :  { %v2001_v15 = vpack.c.bf16 %v1912_v25, %v1912_v25  ;;  %2081 = vst.msk [vmem:[%s4755_s5 + $0xf8] sm:$0xf] %vm2018_vm5, %v2016_v42 }
 0x2be   :  { %2066 = vst.msk [vmem:[%s4755_s5 + $0xbc] sm:$0xf] %vm2018_vm5, %v2001_v15 }
 0x2bf   :  { %v1951_v6 = vpop.f32.mrf.mxu3 }
 0x2c0   :  { %v1952_v8 = vadd.f32 %v4492_v24, %v1951_v6 }
 0x2c2   :  { %v2017_v18 = vpack.c.bf16 %v1952_v8, %v1952_v8 }
 0x2c4   :  { %2082 = vst.msk [vmem:[%s4755_s5 + $0xfc] sm:$0xf] %vm2018_vm5, %v2017_v18 }
 0x2d5   :  { %v1829_v38 = vpop.f32.mrf.mxu0 }
 0x2d6   :  { %v1830_v44 = vadd.f32 %v4492_v24, %v1829_v38 }
 0x2d8   :  { %v1968_v36 = vpack.c.bf16 %v1830_v44, %v1830_v44 }
 0x2d9   :  { %v1869_v46 = vpop.f32.mrf.mxu1 }
 0x2da   :  { %2033 = vst.msk [vmem:[%s4755_s5 + $0x38] sm:$0xf] %vm2018_vm5, %v1968_v36  ;;  %v1870_v56 = vadd.f32 %v4492_v24, %v1869_v46 }
 0x2dc   :  { %v1984_v60 = vpack.c.bf16 %v1870_v56, %v1870_v56 }
 0x2dd   :  { %v1831_v2 = vpop.f32.mrf.mxu0 }
 0x2de   :  { %v1832_v52 = vadd.f32 %v4492_v24, %v1831_v2  ;;  %2049 = vst.msk [vmem:[%s4755_s5 + $0x78] sm:$0xf] %vm2018_vm5, %v1984_v60 }
 0x2e0   :  { %v1969_v50 = vpack.c.bf16 %v1832_v52, %v1832_v52 }
 0x2e1   :  { %v1871_v27 = vpop.f32.mrf.mxu1 }
 0x2e2   :  { %2034 = vst.msk [vmem:[%s4755_s5 + $0x3c] sm:$0xf] %vm2018_vm5, %v1969_v50  ;;  %v1872_v51 = vadd.f32 %v4492_v24, %v1871_v27 }
 0x2e4   :  { %v1985_v40 = vpack.c.bf16 %v1872_v51, %v1872_v51 }
 0x2e6   :  { %2050 = vst.msk [vmem:[%s4755_s5 + $0x7c] sm:$0xf] %vm2018_vm5, %v1985_v40 }

</bundles_post_ra>
